<compile_context>
chip_gen: v7x
topology: tpu7x:2x2x1
jax: 0.10.0
libtpu: 0.0.40
codegen_flags: <defaults>
</compile_context>

<pallas_src>
import math
from functools import partial

import jax
import jax.numpy as jnp
from jax.experimental import pallas as pl
from jax.experimental.pallas import tpu as pltpu

LN_EPS = 1e-5
RMS_EPS = 1e-5


def _default_vmem_limit():
    # Leave headroom per generation: ~48 MiB on v7x (64 MiB VMEM), ~96 MiB on v5e/v6e (128 MiB).
    try:
        cap = getattr(pltpu.get_tpu_info(), "vmem_capacity_bytes", None)
        if cap:
            return int(min(cap * 3 // 4, 100 * 1024 * 1024))
    except Exception:
        pass
    return 64 * 1024 * 1024


_VMEM_LIMIT = _default_vmem_limit()


# ----------------------------- in-kernel helpers -----------------------------

def _layernorm(x, g, b, eps=LN_EPS):
    mu = jnp.mean(x, axis=-1, keepdims=True)
    xc = x - mu
    var = jnp.mean(xc * xc, axis=-1, keepdims=True)
    return xc * jax.lax.rsqrt(var + eps) * g + b


# ------------------------- kernel 1: LN + QKV + RoPE --------------------------

def _qkv_rope_kernel(x_ref, wqkv_ref, ln_g_ref, ln_b_ref, cos_ref, sin_ref, qkv_ref,
                     *, head_dim, q_scale):
    x = x_ref[0].astype(jnp.float32)                            # (TS, D)
    xn = _layernorm(x, ln_g_ref[...], ln_b_ref[...])
    qkv = jnp.dot(xn.astype(wqkv_ref.dtype), wqkv_ref[...],
                  preferred_element_type=jnp.float32)           # (TS, 3D) f32

    D = x.shape[-1]
    half = head_dim // 2
    q, k, v = qkv[:, :D], qkv[:, D:2 * D], qkv[:, 2 * D:]
    cos = cos_ref[...].astype(jnp.float32)                      # (TS, D) from bf16 table
    sin = sin_ref[...].astype(jnp.float32)                      # signed-sin (sign folded in)

    # first-half-of-sub-head mask from an iota (no extra HBM table).
    col = jax.lax.broadcasted_iota(jnp.int32, (1, D), 1)
    if head_dim & (head_dim - 1) == 0:
        sub = jnp.bitwise_and(col, head_dim - 1)
    else:
        sub = col % head_dim
    first_half = sub < half

    def rope(t):
        # rotate-half partner across ALL sub-heads in one pass.
        #   left[c]  = t[(c + half) % D]  (valid partner for first-half columns)
        #   right[c] = t[(c - half) % D]  (valid partner for second-half columns)
        # TODO(synk): left/right could be two pltpu.roll XLU ops instead of slice+concat.
        left = jnp.concatenate([t[:, half:], t[:, :half]], axis=-1)
        right = jnp.concatenate([t[:, D - half:], t[:, :D - half]], axis=-1)
        partner = jnp.where(first_half, left, right)
        return t * cos + partner * sin

    # Write straight into the output block's column slices (no (TS, 3D) concat copy).
    qkv_ref[0, :, :D] = (rope(q) * q_scale).astype(qkv_ref.dtype)
    qkv_ref[0, :, D:2 * D] = rope(k).astype(qkv_ref.dtype)
    qkv_ref[0, :, 2 * D:] = v.astype(qkv_ref.dtype)


# ------------------ kernel 2: flash differential attention --------------------

def _diff_flash_attn_kernel(scal_ref, x_ref, q_ref, k_ref, v_ref, wo_ref, rmsg_ref,
                            o_ref, m_scr, l_scr, acc1_scr, acc2_scr,
                            *, num_heads, head_dim):
    ki = pl.program_id(2)
    lam = scal_ref[0]                   # lambda_1 - lambda_2 + lambda_init
    omli = scal_ref[1]                  # 1 - lambda_init
    hd = head_dim
    vd = 2 * head_dim
    H = num_heads
    bq = q_ref.shape[1]
    D = H * vd

    @pl.when(ki == 0)
    def _():
        m_scr[...] = jnp.full(m_scr.shape, -jnp.inf, dtype=jnp.float32)
        l_scr[...] = jnp.zeros(l_scr.shape, dtype=jnp.float32)
        acc1_scr[...] = jnp.zeros(acc1_scr.shape, dtype=jnp.float32)
        acc2_scr[...] = jnp.zeros(acc2_scr.shape, dtype=jnp.float32)

    q = q_ref[0]                        # (TQ, D) bf16, rope'd & pre-scaled
    k = k_ref[0]                        # (TK, D) bf16, rope'd
    v = v_ref[0]                        # (TK, D) bf16

    nt_dims = (((1,), (1,)), ((), ()))  # q @ k^T without materializing a transpose
    # Per-branch parts collected so the accumulator / stat updates become ONE lane-dense
    # full-width store per branch per KV step.
    m_cols = [[], []]
    l_cols = [[], []]
    a_parts = [[], []]
    pv_parts = [[], []]
    # TODO(synk): for large num_heads bound the unroll (head-batched dot_general / fori_loop)
    #             to cap vreg pressure; fine at these head counts.
    for h in range(H):
        vh = v[:, h * vd:(h + 1) * vd]
        for b in range(2):
            j = 2 * h + b
            col = b * H + h                                   # branch-major stats column
            qj = q[:, j * hd:(j + 1) * hd]
            kj = k[:, j * hd:(j + 1) * hd]
            s = jax.lax.dot_general(qj, kj, nt_dims,
                                    preferred_element_type=jnp.float32)   # (TQ, TK)
            m_prev = m_scr[:, col:col + 1]
            m_new = jnp.maximum(m_prev, jnp.max(s, axis=-1, keepdims=True))
            alpha = jnp.exp(m_prev - m_new)
            p = jnp.exp(s - m_new)
            l_new = alpha * l_scr[:, col:col + 1] + jnp.sum(p, axis=-1, keepdims=True)
            pv = jnp.dot(p.astype(v.dtype), vh, preferred_element_type=jnp.float32)
            m_cols[b].append(m_new)
            l_cols[b].append(l_new)
            a_parts[b].append(jnp.broadcast_to(alpha, (bq, vd)))
            pv_parts[b].append(pv)

    m_scr[...] = jnp.concatenate(m_cols[0] + m_cols[1], axis=-1)          # (TQ, 2H)
    l_scr[...] = jnp.concatenate(l_cols[0] + l_cols[1], axis=-1)
    acc1_scr[...] = (jnp.concatenate(a_parts[0], axis=-1) * acc1_scr[...]
                     + jnp.concatenate(pv_parts[0], axis=-1))             # (TQ, D) dense
    acc2_scr[...] = (jnp.concatenate(a_parts[1], axis=-1) * acc2_scr[...]
                     + jnp.concatenate(pv_parts[1], axis=-1))

    @pl.when(ki == pl.num_programs(2) - 1)
    def _():
        inv_l = 1.0 / l_scr[...]                                          # tiny; exact divide
        inv1 = jnp.concatenate(
            [jnp.broadcast_to(inv_l[:, h:h + 1], (bq, vd)) for h in range(H)], axis=-1)
        inv2 = jnp.concatenate(
            [jnp.broadcast_to(inv_l[:, H + h:H + h + 1], (bq, vd)) for h in range(H)], axis=-1)
        o1 = acc1_scr[...] * inv1                                         # (TQ, D)
        o2 = acc2_scr[...] * inv2
        oh = o1 - lam * o2
        sq = oh * oh
        rstd = jnp.concatenate(
            [jnp.broadcast_to(
                jax.lax.rsqrt(jnp.mean(sq[:, h * vd:(h + 1) * vd], axis=-1, keepdims=True)
                              + RMS_EPS),
                (bq, vd)) for h in range(H)], axis=-1)
        oh = oh * rstd * rmsg_ref[...] * omli                             # per-head RMSNorm
        attn_out = jnp.dot(oh.astype(wo_ref.dtype), wo_ref[...],
                           preferred_element_type=jnp.float32)            # (TQ, D)
        o_ref[0] = (x_ref[0].astype(jnp.float32) + attn_out).astype(o_ref.dtype)


# ------------------------- kernel 3: SwishGLU FFN -----------------------------

def _swishglu_kernel(x_ref, ln_g_ref, ln_b_ref, wgu_ref, wo_ref, o_ref,
                     xn_scr, acc_scr, *, block_n):
    n = pl.program_id(2)

    @pl.when(n == 0)
    def _():
        xn = _layernorm(x_ref[0].astype(jnp.float32), ln_g_ref[...], ln_b_ref[...])
        xn_scr[...] = xn.astype(xn_scr.dtype)
        acc_scr[...] = jnp.zeros(acc_scr.shape, dtype=jnp.float32)

    xn = xn_scr[...]                                                      # (TS, D) bf16
    gu = jnp.dot(xn, wgu_ref[...], preferred_element_type=jnp.float32)    # (TS, 2*bn)
    g = gu[:, :block_n]
    u = gu[:, block_n:]
    h = (g * jax.nn.sigmoid(g)) * u                                       # SiLU(gate) * value
    acc_scr[...] += jnp.dot(h.astype(wo_ref.dtype), wo_ref[...],
                            preferred_element_type=jnp.float32)           # (TS, D)

    @pl.when(n == pl.num_programs(2) - 1)
    def _():
        o_ref[0] = (x_ref[0].astype(jnp.float32) + acc_scr[...]).astype(o_ref.dtype)


# ------------------------------- wrappers -------------------------------------

def diff_attn_layer(x, p, *, num_heads, head_dim,
                    block_s=256, block_q=256, block_kv=256):
    B, S, D = x.shape
    assert D == 2 * num_heads * head_dim
    assert S % block_s == 0 and S % block_q == 0 and S % block_kv == 0

    # --- kernel 1: LN + fused QKV + full-width RoPE ---
    qkv = pl.pallas_call(
        partial(_qkv_rope_kernel, head_dim=head_dim, q_scale=head_dim ** -0.5),
        out_shape=jax.ShapeDtypeStruct((B, S, 3 * D), jnp.bfloat16),
        grid=(B, S // block_s),
        in_specs=[
            pl.BlockSpec((1, block_s, D), lambda b, s: (b, s, 0)),    # x (bf16)
            pl.BlockSpec((D, 3 * D), lambda b, s: (0, 0)),            # Wqkv (resident, bf16)
            pl.BlockSpec((1, D), lambda b, s: (0, 0)),                # ln gamma
            pl.BlockSpec((1, D), lambda b, s: (0, 0)),                # ln beta
            pl.BlockSpec((block_s, D), lambda b, s: (s, 0)),          # cos (bf16)
            pl.BlockSpec((block_s, D), lambda b, s: (s, 0)),          # signed sin (bf16)
        ],
        out_specs=pl.BlockSpec((1, block_s, 3 * D), lambda b, s: (b, s, 0)),
        compiler_params=pltpu.CompilerParams(
            dimension_semantics=("parallel", "parallel"),
            vmem_limit_bytes=_VMEM_LIMIT),
    )(x, p["wqkv"], p["ln_g"], p["ln_b"], p["cos"], p["sin"])

    # --- kernel 2: flash differential attention + out-proj + residual ---
    return pl.pallas_call(
        partial(_diff_flash_attn_kernel, num_heads=num_heads, head_dim=head_dim),
        out_shape=jax.ShapeDtypeStruct((B, S, D), x.dtype),
        grid=(B, S // block_q, S // block_kv),
        in_specs=[
            pl.BlockSpec(memory_space=pltpu.MemorySpace.SMEM),                 # [lambda, 1-lambda_init]
            pl.BlockSpec((1, block_q, D), lambda b, qi, ki: (b, qi, 0)),       # x (residual)
            pl.BlockSpec((1, block_q, D), lambda b, qi, ki: (b, qi, 0)),       # q slab of qkv
            pl.BlockSpec((1, block_kv, D), lambda b, qi, ki: (b, ki, 1)),      # k slab of qkv
            pl.BlockSpec((1, block_kv, D), lambda b, qi, ki: (b, ki, 2)),      # v slab of qkv
            pl.BlockSpec((D, D), lambda b, qi, ki: (0, 0)),                    # Wo (resident)
            pl.BlockSpec((1, D), lambda b, qi, ki: (0, 0)),                    # rms gamma (tiled)
        ],
        out_specs=pl.BlockSpec((1, block_q, D), lambda b, qi, ki: (b, qi, 0)),
        scratch_shapes=[
            pltpu.VMEM((block_q, 2 * num_heads), jnp.float32),                 # running max
            pltpu.VMEM((block_q, 2 * num_heads), jnp.float32),                 # running denom
            pltpu.VMEM((block_q, D), jnp.float32),                             # branch-1 acc slab
            pltpu.VMEM((block_q, D), jnp.float32),                             # branch-2 acc slab
        ],
        compiler_params=pltpu.CompilerParams(
            dimension_semantics=("parallel", "parallel", "arbitrary"),
            vmem_limit_bytes=_VMEM_LIMIT),
    )(p["scal"], x, qkv, qkv, qkv, p["wo"], p["rms_g_full"])


def swishglu_layer(x, p, *, block_s=256, block_n=256):
    B, S, D = x.shape
    inner = p["wo"].shape[0]
    assert S % block_s == 0 and inner % block_n == 0
    return pl.pallas_call(
        partial(_swishglu_kernel, block_n=block_n),
        out_shape=jax.ShapeDtypeStruct((B, S, D), x.dtype),
        grid=(B, S // block_s, inner // block_n),
        in_specs=[
            pl.BlockSpec((1, block_s, D), lambda b, si, n: (b, si, 0)),        # x
            pl.BlockSpec((1, D), lambda b, si, n: (0, 0)),                     # ln gamma
            pl.BlockSpec((1, D), lambda b, si, n: (0, 0)),                     # ln beta
            pl.BlockSpec((D, 2 * block_n), lambda b, si, n: (0, n)),           # [Wg|Wu] inner tile
            pl.BlockSpec((block_n, D), lambda b, si, n: (n, 0)),               # Wo inner tile
        ],
        out_specs=pl.BlockSpec((1, block_s, D), lambda b, si, n: (b, si, 0)),
        scratch_shapes=[
            pltpu.VMEM((block_s, D), jnp.bfloat16),                            # cached LN(x)
            pltpu.VMEM((block_s, D), jnp.float32),                             # down-proj accumulator
        ],
        compiler_params=pltpu.CompilerParams(
            dimension_semantics=("parallel", "parallel", "arbitrary"),
            vmem_limit_bytes=_VMEM_LIMIT),
    )(x, p["ln_g"], p["ln_b"], p["wgu"], p["wo"])


def diff_transformer_encoder(x, layers, *, num_heads, head_dim,
                             block_s=256, block_q=256, block_kv=256, block_n=256):
    # Residual stream carried in bf16 between kernels / layers (f32 math inside).
    x = x.astype(jnp.bfloat16)
    for attn_p, ffn_p in layers:
        x = diff_attn_layer(x, attn_p, num_heads=num_heads, head_dim=head_dim,
                            block_s=block_s, block_q=block_q, block_kv=block_kv)
        x = swishglu_layer(x, ffn_p, block_s=block_s, block_n=block_n)
    return x  # norm=None in the reference module


# ------------------------------ param init ------------------------------------

def init_params(key, *, hidden_dim, num_heads, enc_layers, seq_len, ffn_block_n):
    D = hidden_dim
    H = num_heads
    head_dim = D // (2 * H)
    half = head_dim // 2
    inner = 3 * D

    # Rotary tables: per-sub-head f32 (reference) and full-width bf16 cos + signed-sin (kernel).
    pos = jnp.arange(seq_len, dtype=jnp.float32)
    inv_freq = 1.0 / (10000.0 ** (jnp.arange(0, head_dim, 2, dtype=jnp.float32) / head_dim))
    ang = pos[:, None] * inv_freq[None, :]                          # (S, half)
    cos_h = jnp.concatenate([jnp.cos(ang), jnp.cos(ang)], axis=-1)  # (S, hd)
    sin_h = jnp.concatenate([jnp.sin(ang), jnp.sin(ang)], axis=-1)  # (S, hd)
    cos_full = jnp.tile(cos_h, (1, 2 * H))                          # (S, D)
    sin_full = jnp.tile(sin_h, (1, 2 * H))                          # (S, D)
    first_half = ((jnp.arange(D) % head_dim) < half)[None, :]
    sin_signed = jnp.where(first_half, -sin_full, sin_full)
    cos_bf = cos_full.astype(jnp.bfloat16)
    sin_bf = sin_signed.astype(jnp.bfloat16)

    def nrm(k, shape, std=0.02):
        return (std * jax.random.normal(k, shape)).astype(jnp.float32)

    n_tiles = inner // ffn_block_n
    layers = []
    for i in range(enc_layers):
        key, *ks = jax.random.split(key, 16)
        lam_init = 0.8 - 0.6 * math.exp(-0.3 * i)
        lq1, lk1 = nrm(ks[0], (head_dim,), 0.1), nrm(ks[1], (head_dim,), 0.1)
        lq2, lk2 = nrm(ks[2], (head_dim,), 0.1), nrm(ks[3], (head_dim,), 0.1)
        lam_full = (jnp.exp(jnp.sum(lq1 * lk1)) - jnp.exp(jnp.sum(lq2 * lk2))
                    + jnp.float32(lam_init))
        scal = jnp.stack([lam_full, jnp.float32(1.0 - lam_init)]).astype(jnp.float32)

        wq, wk, wv = nrm(ks[4], (D, D)), nrm(ks[5], (D, D)), nrm(ks[6], (D, D))
        wo = nrm(ks[7], (D, D)).astype(jnp.bfloat16)
        wqkv = jnp.concatenate([wq, wk, wv], axis=1).astype(jnp.bfloat16)   # fused QKV

        rms_g = jnp.ones((1, 2 * head_dim), jnp.float32)
        attn = dict(
            scal=scal, wqkv=wqkv, wo=wo,
            ln_g=jnp.ones((1, D), jnp.float32), ln_b=jnp.zeros((1, D), jnp.float32),
            rms_g=rms_g, rms_g_full=jnp.tile(rms_g, (1, H)),
            cos=cos_bf, sin=sin_bf,
            ref_cos=cos_h, ref_sin=sin_h,
        )

        wg = nrm(ks[8], (D, inner)).astype(jnp.bfloat16)
        wu = nrm(ks[9], (D, inner)).astype(jnp.bfloat16)
        wdo = nrm(ks[10], (inner, D)).astype(jnp.bfloat16)
        # Interleave gate/up per inner tile so each grid step does ONE fused matmul.
        wgu = jnp.concatenate(
            [wg.reshape(D, n_tiles, ffn_block_n), wu.reshape(D, n_tiles, ffn_block_n)],
            axis=2).reshape(D, 2 * inner)
        ffn = dict(
            ln_g=jnp.ones((1, D), jnp.float32), ln_b=jnp.zeros((1, D), jnp.float32),
            wgu=wgu, wo=wdo, wg=wg, wu=wu,   # wg/wu kept only for the pure-JAX reference
        )
        layers.append((attn, ffn))
    return layers, head_dim


# ------------------------------ pure-JAX reference -----------------------------

def _ref_attn(x, p, num_heads, head_dim):
    D = x.shape[-1]
    w = p["wqkv"].astype(jnp.float32)
    wq, wk, wv = w[:, :D], w[:, D:2 * D], w[:, 2 * D:]
    wo = p["wo"].astype(jnp.float32)
    xn = _layernorm(x, p["ln_g"], p["ln_b"])
    q, k, v = xn @ wq, xn @ wk, xn @ wv
    cos, sin = p["ref_cos"], p["ref_sin"]
    half = head_dim // 2
    lam, omli = p["scal"][0], p["scal"][1]
    scale = head_dim ** -0.5

    def rope(t):
        t1, t2 = t[..., :half], t[..., half:]
        return t * cos + jnp.concatenate([-t2, t1], axis=-1) * sin

    outs = []
    for h in range(num_heads):
        c0 = 2 * h * head_dim
        q1 = rope(q[..., c0:c0 + head_dim])
        q2 = rope(q[..., c0 + head_dim:c0 + 2 * head_dim])
        k1 = rope(k[..., c0:c0 + head_dim])
        k2 = rope(k[..., c0 + head_dim:c0 + 2 * head_dim])
        vh = v[..., h * 2 * head_dim:(h + 1) * 2 * head_dim]
        a1 = jax.nn.softmax(jnp.einsum("bqd,bkd->bqk", q1, k1) * scale, axis=-1)
        a2 = jax.nn.softmax(jnp.einsum("bqd,bkd->bqk", q2, k2) * scale, axis=-1)
        oh = jnp.einsum("bqk,bkd->bqd", a1 - lam * a2, vh)
        oh = oh * jax.lax.rsqrt(jnp.mean(oh * oh, -1, keepdims=True) + RMS_EPS) * p["rms_g"]
        outs.append(oh * omli)
    return x + jnp.concatenate(outs, axis=-1) @ wo


def _ref_ffn(x, p):
    xn = _layernorm(x, p["ln_g"], p["ln_b"])
    g = xn @ p["wg"].astype(jnp.float32)
    u = xn @ p["wu"].astype(jnp.float32)
    return x + ((g * jax.nn.sigmoid(g)) * u) @ p["wo"].astype(jnp.float32)


def ref_encoder(x, layers, num_heads, head_dim):
    for attn_p, ffn_p in layers:
        x = _ref_attn(x, attn_p, num_heads, head_dim)
        x = _ref_ffn(x, ffn_p)
    return x


# ---------------------------------- main ---------------------------------------

if __name__ == "__main__":
    B, S, D = 2, 512, 128
    num_heads, enc_layers = 2, 2
    # 256-row / 256-KV tiles (v6e/v7x-friendly); FFN inner tile 128 so it divides 3*D=384
    # and exercises the streamed inner-dim path.
    BLOCK_S = BLOCK_Q = BLOCK_KV = 256
    BLOCK_N = 128

    key = jax.random.PRNGKey(0)
    key, kx, kp = jax.random.split(key, 3)
    x = jax.random.normal(kx, (B, S, D), dtype=jnp.float32)

    layers, head_dim = init_params(kp, hidden_dim=D, num_heads=num_heads,
                                   enc_layers=enc_layers, seq_len=S, ffn_block_n=BLOCK_N)

    out = diff_transformer_encoder(
        x, layers, num_heads=num_heads, head_dim=head_dim,
        block_s=BLOCK_S, block_q=BLOCK_Q, block_kv=BLOCK_KV, block_n=BLOCK_N)
    out = jax.block_until_ready(out)

    with jax.default_matmul_precision("highest"):
        ref = jax.block_until_ready(ref_encoder(x, layers, num_heads, head_dim))

    out_f32 = out.astype(jnp.float32)
    assert out.shape == (B, S, D)
    assert bool(jnp.all(jnp.isfinite(out_f32)))
    err = float(jnp.max(jnp.abs(out_f32 - ref)))
    # tolerance covers the bf16 residual stream / bf16 weights & RoPE tables
    assert bool(jnp.allclose(out_f32, ref, atol=3e-2, rtol=3e-2)), f"max abs diff {err}"
    print("KERNEL_OK")
</pallas_src>

<mosaic_0001>
module attributes {stable_mosaic.version = 11 : i64} {
  func.func @_qkv_rope_kernel(%arg0: i32, %arg1: i32, %arg2: memref<1x256x128xbf16, #tpu.memory_space<vmem>>, %arg3: memref<128x384xbf16, #tpu.memory_space<vmem>>, %arg4: memref<1x128xf32, #tpu.memory_space<vmem>>, %arg5: memref<1x128xf32, #tpu.memory_space<vmem>>, %arg6: memref<256x128xbf16, #tpu.memory_space<vmem>>, %arg7: memref<256x128xbf16, #tpu.memory_space<vmem>>, %arg8: memref<1x256x384xbf16, #tpu.memory_space<vmem>>) attributes {dimension_semantics = [#tpu.dimension_semantics<parallel>, #tpu.dimension_semantics<parallel>], iteration_bounds = array<i64: 2, 2>, scalar_prefetch = 0 : i64, scratch_operands = 0 : i64, tpu.core_type = #tpu.core_type<tc>, window_params = [{transform_indices = @transform_0, window_bounds = array<i64: 1, 256, 128>}, {pipeline_mode = #tpu.pipeline_mode<synchronous>, transform_indices = @transform_1, window_bounds = array<i64: 128, 384>}, {pipeline_mode = #tpu.pipeline_mode<synchronous>, transform_indices = @transform_2, window_bounds = array<i64: 1, 128>}, {pipeline_mode = #tpu.pipeline_mode<synchronous>, transform_indices = @transform_3, window_bounds = array<i64: 1, 128>}, {transform_indices = @transform_4, window_bounds = array<i64: 256, 128>}, {transform_indices = @transform_5, window_bounds = array<i64: 256, 128>}, {transform_indices = @transform_6, window_bounds = array<i64: 1, 256, 384>}]} {
    %c0 = arith.constant 0 : index
    %c0_0 = arith.constant 0 : index
    %c0_1 = arith.constant 0 : index
    %0 = vector.load %arg2[%c0, %c0_0, %c0_1] : memref<1x256x128xbf16, #tpu.memory_space<vmem>>, vector<1x256x128xbf16>
    %1 = vector.shape_cast %0 : vector<1x256x128xbf16> to vector<256x128xbf16>
    %2 = arith.extf %1 : vector<256x128xbf16> to vector<256x128xf32>
    %c0_2 = arith.constant 0 : index
    %c0_3 = arith.constant 0 : index
    %3 = vector.load %arg4[%c0_2, %c0_3] : memref<1x128xf32, #tpu.memory_space<vmem>>, vector<1x128xf32>
    %c0_4 = arith.constant 0 : index
    %c0_5 = arith.constant 0 : index
    %4 = vector.load %arg5[%c0_4, %c0_5] : memref<1x128xf32, #tpu.memory_space<vmem>>, vector<1x128xf32>
    %cst = arith.constant dense<0.000000e+00> : vector<256xf32>
    %5 = vector.multi_reduction <add>, %2, %cst [1] : vector<256x128xf32> to vector<256xf32>
    %6 = vector.shape_cast %5 : vector<256xf32> to vector<256x1xf32>
    %cst_6 = arith.constant 1.280000e+02 : f32
    %7 = vector.broadcast %cst_6 : f32 to vector<256x1xf32>
    %8 = arith.divf %6, %7 : vector<256x1xf32>
    %9 = vector.broadcast %8 : vector<256x1xf32> to vector<256x128xf32>
    %10 = arith.subf %2, %9 : vector<256x128xf32>
    %11 = arith.mulf %10, %10 : vector<256x128xf32>
    %cst_7 = arith.constant dense<0.000000e+00> : vector<256xf32>
    %12 = vector.multi_reduction <add>, %11, %cst_7 [1] : vector<256x128xf32> to vector<256xf32>
    %13 = vector.shape_cast %12 : vector<256xf32> to vector<256x1xf32>
    %cst_8 = arith.constant 1.280000e+02 : f32
    %14 = vector.broadcast %cst_8 : f32 to vector<256x1xf32>
    %15 = arith.divf %13, %14 : vector<256x1xf32>
    %cst_9 = arith.constant 9.99999974E-6 : f32
    %16 = vector.broadcast %cst_9 : f32 to vector<256x1xf32>
    %17 = arith.addf %15, %16 : vector<256x1xf32>
    %18 = math.rsqrt %17 : vector<256x1xf32>
    %19 = vector.broadcast %18 : vector<256x1xf32> to vector<256x128xf32>
    %20 = arith.mulf %10, %19 : vector<256x128xf32>
    %21 = vector.broadcast %3 : vector<1x128xf32> to vector<256x128xf32>
    %22 = arith.mulf %20, %21 : vector<256x128xf32>
    %23 = vector.broadcast %4 : vector<1x128xf32> to vector<256x128xf32>
    %24 = arith.addf %22, %23 : vector<256x128xf32>
    %25 = arith.truncf %24 : vector<256x128xf32> to vector<256x128xbf16>
    %c0_10 = arith.constant 0 : index
    %c0_11 = arith.constant 0 : index
    %26 = vector.load %arg3[%c0_10, %c0_11] : memref<128x384xbf16, #tpu.memory_space<vmem>>, vector<128x384xbf16>
    %cst_12 = arith.constant dense<0.000000e+00> : vector<256x384xf32>
    %27 = tpu.matmul %25, %26, %cst_12 {dimension_numbers = #tpu.dot_dimension_numbers<[1], [0], [0], [1], [0, 0, 1, 1], [], []>} : vector<256x128xbf16>, vector<128x384xbf16>, vector<256x384xf32> -> vector<256x384xf32>
    %28 = vector.extract_strided_slice %27 {offsets = [0, 0], sizes = [256, 128], strides = [1, 1]} : vector<256x384xf32> to vector<256x128xf32>
    %29 = vector.extract_strided_slice %27 {offsets = [0, 128], sizes = [256, 128], strides = [1, 1]} : vector<256x384xf32> to vector<256x128xf32>
    %30 = vector.extract_strided_slice %27 {offsets = [0, 256], sizes = [256, 128], strides = [1, 1]} : vector<256x384xf32> to vector<256x128xf32>
    %c0_13 = arith.constant 0 : index
    %c0_14 = arith.constant 0 : index
    %31 = vector.load %arg6[%c0_13, %c0_14] : memref<256x128xbf16, #tpu.memory_space<vmem>>, vector<256x128xbf16>
    %32 = arith.extf %31 : vector<256x128xbf16> to vector<256x128xf32>
    %c0_15 = arith.constant 0 : index
    %c0_16 = arith.constant 0 : index
    %33 = vector.load %arg7[%c0_15, %c0_16] : memref<256x128xbf16, #tpu.memory_space<vmem>>, vector<256x128xbf16>
    %34 = arith.extf %33 : vector<256x128xbf16> to vector<256x128xf32>
    %35 = tpu.iota {dimensions = array<i32: 1>} : vector<1x128xi32>
    %c31_i32 = arith.constant 31 : i32
    %36 = vector.broadcast %c31_i32 : i32 to vector<1x128xi32>
    %37 = arith.andi %35, %36 : vector<1x128xi32>
    %c16_i32 = arith.constant 16 : i32
    %38 = vector.broadcast %c16_i32 : i32 to vector<1x128xi32>
    %39 = arith.cmpi slt, %37, %38 : vector<1x128xi32>
    %40 = vector.extract_strided_slice %28 {offsets = [0, 16], sizes = [256, 112], strides = [1, 1]} : vector<256x128xf32> to vector<256x112xf32>
    %41 = vector.extract_strided_slice %28 {offsets = [0, 0], sizes = [256, 16], strides = [1, 1]} : vector<256x128xf32> to vector<256x16xf32>
    %42 = tpu.concatenate %40, %41 in 1 : vector<256x112xf32>, vector<256x16xf32> -> vector<256x128xf32>
    %43 = vector.extract_strided_slice %28 {offsets = [0, 112], sizes = [256, 16], strides = [1, 1]} : vector<256x128xf32> to vector<256x16xf32>
    %44 = vector.extract_strided_slice %28 {offsets = [0, 0], sizes = [256, 112], strides = [1, 1]} : vector<256x128xf32> to vector<256x112xf32>
    %45 = tpu.concatenate %43, %44 in 1 : vector<256x16xf32>, vector<256x112xf32> -> vector<256x128xf32>
    %46 = vector.shape_cast %39 : vector<1x128xi1> to vector<1x128xi1>
    %47 = vector.broadcast %46 : vector<1x128xi1> to vector<256x128xi1>
    %48 = arith.select %47, %42, %45 : vector<256x128xi1>, vector<256x128xf32>
    %49 = arith.mulf %28, %32 : vector<256x128xf32>
    %50 = arith.mulf %48, %34 : vector<256x128xf32>
    %51 = arith.addf %49, %50 : vector<256x128xf32>
    %cst_17 = arith.constant 0.176776692 : f32
    %52 = vector.broadcast %cst_17 : f32 to vector<256x128xf32>
    %53 = arith.mulf %51, %52 : vector<256x128xf32>
    %54 = arith.truncf %53 : vector<256x128xf32> to vector<256x128xbf16>
    %c0_18 = arith.constant 0 : index
    %c0_19 = arith.constant 0 : index
    %c0_20 = arith.constant 0 : index
    %55 = vector.load %arg8[%c0_18, %c0_19, %c0_20] : memref<1x256x384xbf16, #tpu.memory_space<vmem>>, vector<1x256x128xbf16>
    %56 = vector.shape_cast %55 : vector<1x256x128xbf16> to vector<256x128xbf16>
    %57 = vector.shape_cast %54 : vector<256x128xbf16> to vector<1x256x128xbf16>
    tpu.vector_store %arg8[%c0_18, %c0_19, %c0_20], %57 {strides = array<i32>} : memref<1x256x384xbf16, #tpu.memory_space<vmem>>, vector<1x256x128xbf16>,
    %58 = vector.extract_strided_slice %29 {offsets = [0, 16], sizes = [256, 112], strides = [1, 1]} : vector<256x128xf32> to vector<256x112xf32>
    %59 = vector.extract_strided_slice %29 {offsets = [0, 0], sizes = [256, 16], strides = [1, 1]} : vector<256x128xf32> to vector<256x16xf32>
    %60 = tpu.concatenate %58, %59 in 1 : vector<256x112xf32>, vector<256x16xf32> -> vector<256x128xf32>
    %61 = vector.extract_strided_slice %29 {offsets = [0, 112], sizes = [256, 16], strides = [1, 1]} : vector<256x128xf32> to vector<256x16xf32>
    %62 = vector.extract_strided_slice %29 {offsets = [0, 0], sizes = [256, 112], strides = [1, 1]} : vector<256x128xf32> to vector<256x112xf32>
    %63 = tpu.concatenate %61, %62 in 1 : vector<256x16xf32>, vector<256x112xf32> -> vector<256x128xf32>
    %64 = vector.shape_cast %39 : vector<1x128xi1> to vector<1x128xi1>
    %65 = vector.broadcast %64 : vector<1x128xi1> to vector<256x128xi1>
    %66 = arith.select %65, %60, %63 : vector<256x128xi1>, vector<256x128xf32>
    %67 = arith.mulf %29, %32 : vector<256x128xf32>
    %68 = arith.mulf %66, %34 : vector<256x128xf32>
    %69 = arith.addf %67, %68 : vector<256x128xf32>
    %70 = arith.truncf %69 : vector<256x128xf32> to vector<256x128xbf16>
    %c0_21 = arith.constant 0 : index
    %c0_22 = arith.constant 0 : index
    %c128 = arith.constant 128 : index
    %71 = vector.load %arg8[%c0_21, %c0_22, %c128] : memref<1x256x384xbf16, #tpu.memory_space<vmem>>, vector<1x256x128xbf16>
    %72 = vector.shape_cast %71 : vector<1x256x128xbf16> to vector<256x128xbf16>
    %73 = vector.shape_cast %70 : vector<256x128xbf16> to vector<1x256x128xbf16>
    tpu.vector_store %arg8[%c0_21, %c0_22, %c128], %73 {strides = array<i32>} : memref<1x256x384xbf16, #tpu.memory_space<vmem>>, vector<1x256x128xbf16>,
    %74 = arith.truncf %30 : vector<256x128xf32> to vector<256x128xbf16>
    %c0_23 = arith.constant 0 : index
    %c0_24 = arith.constant 0 : index
    %c256 = arith.constant 256 : index
    %75 = vector.load %arg8[%c0_23, %c0_24, %c256] : memref<1x256x384xbf16, #tpu.memory_space<vmem>>, vector<1x256x128xbf16>
    %76 = vector.shape_cast %75 : vector<1x256x128xbf16> to vector<256x128xbf16>
    %77 = vector.shape_cast %74 : vector<256x128xbf16> to vector<1x256x128xbf16>
    tpu.vector_store %arg8[%c0_23, %c0_24, %c256], %77 {strides = array<i32>} : memref<1x256x384xbf16, #tpu.memory_space<vmem>>, vector<1x256x128xbf16>,
    return
  }
  func.func @transform_0(%arg0: i32, %arg1: i32) -> (i32, i32, i32) {
    %c0_i32 = arith.constant 0 : i32
    %c0_i32_0 = arith.constant 0 : i32
    return %arg0, %arg1, %c0_i32 : i32, i32, i32
  }
  func.func @transform_1(%arg0: i32, %arg1: i32) -> (i32, i32) {
    %c0_i32 = arith.constant 0 : i32
    %c0_i32_0 = arith.constant 0 : i32
    %c0_i32_1 = arith.constant 0 : i32
    return %c0_i32, %c0_i32_0 : i32, i32
  }
  func.func @transform_2(%arg0: i32, %arg1: i32) -> (i32, i32) {
    %c0_i32 = arith.constant 0 : i32
    %c0_i32_0 = arith.constant 0 : i32
    %c0_i32_1 = arith.constant 0 : i32
    return %c0_i32, %c0_i32_0 : i32, i32
  }
  func.func @transform_3(%arg0: i32, %arg1: i32) -> (i32, i32) {
    %c0_i32 = arith.constant 0 : i32
    %c0_i32_0 = arith.constant 0 : i32
    %c0_i32_1 = arith.constant 0 : i32
    return %c0_i32, %c0_i32_0 : i32, i32
  }
  func.func @transform_4(%arg0: i32, %arg1: i32) -> (i32, i32) {
    %c0_i32 = arith.constant 0 : i32
    %c0_i32_0 = arith.constant 0 : i32
    return %arg1, %c0_i32 : i32, i32
  }
  func.func @transform_5(%arg0: i32, %arg1: i32) -> (i32, i32) {
    %c0_i32 = arith.constant 0 : i32
    %c0_i32_0 = arith.constant 0 : i32
    return %arg1, %c0_i32 : i32, i32
  }
  func.func @transform_6(%arg0: i32, %arg1: i32) -> (i32, i32, i32) {
    %c0_i32 = arith.constant 0 : i32
    %c0_i32_0 = arith.constant 0 : i32
    return %arg0, %arg1, %c0_i32 : i32, i32, i32
  }
}

</mosaic_0001>

<bundles_post_ra>
// kernel: tpu_custom_call.1
= control target key start
LH: loop header
LB: loop body
LE: loop exit
PB: predicated region body
PF: predicated region fallthrough
CT: control target
= control target key end

     0   :  { %s5997_s0 = inlined_call_operand.hbm [shape: bf16[2,512,128], index: 0, kind: input, shape index: {}]   ;;  %s5998_s1 = inlined_call_operand.hbm [shape: bf16[128,384], index: 1, kind: input, shape index: {}]   ;;  %s5999_s2 = inlined_call_operand.hbm [shape: f32[1,128], index: 2, kind: input, shape index: {}]   ;;  %s6000_s3 = inlined_call_operand.hbm [shape: f32[1,128], index: 3, kind: input, shape index: {}]   ;;  %s6001_s4 = inlined_call_operand.hbm [shape: bf16[512,128], index: 4, kind: input, shape index: {}]   ;;  %s6002_s5 = inlined_call_operand.hbm [shape: bf16[512,128], index: 5, kind: input, shape index: {}]   ;;  %s6003_s6 = inlined_call_operand.hbm [shape: bf16[2,512,384], index: 6, kind: output, shape index: {}]  }
   0x1   :  { %6060 = sst [smem:[#allocation56_spill]] %s5997_s0 }
   0x2   :  { %6061 = sst [smem:[#allocation57_spill]] %s5998_s1 }
   0x3   :  { %6062 = sst [smem:[#allocation58_spill]] %s5999_s2 }
   0x4   :  { %6063 = sst [smem:[#allocation59_spill]] %s6000_s3 }
   0x5   :  { %6064 = sst [smem:[#allocation60_spill]] %s6001_s4 }
   0x6   :  { %6065 = sst [smem:[#allocation61_spill]] %s6002_s5 }
   0x7   :  { %6066 = sst [smem:[#allocation62_spill]] %s6003_s6 }
   0x8   :  { %11 = vsyncpa [#allocation3], 0 }
   0x9   :  { %13 = vsyncpa [#allocation3 + $0x1], 0 }
   0xa   :  { %14 = vsyncpa [#allocation6], 0 }
   0xb   :  { %15 = vsyncpa [#allocation9], 0 }
   0xc   :  { %16 = vsyncpa [#allocation4], 0 }
   0xd   :  { %18 = vsyncpa [#allocation4 + $0x1], 0  ;;  %s4144_s21 = smov 0   ;;  %s4146_s22 = smov 0  }
   0xe   :  { %s4148_s23 = smov 0   ;;  %s4150_s24 = smov 0  }
   0xf   :  { %s4152_s25 = smov 0   ;;  %s4154_s26 = smov 0  }
  0x10   :  { %s4156_s27 = smov 0   ;;  %s4158_s28 = smov 0  }
  0x11   :  { %s4160_s29 = smov 0   ;;  %s4162_s30 = smov 0  }
  0x12   :  { %s4164_s7 = smov 0  }
  0x13 LB: > { %6067 = sst [smem:[#allocation18_spill]] %s4059_s23  ;;  %s33_s8 = sadd.s32 1, %s4083_s29  ;;  %s4091_s7 = sphi %s4164_s7, %s24_s7   ;;  %s4087_s30 = sphi %s4162_s30, %s6204_s30   ;;  %s4083_s29 = sphi %s4160_s29, %s6211_s29   ;;  %s4079_s28 = sphi %s4158_s28, %s6202_s28   ;;  %s4075_s27 = sphi %s4156_s27, %s6210_s27   ;;  %s4071_s26 = sphi %s4154_s26, %s6209_s26   ;;  %s4067_s25 = sphi %s4152_s25, %s6208_s25   ;;  %s4063_s24 = sphi %s4150_s24, %s6207_s24   ;;  %s4059_s23 = sphi %s4148_s23, %s6199_s23   ;;  %s4055_s22 = sphi %s4146_s22, %s6206_s22   ;;  %s4051_s21 = sphi %s4144_s21, %s6205_s21  }
  0x14   : > { %6068 = sst [smem:[#allocation19_spill]] %s4063_s24  ;;  %s36_s9 = sadd.s32 1, %s4087_s30 }
  0x15   : > { %6069 = sst [smem:[#allocation20_spill]] %s4071_s26  ;;  %p34_p0 = scmp.ge.s32.totalorder %s33_s8, 2 }
  0x16   : > { %6070 = sst [smem:[#allocation21_spill]] %s4075_s27  ;;  %s45_s10 = sadd.s32 1, %s4071_s26 }
  0x17   : > { %6071 = sst [smem:[#allocation22_spill]] %s4079_s28  ;;  %p52_p1 = scmp.ne.s32.totalorder %s4071_s26, %s4067_s25 }
  0x18   : > { %6072 = sst [smem:[#allocation23_spill]] %s4087_s30  ;;  %p6010_p2 = scmp.eq.s32.totalorder %s4091_s7, 0 }
  0x19   : > { %6073 = sst [smem:[#allocation24_spill]] %s4091_s7  ;;  %s6213_s8 = smov (%p34_p0, %s33_s8), 0 }
  0x1a   : > { %6074 = sst [smem:[#allocation25_spill]] %s6213_s8  ;;  %s6215_s9 = smov (!%p34_p0, %s36_s9), %s4087_s30 }
  0x1b   : > { %s4210_s11 = ssub.s32 %s4083_s29, %s6213_s8  ;;  %p4217_p3 = por %p6010_p2, %p52_p1 }
  0x1c   : > { %p38_p4 = scmp.ge.s32.totalorder %s6215_s9, 2  ;;  %p6009_p6 = scmp.lt.s32.totalorder %s4091_s7, 4 }
  0x1d   : > { %s260_s13 = sand.u32 1, %s4091_s7   ;;  %s262_s14 = sand.u32 1, %s4071_s26  }
  0x1e   : > { %s6217_s9 = smov (%p38_p4, %s6215_s9), 0  ;;  %s2965_s17 = sshll.u32 %s262_s14, 7 }
  0x1f   : > { %6076 = sst [smem:[#allocation26_spill]] %s6217_s9  ;;  %s40_s15 = ssub.s32 %s4087_s30, %s6217_s9 }
  0x20   : > { %s42_s16 = sor.u32 %s4210_s11, %s40_s15  ;;  %s2966_s18 = sshll.u32 %s4083_s29, 5 }
  0x21   : > { %p43_p7 = scmp.eq.s32.totalorder %s42_s16, 0  ;;  %s2967_s19 = sshll.u32 %s4087_s30, 6 }
  0x22   : > { %s270_s8 = sadd.s32 %s2967_s19, %s2966_s18  ;;  %s264_s6 = scalar_lea.vmem [#allocation2], %s2965_s17 }
  0x23   : > { %s4233_s20 = scalar_select %p43_p7, %s4071_s26, %s45_s10  }
  0x24   : > { %s273_s28 = sshll.u32 %s264_s6, 4  ;;  %s2968_s27 = sshll.u32 %s270_s8, 6  ;;  %s4235_s28 = int_to_ptr.vmem [resolvable:$true] %s273_s28 }
  0x25   : > { %6077 = sst [smem:[#allocation27_spill]] %s4233_s20  ;;  %s6078_s0 = sld [smem:[#allocation56_spill]] }
  0x26   : > { %p4246_p8 = pnand %p6009_p6, %p4217_p3  ;;  %s4250_s6 = scalar_lea.sflag [#allocation3], %s260_s13 }
  0x28   : > { %p3785_p10 = pneg %p4246_p8 }
  0x2b   : > { %s4240_s2 = scalar_lea.hbm %s6078_s0, %s2968_s27  ;;  %s3788_s27 = scalar_lea.hbm %s6078_s0, 8192 }
  0x2c   : > { %s3783_s8 = scalar_lea.hbm %s4240_s2, 2048  ;;  %p3789_p13 = scmp.lt.u32.totalorder %s4240_s2, %s6078_s0 }
  0x2d   : > { %p3784_p9 = scmp.ne.s32.totalorder %s4240_s2, %s3783_s8  ;;  %p3790_p0 = scmp.lt.u32.totalorder %s3788_s27, %s3783_s8 }
  0x2e   : > { %p3792_p4 = scmp.lt.u32.totalorder %s3783_s8, %s4240_s2 }
  0x2f   : > { %p3786_p11 = pnand %p3785_p10, %p3784_p9  ;;  %p3791_p3 = por %p3790_p0, %p3789_p13 }
  0x31   : > { %p3787_p12 = pneg %p3786_p11  ;;  %p3793_p7 = por %p3792_p4, %p3791_p3 }
  0x33   : > { %p3794_p6 = pnand %p3793_p7, %p3787_p12 }
  0x35   : > { %3797 = shalt.err (!%p3794_p6)
}
  0x36   : > { %s3798_s13 = scalar_lea.vmem %s4235_s28, 2048  ;;  %s4093_s15 = smov [#allocation2]  }
  0x37   : > { %p3799_p9 = scmp.ne.s32.totalorder %s4235_s28, %s3798_s13  ;;  %s3803_s16 = sshll.u32 %s4093_s15, 4  ;;  %s3804_s16 = int_to_ptr.vmem [resolvable:$false] %s3803_s16 }
  0x38   : > { %s3805_s17 = scalar_lea.vmem %s3804_s16, 4096  ;;  %p3806_p5 = scmp.lt.s32.totalorder %s4235_s28, %s3804_s16 }
  0x39   : > { %p3801_p11 = pnand %p3799_p9, %p3785_p10  ;;  %p3807_p13 = scmp.lt.s32.totalorder %s3805_s17, %s3798_s13 }
  0x3b   : > { %p3802_p2 = pneg %p3801_p11  ;;  %p3808_p0 = por %p3807_p13, %p3806_p5 }
  0x3d   : > { %p3809_p3 = pnand %p3808_p0, %p3802_p2 }
  0x3f   : > { %3812 = shalt.err (!%p3809_p3)
}
  0x40   : > { %s6011_s18 = smov 64   ;;  %s6013_s19 = smov 4  }
  0x41   : > { %3568 = dma.hbm_to_vmem [thread:$0]  (!%p4246_p8), %s4240_s2, 2048, %s4235_s28, %s4250_s6, %s6011_s18, %s6011_s18, %s6013_s19  }
  0x42   : > { %s4282_s8 = sadd.s32 4294967295, %s4091_s7   ;;  %s2959_s3 = sadd.s32 4294967294, %s4091_s7  }
  0x43   : > { %p58_p2 = scmp.ne.s32.totalorder %s4067_s25, %s4063_s24  ;;  %p6016_p5 = scmp.eq.s32.totalorder %s4282_s8, 0 }
  0x44   : > { %p147_p6 = scmp.ne.s32.totalorder %s4055_s22, %s4051_s21  ;;  %p199_p10 = scmp.eq.s32.totalorder %s4282_s8, 3 }
  0x45   : > { %p205_p12 = scmp.eq.s32.totalorder %s2959_s3, 3  ;;  %p4293_p8 = por %p6016_p5, %p58_p2 }
  0x46   : > { %p4299_p4 = por %p147_p6, %p6016_p5  ;;  %p4306_p7 = por %p199_p10, %p52_p1 }
  0x47   : > { %s6080_s2 = scalar_select %p4293_p8, 1, 0 }
  0x48   : > { %s6081_s28 = scalar_select %p4299_p4, 1, 0 }
  0x49   : > { %s6083_s10 = scalar_select %p4306_p7, 1, 0 }
  0x4a   : > { %6082 = sst [smem:[#allocation28_spill]] %s6081_s28  ;;  %p4310_p9 = por %p205_p12, %p58_p2 }
  0x4b   : > { %6084 = sst [smem:[#allocation29_spill]] %s6083_s10  ;;  %p2960_p11 = scmp.ge.s32.totalorder %s4091_s7, 1 }
  0x4c   : > { %s6085_s21 = scalar_select %p4310_p9, 1, 0 }
  0x4d   : > { %p212_p13 = scmp.lt.s32.totalorder %s4091_s7, 5  ;;  %s4096_s27 = smov [#allocation5]  }
  0x4e   : > { %6086 = sst [smem:[#allocation30_spill]] %s6085_s21  ;;  %s224_s12 = sshll.u32 %s4096_s27, 4  ;;  %s4320_s12 = int_to_ptr.vmem [resolvable:$true] %s224_s12 }
  0x4f   : > { %p4316_p0 = pnand %p2960_p11, %p212_p13  ;;  %s134_s15 = sadd.s32 1, %s4059_s23 }
  0x50   : > { %s285_s16 = sand.u32 1, %s4059_s23   ;;  %s6089_s1 = sld [smem:[#allocation57_spill]] }
  0x51   : > { %s6087_s5 = scalar_select %p4316_p0, 1, 0 }
  0x52   : > { %p3555_p1 = pneg %p4316_p0 }
  0x54   : > { %p4327_p3 = pnand %p3555_p1, %p6016_p5 }
  0x56   : > { %s6088_s13 = scalar_select %p4327_p3, 1, 0 }
  0x57   : > { %s3813_s18 = scalar_lea.hbm %s6089_s1, 3072  ;;  %p4343_p10 = pneg %p4327_p3 }
  0x58   : > { %p3814_p6 = scmp.ne.s32.totalorder %s6089_s1, %s3813_s18  ;;  %p3820_p13 = scmp.lt.u32.totalorder %s3813_s18, %s6089_s1 }
  0x5a   : > { %p3816_p12 = pnand %p4343_p10, %p3814_p6 }
  0x5c   : > { %p3817_p11 = pneg %p3816_p12 }
  0x5e   : > { %p3822_p1 = pnand %p3820_p13, %p3817_p11 }
  0x60   : > { %3825 = shalt.err (!%p3822_p1)
}
  0x61   : > { %s3826_s19 = scalar_lea.vmem %s4320_s12, 3072  ;;  %p3834_p7 = scmp.lt.s32.totalorder %s4320_s12, %s4320_s12 }
  0x62   : > { %p3827_p5 = scmp.ne.s32.totalorder %s4320_s12, %s3826_s19  ;;  %p3835_p4 = scmp.lt.s32.totalorder %s3826_s19, %s3826_s19 }
  0x64   : > { %p3829_p2 = pnand %p3827_p5, %p4343_p10  ;;  %p3836_p6 = por %p3835_p4, %p3834_p7 }
  0x66   : > { %p3830_p9 = pneg %p3829_p2 }
  0x68   : > { %p3837_p12 = pnand %p3836_p6, %p3830_p9 }
  0x6a   : > { %3840 = shalt.err (!%p3837_p12)
}
  0x6b   : > { %s4097_s17 = smov 192   ;;  %s4098_s0 = smov 12  }
  0x6c   : > { %3558 = dma.hbm_to_vmem [thread:$0]  (!%p4327_p3), %s6089_s1, 3072, %s4320_s12, [#allocation6], %s4097_s17, %s4097_s17, %s4098_s0  }
  0x6d   : > { %p6091_p5 = scmp.eq.s32.totalorder %s4210_s11, 0  ;;  %p6093_p4 = scmp.eq.s32.totalorder %s4091_s7, 0 }
  0x6e   : > { %p6094_p7 = scmp.ne.s32.totalorder %s4059_s23, %s4055_s22  ;;  %s4374_s27 = sshll.u32 %s285_s16, 7 }
  0x6f   : > { %s4367_s3 = scalar_select %p6091_p5, %s4059_s23, %s134_s15  }
  0x70   : > { %p143_p9 = por %p6094_p7, %p6093_p4  ;;  %s6095_s19 = sshll.u32 %s4083_s29, 11 }
  0x71   : > { %6092 = sst [smem:[#allocation31_spill]] %s4367_s3  ;;  %s6096_s4 = sld [smem:[#allocation60_spill]] }
  0x72   : > { %s287_s12 = scalar_lea.vmem [#allocation10], %s4374_s27  ;;  %p6097_p2 = scmp.lt.s32.totalorder %s4091_s7, 4 }
  0x73   : > { %s294_s11 = sshll.u32 %s287_s12, 4  ;;  %s4099_s16 = smov [#allocation7]   ;;  %s4390_s11 = int_to_ptr.vmem [resolvable:$true] %s294_s11 }
  0x74   : > { %p4386_p11 = pnand %p6097_p2, %p143_p9  ;;  %s4392_s30 = sshll.u32 %s4099_s16, 4  ;;  %s239_s30 = int_to_ptr.vmem [resolvable:$true] %s4392_s30 }
  0x76   : > { %s6098_s15 = scalar_select %p4386_p11, 1, 0 }
  0x77   : > { %s4381_s26 = scalar_lea.hbm %s6096_s4, %s6095_s19  ;;  %p6025_p1 = pneg %p4386_p11 }
  0x78   : > { %s3841_s20 = scalar_lea.hbm %s4381_s26, 2048  ;;  %s3846_s9 = scalar_lea.hbm %s6096_s4, 4096 }
  0x79   : > { %p3842_p13 = scmp.ne.s32.totalorder %s4381_s26, %s3841_s20  ;;  %p3847_p5 = scmp.lt.u32.totalorder %s4381_s26, %s6096_s4 }
  0x7a   : > { %p3848_p4 = scmp.lt.u32.totalorder %s3846_s9, %s3841_s20  ;;  %p3850_p9 = scmp.lt.u32.totalorder %s3841_s20, %s4381_s26 }
  0x7b   : > { %p3844_p6 = pnand %p6025_p1, %p3842_p13 }
  0x7c   : > { %p3849_p7 = por %p3848_p4, %p3847_p5 }
  0x7d   : > { %p3845_p12 = pneg %p3844_p6 }
  0x7e   : > { %p3851_p2 = por %p3850_p9, %p3849_p7 }
  0x80   : > { %p3852_p8 = pnand %p3851_p2, %p3845_p12 }
  0x82   : > { %3855 = shalt.err (!%p3852_p8)
}
  0x83   : > { %s3856_s12 = scalar_lea.vmem %s4390_s11, 2048  ;;  %s4100_s16 = smov [#allocation10]  }
  0x84   : > { %p3857_p13 = scmp.ne.s32.totalorder %s4390_s11, %s3856_s12  ;;  %s3861_s17 = sshll.u32 %s4100_s16, 4  ;;  %s3862_s17 = int_to_ptr.vmem [resolvable:$false] %s3861_s17 }
  0x85   : > { %s3863_s0 = scalar_lea.vmem %s3862_s17, 4096  ;;  %p3864_p3 = scmp.lt.s32.totalorder %s4390_s11, %s3862_s17 }
  0x86   : > { %p3859_p6 = pnand %p3857_p13, %p6025_p1  ;;  %p3865_p5 = scmp.lt.s32.totalorder %s3863_s0, %s3856_s12 }
  0x88   : > { %p3860_p0 = pneg %p3859_p6  ;;  %p3866_p4 = por %p3865_p5, %p3864_p3 }
  0x8a   : > { %p3867_p7 = pnand %p3866_p4, %p3860_p0 }
  0x8c   : > { %3870 = shalt.err (!%p3867_p7)
}
  0x8d   : > { %s6099_s20 = smov 4   ;;  %s6100_s9 = smov 64  }
  0x8e   : > { %3571 = dma.hbm_to_vmem [thread:$0]  (!%p4386_p11), %s4381_s26, 2048, %s4390_s11, %s4250_s6, %s6100_s9, %s6100_s9, %s6099_s20  }
  0x8f   : > { %s6101_s16 = sld [smem:[#allocation58_spill]] }
  0x95   : > { %s3871_s17 = scalar_lea.hbm %s6101_s16, 16 }
  0x96   : > { %p3872_p8 = scmp.ne.s32.totalorder %s6101_s16, %s3871_s17  ;;  %p3878_p12 = scmp.lt.u32.totalorder %s3871_s17, %s6101_s16 }
  0x98   : > { %p3874_p0 = pnand %p3872_p8, %p4343_p10 }
  0x9a   : > { %p3875_p3 = pneg %p3874_p0 }
  0x9c   : > { %p3880_p9 = pnand %p3878_p12, %p3875_p3 }
  0x9e   : > { %3883 = shalt.err (!%p3880_p9)
}
  0x9f   : > { %s3884_s3 = scalar_lea.vmem %s239_s30, 16  ;;  %s3891_s26 = scalar_lea.vmem %s239_s30, 32 }
  0xa0   : > { %p3885_p2 = scmp.ne.s32.totalorder %s239_s30, %s3884_s3  ;;  %p3892_p5 = scmp.lt.s32.totalorder %s239_s30, %s239_s30 }
  0xa1   : > { %p3893_p4 = scmp.lt.s32.totalorder %s3891_s26, %s3884_s3 }
  0xa2   : > { %p3887_p13 = pnand %p3885_p2, %p4343_p10 }
  0xa3   : > { %p3894_p7 = por %p3893_p4, %p3892_p5 }
  0xa4   : > { %p3888_p6 = pneg %p3887_p13 }
  0xa6   : > { %p3895_p1 = pnand %p3894_p7, %p3888_p6 }
  0xa8   : > { %3898 = shalt.err (!%p3895_p1)
}
  0xa9   : > { %p6102_p8 = scmp.ne.s32.totalorder %s6088_s13, 0  ;;  %s4101_s1 = smov [#allocation8]  }
  0xaa   : > { %s249_s4 = sshll.u32 %s4101_s1, 4  ;;  %s6103_s19 = sshll.u32 %s4083_s29, 11  ;;  %s250_s4 = int_to_ptr.vmem [resolvable:$true] %s249_s4 }
  0xab   : > { %3561 = dma.hbm_to_vmem [thread:$0]  (!%p6102_p8), %s6101_s16, 16, %s239_s30, [#allocation6]  }
  0xac   : > { %s6104_s0 = sld [smem:[#allocation61_spill]]  ;;  %s6105_s21 = sld [smem:[#allocation59_spill]] }
  0xb2   : > { %s4447_s23 = scalar_lea.hbm %s6104_s0, %s6103_s19  ;;  %s6106_s10 = smov %s6105_s21 }
  0xb3   : > { %s3899_s24 = scalar_lea.hbm %s6105_s21, 16 }
  0xb4   : > { %p3900_p1 = scmp.ne.s32.totalorder %s6106_s10, %s3899_s24  ;;  %p3906_p12 = scmp.lt.u32.totalorder %s3899_s24, %s6106_s10 }
  0xb6   : > { %p3902_p0 = pnand %p3900_p1, %p4343_p10 }
  0xb8   : > { %p3903_p3 = pneg %p3902_p0 }
  0xba   : > { %p3908_p9 = pnand %p3906_p12, %p3903_p3 }
  0xbc   : > { %3911 = shalt.err (!%p3908_p9)
}
  0xbd   : > { %s3912_s18 = scalar_lea.vmem %s250_s4, 16  ;;  %s3919_s21 = scalar_lea.vmem %s250_s4, 32 }
  0xbe   : > { %p3913_p2 = scmp.ne.s32.totalorder %s250_s4, %s3912_s18  ;;  %p3920_p5 = scmp.lt.s32.totalorder %s250_s4, %s250_s4 }
  0xbf   : > { %p3921_p4 = scmp.lt.s32.totalorder %s3919_s21, %s3912_s18 }
  0xc0   : > { %p3915_p13 = pnand %p3913_p2, %p4343_p10 }
  0xc1   : > { %p3922_p7 = por %p3921_p4, %p3920_p5 }
  0xc2   : > { %p3916_p6 = pneg %p3915_p13 }
  0xc4   : > { %p3923_p11 = pnand %p3922_p7, %p3916_p6 }
  0xc6   : > { %3926 = shalt.err (!%p3923_p11)
}
  0xc7   : > { %3564 = dma.hbm_to_vmem [thread:$0]  (!%p6102_p8), %s6106_s10, 16, %s250_s4, [#allocation9]  }
  0xc8   : > { %s308_s24 = scalar_lea.vmem [#allocation11], %s4374_s27  ;;  %s3927_s1 = scalar_lea.hbm %s4447_s23, 2048 }
  0xc9   : > { %s315_s14 = sshll.u32 %s308_s24, 4  ;;  %p3928_p10 = scmp.ne.s32.totalorder %s4447_s23, %s3927_s1  ;;  %s4468_s14 = int_to_ptr.vmem [resolvable:$true] %s315_s14 }
  0xca   : > { %p6107_p1 = scmp.ne.s32.totalorder %s6098_s15, 0  ;;  %s3932_s17 = scalar_lea.hbm %s6104_s0, 4096 }
  0xcb   : > { %p3933_p12 = scmp.lt.u32.totalorder %s4447_s23, %s6104_s0  ;;  %p3934_p9 = scmp.lt.u32.totalorder %s3932_s17, %s3927_s1 }
  0xcc   : > { %p6108_p11 = pneg %p6107_p1  ;;  %p3936_p2 = scmp.lt.u32.totalorder %s3927_s1, %s4447_s23 }
  0xcd   : > { %p3935_p8 = por %p3934_p9, %p3933_p12 }
  0xce   : > { %p3930_p0 = pnand %p3928_p10, %p6108_p11 }
  0xcf   : > { %p3937_p13 = por %p3936_p2, %p3935_p8 }
  0xd0   : > { %p3931_p3 = pneg %p3930_p0 }
  0xd2   : > { %p3938_p6 = pnand %p3937_p13, %p3931_p3 }
  0xd4   : > { %3941 = shalt.err (!%p3938_p6)
}
  0xd5   : > { %s3942_s27 = scalar_lea.vmem %s4468_s14, 2048  ;;  %p6109_p4 = pmov %p6108_p11 }
  0xd6   : > { %p3943_p5 = scmp.ne.s32.totalorder %s4468_s14, %s3942_s27  ;;  %s4102_s4 = smov [#allocation11]  }
  0xd7   : > { %s3947_s26 = sshll.u32 %s4102_s4, 4  ;;  %s3948_s26 = int_to_ptr.vmem [resolvable:$false] %s3947_s26 }
  0xd8   : > { %p3945_p7 = pnand %p3943_p5, %p6109_p4  ;;  %s3949_s30 = scalar_lea.vmem %s3948_s26, 4096 }
  0xd9   : > { %p3950_p11 = scmp.lt.s32.totalorder %s4468_s14, %s3948_s26  ;;  %p3951_p0 = scmp.lt.s32.totalorder %s3949_s30, %s3942_s27 }
  0xda   : > { %p3946_p10 = pneg %p3945_p7 }
  0xdb   : > { %p3952_p12 = por %p3951_p0, %p3950_p11 }
  0xdd   : > { %p3953_p9 = pnand %p3952_p12, %p3946_p10 }
  0xdf   : > { %3956 = shalt.err (!%p3953_p9)
}
  0xe0   : > { %3574 = dma.hbm_to_vmem [thread:$0]  (!%p6107_p1), %s4447_s23, 2048, %s4468_s14, %s4250_s6, %s6100_s9, %s6100_s9, %s6099_s20  }
  0xe1   : > { %p6110_p3 = scmp.ne.s32.totalorder %s6087_s5, 0 }
  0xe3   : > { %327 = sbr.rel (%p6110_p3) target bundleno = 1237 (0x4d5), region = 44 }
  0xea   : > { %s329_s11 = sand.u32 1, %s4282_s8   ;;  %s4501_s18 = sand.u32 1, %s4067_s25  }
  0xeb   : > { %s2976_s21 = sshll.u32 %s4501_s18, 7  ;;  %s330_s7 = scalar_lea.sflag [#allocation3], %s329_s11 }
  0xec   : > { %s4504_s15 = scalar_lea.vmem [#allocation2], %s2976_s21  ;;  %p6111_p8 = scmp.ne.s32.totalorder %s6080_s2, 0 }
  0xee   : > { %4030 = dma.done.wait (%p6111_p8), %s330_s7, 2048  }
  0xef   : > { %4032 = vsyncadd (%p6111_p8), %s330_s7, 4294965248  ;;  %p6112_p1 = scmp.eq.s32.totalorder %s4282_s8, 0 }
  0xf1   : > { %4034 = dma.done.wait (%p6112_p1), [#allocation6], 3088   ;;  %p6113_p2 = pmov %p6112_p1 }
  0xf2   : > { %p6114_p13 = pmov %p6112_p1 }
  0xf3   : > { %4036 = vsyncadd (%p6113_p2), [#allocation6], 4294964208 }
  0xf4   : > { %4038 = dma.done.wait (%p6114_p13), [#allocation9], 16   ;;  %p6115_p6 = pmov %p6112_p1 }
  0xf5   : > { %s6116_s23 = sld [smem:[#allocation28_spill]]  ;;  %s352_s6 = sand.u32 1, %s4055_s22  }
  0xf6   : > { %4040 = vsyncadd (%p6115_p6), [#allocation9], 4294967280  ;;  %s4519_s5 = sshll.u32 %s352_s6, 7 }
  0xf7   : > { %s4522_s2 = scalar_lea.vmem [#allocation10], %s4519_s5 }
  0xfb   : > { %p6117_p5 = scmp.ne.s32.totalorder %s6116_s23, 0 }
  0xfd   : > { %4042 = dma.done.wait (%p6117_p5), %s330_s7, 4096  }
  0xfe   : > { %4044 = vsyncadd (%p6117_p5), %s330_s7, 4294963200  ;;  %v4529_v0 = vld [vmem:[%s4504_s15] sm:$0xff]   ;;  %v4532_v1 = vld [vmem:[%s4504_s15 + $0x8] sm:$0xff]   ;;  %s4104_s8 = smov 112   ;;  %s4105_s20 = smov 16  }
  0xff   : > { %v3209_v2 = vunpack.c.l.bf16 %v4529_v0  ;;  %v3213_v3 = vunpack.c.l.bf16 %v4532_v1  ;;  %v3210_v4 = vunpack.c.h.bf16 %v4529_v0  ;;  %v3214_v5 = vunpack.c.h.bf16 %v4532_v1  ;;  %v4543_v6 = vld [vmem:[%s4504_s15 + $0x10] sm:$0xff]   ;;  %v4546_v7 = vld [vmem:[%s4504_s15 + $0x18] sm:$0xff]   ;;  %v4555_v10 = vld [vmem:[%s4504_s15 + $0x20] sm:$0xff]   ;;  %s5266_s9 = scalar_lea.vmem [#allocation11], %s4519_s5  ;;  %s3532_s28 = smul.u32 384, %s4501_s18 }
 0x100   : > { %v3217_v8 = vunpack.c.l.bf16 %v4543_v6  ;;  %v3218_v9 = vunpack.c.h.bf16 %v4543_v6  ;;  %v3221_v11 = vunpack.c.l.bf16 %v4546_v7  ;;  %v3222_v12 = vunpack.c.h.bf16 %v4546_v7  ;;  %v4570_v15 = vld [vmem:[%s4504_s15 + $0x28] sm:$0xff]   ;;  %v4579_v18 = vld [vmem:[%s4504_s15 + $0x30] sm:$0xff]   ;;  %v4588_v21 = vld [vmem:[%s4504_s15 + $0x38] sm:$0xff]   ;;  %s6186_s14 = sld [smem:[#allocation21_spill]]  ;;  %s6187_s1 = sld [smem:[#allocation22_spill]] }
 0x101   : > { %473 = vadd.xlane.f32.xlu0 %v3209_v2  ;;  %477 = vadd.xlane.f32.xlu1 %v3213_v3  ;;  %v3225_v13 = vunpack.c.l.bf16 %v4555_v10  ;;  %v3226_v14 = vunpack.c.h.bf16 %v4555_v10  ;;  %v3229_v16 = vunpack.c.l.bf16 %v4570_v15  ;;  %v3230_v17 = vunpack.c.h.bf16 %v4570_v15  ;;  %v4597_v24 = vld [vmem:[%s4504_s15 + $0x40] sm:$0xff]   ;;  %v4615_v30 = vld [vmem:[%s4504_s15 + $0x48] sm:$0xff]   ;;  %v4633_v36 = vld [vmem:[%s4504_s15 + $0x50] sm:$0xff]   ;;  %s5347_s24 = scalar_lea.vmem [#allocation12], %s3532_s28  ;;  %s6189_s12 = sld [smem:[#allocation29_spill]] }
 0x102   : > { %v3233_v19 = vunpack.c.l.bf16 %v4579_v18  ;;  %v3234_v20 = vunpack.c.h.bf16 %v4579_v18  ;;  %v3237_v22 = vunpack.c.l.bf16 %v4588_v21  ;;  %v3238_v23 = vunpack.c.h.bf16 %v4588_v21  ;;  %v4606_v27 = vld [vmem:[%s4504_s15 + $0x60] sm:$0xff]   ;;  %v4624_v33 = vld [vmem:[%s4504_s15 + $0x68] sm:$0xff]   ;;  %v4642_v39 = vld [vmem:[%s4504_s15 + $0x70] sm:$0xff]   ;;  %s2799_s3 = sshll.u32 %s5347_s24, 4  ;;  %s6191_s30 = sld [smem:[#allocation62_spill]]  ;;  %s5927_s3 = int_to_ptr.vmem [resolvable:$true] %s2799_s3 }
 0x103   : > { %v3241_v25 = vunpack.c.l.bf16 %v4597_v24  ;;  %v3242_v26 = vunpack.c.h.bf16 %v4597_v24  ;;  %v3257_v28 = vunpack.c.l.bf16 %v4606_v27  ;;  %v3258_v29 = vunpack.c.h.bf16 %v4606_v27  ;;  %v3687_v42 = vld [vmem:[#allocation5 + $0x4] ss:$12 sps:$4 sm:$0xff]   ;;  %v3689_v43 = vld [vmem:[#allocation5] ss:$12 sps:$4 sm:$0xff]   ;;  %v3690_v44 = vld [vmem:[#allocation5 + $0x1c] ss:$12 sps:$4 sm:$0xff]  }
 0x104   : > { %v3245_v31 = vunpack.c.l.bf16 %v4615_v30  ;;  %v3246_v32 = vunpack.c.h.bf16 %v4615_v30  ;;  %v3261_v34 = vunpack.c.l.bf16 %v4624_v33  ;;  %v3262_v35 = vunpack.c.h.bf16 %v4624_v33  ;;  %1078 = vmatprep.subr.bf16.mxu0 %v3687_v42  ;;  %3516 = vmatprep.subr.bf16.mxu1 %v3687_v42  ;;  %v4659_v51 = vld [vmem:[%s4504_s15 + $0x58] sm:$0xff]   ;;  %s2783_s7 = scalar_lea.sflag [#allocation4], %s4501_s18  ;;  %s4106_s23 = smov [#allocation12]  }
 0x105   : > { %475 = vadd.xlane.f32.xlu0 %v3210_v4  ;;  %479 = vadd.xlane.f32.xlu1 %v3214_v5  ;;  %v3249_v37 = vunpack.c.l.bf16 %v4633_v36  ;;  %v3250_v38 = vunpack.c.h.bf16 %v4633_v36  ;;  %v3265_v40 = vunpack.c.l.bf16 %v4642_v39  ;;  %v3266_v41 = vunpack.c.h.bf16 %v4642_v39  ;;  %s3961_s6 = sshll.u32 %s4106_s23, 4  ;;  %s3962_s6 = int_to_ptr.vmem [resolvable:$false] %s3961_s6 }
 0x106   : > { %1079 = vmatpush1.bf16.msra.mxu0 %v3689_v43  ;;  %3524 = vmatpush1.bf16.msra.mxu1 %v3689_v43  ;;  %v3253_v55 = vunpack.c.l.bf16 %v4659_v51  ;;  %v3254_v63 = vunpack.c.h.bf16 %v4659_v51  ;;  %s3533_s13 = smul.u32 96, %s6186_s14  ;;  %s3963_s5 = scalar_lea.vmem %s3962_s6, 12288 }
 0x107   : > { %1080 = vmatprep.subr.bf16.mxu0 %v3690_v44  ;;  %3517 = vmatprep.subr.bf16.mxu1 %v3690_v44  ;;  %s3534_s19 = smul.u32 192, %s6187_s1  ;;  %p6193_p7 = scmp.ne.s32.totalorder %s6189_s12, 0 }
 0x108   : > { %s6192_s11 = smov %s6191_s30  ;;  %p3964_p0 = scmp.lt.s32.totalorder %s5927_s3, %s3962_s6 }
 0x109   : > { %481 = vadd.xlane.f32.xlu0 %v3217_v8  ;;  %483 = vadd.xlane.f32.xlu1 %v3218_v9  ;;  %s2796_s17 = sadd.s32 %s3534_s19, %s3533_s13 }
 0x10a   : > { %s3106_s27 = sshll.u32 %s2796_s17, 6 }
 0x10b   : > { %s5933_s21 = scalar_lea.hbm %s6191_s30, %s3106_s27 }
 0x10d   : > { %485 = vadd.xlane.f32.xlu0 %v3221_v11  ;;  %487 = vadd.xlane.f32.xlu1 %v3222_v12 }
 0x111   : > { %489 = vadd.xlane.f32.xlu0 %v3225_v13  ;;  %491 = vadd.xlane.f32.xlu1 %v3226_v14 }
 0x115   : > { %493 = vadd.xlane.f32.xlu0 %v3229_v16  ;;  %495 = vadd.xlane.f32.xlu1 %v3230_v17 }
 0x119   : > { %497 = vadd.xlane.f32.xlu0 %v3233_v19  ;;  %499 = vadd.xlane.f32.xlu1 %v3234_v20 }
 0x11d   : > { %501 = vadd.xlane.f32.xlu0 %v3237_v22  ;;  %503 = vadd.xlane.f32.xlu1 %v3238_v23 }
 0x121   : > { %505 = vadd.xlane.f32.xlu0 %v3241_v25  ;;  %507 = vadd.xlane.f32.xlu1 %v3242_v26 }
 0x125   : > { %521 = vadd.xlane.f32.xlu0 %v3257_v28  ;;  %523 = vadd.xlane.f32.xlu1 %v3258_v29 }
 0x129   : > { %509 = vadd.xlane.f32.xlu0 %v3245_v31  ;;  %511 = vadd.xlane.f32.xlu1 %v3246_v32 }
 0x12d   : > { %525 = vadd.xlane.f32.xlu0 %v3261_v34  ;;  %527 = vadd.xlane.f32.xlu1 %v3262_v35 }
 0x131   : > { %513 = vadd.xlane.f32.xlu0 %v3249_v37  ;;  %515 = vadd.xlane.f32.xlu1 %v3250_v38 }
 0x135   : > { %529 = vadd.xlane.f32.xlu0 %v3265_v40  ;;  %531 = vadd.xlane.f32.xlu1 %v3266_v41 }
 0x18e   : > { %v474_v45 = vpop.xlane.xlu0 %473  ;;  %v478_v46 = vpop.xlane.xlu1 %477 }
 0x18f   : > { %v538_v47 = vmul.f32 0.0078125, %v474_v45  ;;  %v540_v49 = vmul.f32 0.0078125, %v478_v46 }
 0x191   : > { %v4656_v48 = vsub.f32 %v3209_v2, %v538_v47  ;;  %v4670_v58 = vsub.f32 %v3213_v3, %v540_v49  ;;  %v4684_v3 = vld [vmem:[%s4504_s15 + $0x78] sm:$0xff]   ;;  %s3957_s15 = scalar_lea.vmem %s5927_s3, 6144 }
 0x192   : > { %v476_v50 = vpop.xlane.xlu0 %475  ;;  %v480_v52 = vpop.xlane.xlu1 %479  ;;  %v3269_v44 = vunpack.c.l.bf16 %v4684_v3  ;;  %p3958_p4 = scmp.ne.s32.totalorder %s5927_s3, %s3957_s15  ;;  %p3965_p12 = scmp.lt.s32.totalorder %s3963_s5, %s3957_s15 }
 0x193   : > { %v539_v53 = vmul.f32 0.0078125, %v476_v50  ;;  %v602_v54 = vmul.f32 %v4656_v48, %v4656_v48  ;;  %v541_v57 = vmul.f32 0.0078125, %v480_v52  ;;  %v604_v62 = vmul.f32 %v4670_v58, %v4670_v58 }
 0x194   : > { %v3270_v52 = vunpack.c.h.bf16 %v4684_v3  ;;  %p3959_p10 = pnand %p3958_p4, %p6193_p7  ;;  %p3966_p9 = por %p3965_p12, %p3964_p0 }
 0x195   : > { %634 = vadd.xlane.f32.xlu0 %v602_v54  ;;  %v4666_v56 = vsub.f32 %v3210_v4, %v539_v53  ;;  %v4681_v2 = vsub.f32 %v3214_v5, %v541_v57  ;;  %v3692_v57 = vld [vmem:[#allocation5 + $0x18] ss:$12 sps:$4 sm:$0xff]  }
 0x196   : > { %v482_v59 = vpop.xlane.xlu0 %481  ;;  %v484_v60 = vpop.xlane.xlu1 %483  ;;  %1081 = vmatpush1.bf16.msra.mxu0 %v3692_v57  ;;  %3525 = vmatpush1.bf16.msra.mxu1 %v3692_v57  ;;  %p3960_p11 = pneg %p3959_p10 }
 0x197   : > { %v603_v61 = vmul.f32 %v4666_v56, %v4666_v56  ;;  %v542_v0 = vmul.f32 0.0078125, %v482_v59  ;;  %v543_v43 = vmul.f32 0.0078125, %v484_v60  ;;  %v605_v45 = vmul.f32 %v4681_v2, %v4681_v2 }
 0x198   : > { %p3967_p3 = pnand %p3966_p9, %p3960_p11 }
 0x199   : > { %517 = vadd.xlane.f32.xlu0 %v3253_v55  ;;  %636 = vadd.xlane.f32.xlu1 %v603_v61  ;;  %v4693_v1 = vsub.f32 %v3217_v8, %v542_v0  ;;  %v4697_v50 = vsub.f32 %v3218_v9, %v543_v43  ;;  %v3693_v61 = vld [vmem:[#allocation5 + $0x34] ss:$12 sps:$4 sm:$0xff]  }
 0x19a   : > { %v486_v4 = vpop.xlane.xlu0 %485  ;;  %v488_v42 = vpop.xlane.xlu1 %487  ;;  %1082 = vmatprep.subr.bf16.mxu0 %v3693_v61  ;;  %3518 = vmatprep.subr.bf16.mxu1 %v3693_v61 }
 0x19b   : > { %v544_v46 = vmul.f32 0.0078125, %v486_v4  ;;  %v545_v49 = vmul.f32 0.0078125, %v488_v42  ;;  %v606_v53 = vmul.f32 %v4693_v1, %v4693_v1  ;;  %v607_v6 = vmul.f32 %v4697_v50, %v4697_v50  ;;  %v3695_v42 = vld [vmem:[#allocation5 + $0x30] ss:$12 sps:$4 sm:$0xff]  }
 0x19c   : > { %1083 = vmatpush1.bf16.msra.mxu0 %v3695_v42  ;;  %3526 = vmatpush1.bf16.msra.mxu1 %v3695_v42  ;;  %v3702_v42 = vld [vmem:[#allocation5 + $0x7c] ss:$12 sps:$4 sm:$0xff]  }
 0x19d   : > { %638 = vadd.xlane.f32.xlu0 %v604_v62  ;;  %519 = vadd.xlane.f32.xlu1 %v3254_v63  ;;  %v4706_v8 = vsub.f32 %v3221_v11, %v544_v46  ;;  %v4712_v9 = vsub.f32 %v3222_v12, %v545_v49  ;;  %v3696_v46 = vld [vmem:[#allocation5 + $0x4c] ss:$12 sps:$4 sm:$0xff]  }
 0x19e   : > { %v490_v5 = vpop.xlane.xlu0 %489  ;;  %v492_v47 = vpop.xlane.xlu1 %491  ;;  %1084 = vmatprep.subr.bf16.mxu0 %v3696_v46  ;;  %3519 = vmatprep.subr.bf16.mxu1 %v3696_v46 }
 0x19f   : > { %v546_v54 = vmul.f32 0.0078125, %v490_v5  ;;  %v608_v11 = vmul.f32 %v4706_v8, %v4706_v8  ;;  %v547_v62 = vmul.f32 0.0078125, %v492_v47  ;;  %v609_v7 = vmul.f32 %v4712_v9, %v4712_v9 }
 0x1a1   : > { %533 = vadd.xlane.f32.xlu0 %v3269_v44  ;;  %640 = vadd.xlane.f32.xlu1 %v605_v45  ;;  %v4720_v4 = vsub.f32 %v3225_v13, %v546_v54  ;;  %v4728_v13 = vsub.f32 %v3226_v14, %v547_v62 }
 0x1a2   : > { %v494_v59 = vpop.xlane.xlu0 %493  ;;  %v496_v60 = vpop.xlane.xlu1 %495 }
 0x1a3   : > { %v548_v0 = vmul.f32 0.0078125, %v494_v59  ;;  %v549_v12 = vmul.f32 0.0078125, %v496_v60  ;;  %v610_v5 = vmul.f32 %v4720_v4, %v4720_v4  ;;  %v611_v10 = vmul.f32 %v4728_v13, %v4728_v13 }
 0x1a5   : > { %535 = vadd.xlane.f32.xlu1 %v3270_v52  ;;  %642 = vadd.xlane.f32.xlu0 %v606_v53  ;;  %v4732_v49 = vsub.f32 %v3229_v16, %v548_v0  ;;  %v3698_v53 = vld [vmem:[#allocation5 + $0x48] ss:$12 sps:$4 sm:$0xff]   ;;  %v4736_v60 = vsub.f32 %v3230_v17, %v549_v12  ;;  %v3704_v12 = vld [vmem:[#allocation5 + $0x78] ss:$12 sps:$4 sm:$0xff]  }
 0x1a6   : > { %v498_v43 = vpop.xlane.xlu0 %497  ;;  %v500_v45 = vpop.xlane.xlu1 %499  ;;  %1085 = vmatpush1.bf16.msra.mxu0 %v3698_v53  ;;  %3527 = vmatpush1.bf16.msra.mxu1 %v3698_v53 }
 0x1a7   : > { %v550_v47 = vmul.f32 0.0078125, %v498_v43  ;;  %v551_v59 = vmul.f32 0.0078125, %v500_v45  ;;  %v612_v14 = vmul.f32 %v4732_v49, %v4732_v49  ;;  %v613_v15 = vmul.f32 %v4736_v60, %v4736_v60 }
 0x1a9   : > { %644 = vadd.xlane.f32.xlu1 %v607_v6  ;;  %646 = vadd.xlane.f32.xlu0 %v608_v11  ;;  %v3699_v6 = vld [vmem:[#allocation5 + $0x64] ss:$12 sps:$4 sm:$0xff]   ;;  %v4744_v61 = vsub.f32 %v3233_v19, %v550_v47  ;;  %v3701_v11 = vld [vmem:[#allocation5 + $0x60] ss:$12 sps:$4 sm:$0xff]   ;;  %v4750_v17 = vsub.f32 %v3234_v20, %v551_v59 }
 0x1aa   : > { %v502_v54 = vpop.xlane.xlu0 %501  ;;  %v504_v57 = vpop.xlane.xlu1 %503  ;;  %1086 = vmatprep.subr.bf16.mxu0 %v3699_v6  ;;  %3520 = vmatprep.subr.bf16.mxu1 %v3699_v6  ;;  %v3705_v47 = vld [vmem:[#allocation5 + $0x94] ss:$12 sps:$4 sm:$0xff]  }
 0x1ab   : > { %v552_v16 = vmul.f32 0.0078125, %v502_v54  ;;  %1087 = vmatpush1.bf16.msra.mxu0 %v3701_v11  ;;  %3528 = vmatpush1.bf16.msra.mxu1 %v3701_v11  ;;  %v614_v19 = vmul.f32 %v4744_v61, %v4744_v61  ;;  %v553_v43 = vmul.f32 0.0078125, %v504_v57  ;;  %v615_v18 = vmul.f32 %v4750_v17, %v4750_v17 }
 0x1ac   : > { %1088 = vmatprep.subr.bf16.mxu0 %v3702_v42  ;;  %3521 = vmatprep.subr.bf16.mxu1 %v3702_v42 }
 0x1ad   : > { %648 = vadd.xlane.f32.xlu1 %v609_v7  ;;  %650 = vadd.xlane.f32.xlu0 %v610_v5  ;;  %v4756_v7 = vsub.f32 %v3237_v22, %v552_v16  ;;  %v4764_v22 = vsub.f32 %v3238_v23, %v553_v43 }
 0x1ae   : > { %v506_v62 = vpop.xlane.xlu0 %505  ;;  %v508_v0 = vpop.xlane.xlu1 %507 }
 0x1af   : > { %v554_v45 = vmul.f32 0.0078125, %v506_v62  ;;  %1089 = vmatpush1.bf16.msra.mxu0 %v3704_v12  ;;  %3529 = vmatpush1.bf16.msra.mxu1 %v3704_v12  ;;  %v555_v20 = vmul.f32 0.0078125, %v508_v0  ;;  %v616_v53 = vmul.f32 %v4756_v7, %v4756_v7  ;;  %v617_v21 = vmul.f32 %v4764_v22, %v4764_v22  ;;  %v3708_v62 = vld [vmem:[#allocation5 + $0xac] ss:$12 sps:$4 sm:$0xff]  }
 0x1b0   : > { %1090 = vmatprep.subr.bf16.mxu0 %v3705_v47  ;;  %3522 = vmatprep.subr.bf16.mxu1 %v3705_v47 }
 0x1b1   : > { %652 = vadd.xlane.f32.xlu1 %v611_v10  ;;  %654 = vadd.xlane.f32.xlu0 %v612_v14  ;;  %v4768_v57 = vsub.f32 %v3241_v25, %v554_v45  ;;  %v3707_v10 = vld [vmem:[#allocation5 + $0x90] ss:$12 sps:$4 sm:$0xff]   ;;  %v4772_v16 = vsub.f32 %v3242_v26, %v555_v20  ;;  %v3710_v26 = vld [vmem:[#allocation5 + $0xa8] ss:$12 sps:$4 sm:$0xff]  }
 0x1b2   : > { %v522_v46 = vpop.xlane.xlu0 %521  ;;  %v524_v5 = vpop.xlane.xlu1 %523 }
 0x1b3   : > { %v562_v54 = vmul.f32 0.0078125, %v522_v46  ;;  %v563_v14 = vmul.f32 0.0078125, %v524_v5  ;;  %1091 = vmatpush1.bf16.msra.mxu0 %v3707_v10  ;;  %3530 = vmatpush1.bf16.msra.mxu1 %v3707_v10  ;;  %v618_v23 = vmul.f32 %v4768_v57, %v4768_v57  ;;  %v4103_v46 = vmov 0  }
 0x1b4   : > { %1092 = vmatprep.subr.bf16.mxu0 %v3708_v62  ;;  %3523 = vmatprep.subr.bf16.mxu1 %v3708_v62 }
 0x1b5   : > { %656 = vadd.xlane.f32.xlu1 %v613_v15  ;;  %658 = vadd.xlane.f32.xlu0 %v614_v19  ;;  %v4780_v11 = vsub.f32 %v3257_v28, %v562_v54  ;;  %v619_v15 = vmul.f32 %v4772_v16, %v4772_v16  ;;  %v4786_v19 = vsub.f32 %v3258_v29, %v563_v14 }
 0x1b6   : > { %v510_v59 = vpop.xlane.xlu0 %509  ;;  %v512_v6 = vpop.xlane.xlu1 %511  ;;  %1110 = vmatprep.mubr.bf16.mxu0 %v4103_v46  ;;  %1230 = vmatprep.mubr.bf16.mxu1 %v4103_v46 }
 0x1b7   : > { %v556_v25 = vmul.f32 0.0078125, %v510_v59  ;;  %v557_v42 = vmul.f32 0.0078125, %v512_v6  ;;  %1093 = vmatpush1.bf16.msra.mxu0 %v3710_v26  ;;  %3531 = vmatpush1.bf16.msra.mxu1 %v3710_v26  ;;  %v626_v28 = vmul.f32 %v4780_v11, %v4780_v11 }
 0x1b9   : > { %660 = vadd.xlane.f32.xlu1 %v615_v18  ;;  %662 = vadd.xlane.f32.xlu0 %v616_v53  ;;  %v4792_v45 = vsub.f32 %v3245_v31, %v556_v25  ;;  %v4798_v29 = vsub.f32 %v3246_v32, %v557_v42  ;;  %v627_v18 = vmul.f32 %v4786_v19, %v4786_v19 }
 0x1ba   : > { %v526_v0 = vpop.xlane.xlu0 %525  ;;  %v528_v24 = vpop.xlane.xlu1 %527 }
 0x1bb   : > { %v564_v43 = vmul.f32 0.0078125, %v526_v0  ;;  %v565_v27 = vmul.f32 0.0078125, %v528_v24  ;;  %v620_v31 = vmul.f32 %v4792_v45, %v4792_v45  ;;  %v621_v30 = vmul.f32 %v4798_v29, %v4798_v29 }
 0x1bd   : > { %664 = vadd.xlane.f32.xlu1 %v617_v21  ;;  %666 = vadd.xlane.f32.xlu0 %v618_v23  ;;  %v4806_v47 = vsub.f32 %v3261_v34, %v564_v43  ;;  %v4812_v32 = vsub.f32 %v3262_v35, %v565_v27 }
 0x1be   : > { %v514_v12 = vpop.xlane.xlu0 %513  ;;  %v516_v5 = vpop.xlane.xlu1 %515 }
 0x1bf   : > { %v558_v20 = vmul.f32 0.0078125, %v514_v12  ;;  %v628_v54 = vmul.f32 %v4806_v47, %v4806_v47  ;;  %v559_v59 = vmul.f32 0.0078125, %v516_v5  ;;  %v629_v14 = vmul.f32 %v4812_v32, %v4812_v32 }
 0x1c1   : > { %668 = vadd.xlane.f32.xlu1 %v619_v15  ;;  %682 = vadd.xlane.f32.xlu0 %v626_v28  ;;  %v4818_v10 = vsub.f32 %v3249_v37, %v558_v20  ;;  %v4826_v21 = vsub.f32 %v3250_v38, %v559_v59 }
 0x1c2   : > { %v530_v53 = vpop.xlane.xlu0 %529  ;;  %v532_v34 = vpop.xlane.xlu1 %531 }
 0x1c3   : > { %v566_v6 = vmul.f32 0.0078125, %v530_v53  ;;  %v622_v33 = vmul.f32 %v4818_v10, %v4818_v10  ;;  %v567_v35 = vmul.f32 0.0078125, %v532_v34  ;;  %v623_v37 = vmul.f32 %v4826_v21, %v4826_v21 }
 0x1c5   : > { %684 = vadd.xlane.f32.xlu1 %v627_v18  ;;  %670 = vadd.xlane.f32.xlu0 %v620_v31  ;;  %v4830_v23 = vsub.f32 %v3265_v40, %v566_v6  ;;  %v4838_v62 = vsub.f32 %v3266_v41, %v567_v35 }
 0x1c7   : > { %v630_v25 = vmul.f32 %v4830_v23, %v4830_v23  ;;  %v631_v36 = vmul.f32 %v4838_v62, %v4838_v62 }
 0x1c9   : > { %672 = vadd.xlane.f32.xlu1 %v621_v30  ;;  %686 = vadd.xlane.f32.xlu0 %v628_v54 }
 0x1cd   : > { %688 = vadd.xlane.f32.xlu1 %v629_v14  ;;  %674 = vadd.xlane.f32.xlu0 %v622_v33 }
 0x1d1   : > { %676 = vadd.xlane.f32.xlu1 %v623_v37  ;;  %690 = vadd.xlane.f32.xlu0 %v630_v25  ;;  %v4861_v25 = vld [vmem:[#allocation7] ss:$0 sm:$0xff] }
 0x1d5   : > { %692 = vadd.xlane.f32.xlu1 %v631_v36 }
 0x222   : > { %v635_v38 = vpop.xlane.xlu0 %634 }
 0x223   : > { %v698_v40 = vmul.f32 0.0078125, %v635_v38 }
 0x225   : > { %v730_v0 = vadd.f32 1e-05, %v698_v40 }
 0x226   : > { %v637_v24 = vpop.xlane.xlu1 %636  ;;  %v518_v26 = vpop.xlane.xlu0 %517 }
 0x227   : > { %3719 = vrsqrt.f32 %v730_v0  ;;  %v699_v15 = vmul.f32 0.0078125, %v637_v24  ;;  %v560_v42 = vmul.f32 0.0078125, %v518_v26 }
 0x229   : > { %v731_v28 = vadd.f32 1e-05, %v699_v15  ;;  %v4844_v39 = vsub.f32 %v3253_v55, %v560_v42 }
 0x22a   : > { %v520_v41 = vpop.xlane.xlu1 %519  ;;  %v639_v43 = vpop.xlane.xlu0 %638 }
 0x22b   : > { %3721 = vrsqrt.f32 %v731_v28  ;;  %v561_v12 = vmul.f32 0.0078125, %v520_v41  ;;  %v700_v27 = vmul.f32 0.0078125, %v639_v43  ;;  %v624_v5 = vmul.f32 %v4844_v39, %v4844_v39  ;;  %v4871_v28 = vld [vmem:[#allocation8] ss:$0 sm:$0xff] }
 0x22d   : > { %v732_v18 = vadd.f32 1e-05, %v700_v27  ;;  %678 = vadd.xlane.f32.xlu0 %v624_v5  ;;  %v4850_v31 = vsub.f32 %v3254_v63, %v561_v12 }
 0x22e   : > { %v641_v20 = vpop.xlane.xlu1 %640  ;;  %v534_v53 = vpop.xlane.xlu0 %533 }
 0x22f   : > { %3723 = vrsqrt.f32 %v732_v18  ;;  %v701_v30 = vmul.f32 0.0078125, %v641_v20  ;;  %v568_v55 = vmul.f32 0.0078125, %v534_v53  ;;  %v625_v54 = vmul.f32 %v4850_v31, %v4850_v31 }
 0x231   : > { %v3720_v59 = vpop.eup %3719  ;;  %v733_v6 = vadd.f32 1e-05, %v701_v30  ;;  %680 = vadd.xlane.f32.xlu1 %v625_v54  ;;  %v4856_v34 = vsub.f32 %v3269_v44, %v568_v55 }
 0x232   : > { %v536_v14 = vpop.xlane.xlu1 %535  ;;  %v643_v33 = vpop.xlane.xlu0 %642  ;;  %v794_v51 = vmul.f32 %v3720_v59, %v4656_v48 }
 0x233   : > { %3725 = vrsqrt.f32 %v733_v6  ;;  %v569_v63 = vmul.f32 0.0078125, %v536_v14  ;;  %v702_v35 = vmul.f32 0.0078125, %v643_v33  ;;  %v632_v37 = vmul.f32 %v4856_v34, %v4856_v34 }
 0x234   : > { %v832_v48 = vmul.f32 %v4861_v25, %v794_v51 }
 0x235   : > { %v3722_v36 = vpop.eup %3721  ;;  %v734_v38 = vadd.f32 1e-05, %v702_v35  ;;  %694 = vadd.xlane.f32.xlu0 %v632_v37  ;;  %v4865_v40 = vsub.f32 %v3270_v52, %v569_v63 }
 0x236   : > { %v645_v44 = vpop.xlane.xlu1 %644  ;;  %v647_v0 = vpop.xlane.xlu0 %646  ;;  %v795_v24 = vmul.f32 %v3722_v36, %v4666_v56  ;;  %v870_v56 = vadd.f32 %v4871_v28, %v832_v48 }
 0x237   : > { %3727 = vrsqrt.f32 %v734_v38  ;;  %v703_v26 = vmul.f32 0.0078125, %v645_v44  ;;  %v704_v15 = vmul.f32 0.0078125, %v647_v0  ;;  %v633_v42 = vmul.f32 %v4865_v40, %v4865_v40 }
 0x238   : > { %v833_v41 = vmul.f32 %v4861_v25, %v795_v24 }
 0x239   : > { %v3724_v43 = vpop.eup %3723  ;;  %v735_v3 = vadd.f32 1e-05, %v703_v26  ;;  %v736_v52 = vadd.f32 1e-05, %v704_v15  ;;  %696 = vadd.xlane.f32.xlu1 %v633_v42 }
 0x23a   : > { %v649_v12 = vpop.xlane.xlu1 %648  ;;  %v651_v27 = vpop.xlane.xlu0 %650  ;;  %v871_v5 = vadd.f32 %v4871_v28, %v833_v41  ;;  %v796_v18 = vmul.f32 %v3724_v43, %v4670_v58 }
 0x23b   : > { %3729 = vrsqrt.f32 %v735_v3  ;;  %v705_v20 = vmul.f32 0.0078125, %v649_v12  ;;  %v706_v54 = vmul.f32 0.0078125, %v651_v27 }
 0x23c   : > { %v4877_v53 = vpack.c.bf16 %v871_v5, %v870_v56  ;;  %3731 = vrsqrt.f32 %v736_v52  ;;  %v834_v33 = vmul.f32 %v4861_v25, %v796_v18  ;;  %v4892_v52 = vld [vmem:[#allocation5 + $0x8] ss:$12 sps:$4 sm:$0xff]  }
 0x23d   : > { %v3726_v30 = vpop.eup %3725  ;;  %v737_v55 = vadd.f32 1e-05, %v705_v20  ;;  %v738_v35 = vadd.f32 1e-05, %v706_v54  ;;  %3468 = vmatprep.subr.bf16.mxu1 %v4892_v52 }
 0x23e   : > { %v653_v59 = vpop.xlane.xlu1 %652  ;;  %1111 = vmatmul.mubr.bf16.vlgmr.msra.gmra.mrb[0].mxu0 %v4877_v53  ;;  %v655_v6 = vpop.xlane.xlu0 %654  ;;  %v797_v14 = vmul.f32 %v3726_v30, %v4681_v2  ;;  %v872_v44 = vadd.f32 %v4871_v28, %v834_v33 }
 0x23f   : > { %3733 = vrsqrt.f32 %v737_v55  ;;  %v707_v51 = vmul.f32 0.0078125, %v653_v59  ;;  %1120 = vmatprep.mubr.bf16.mxu0 %v4103_v46  ;;  %v708_v15 = vmul.f32 0.0078125, %v655_v6 }
 0x240   : > { %v835_v58 = vmul.f32 %v4861_v25, %v797_v14 }
 0x241   : > { %v3728_v63 = vpop.eup %3727  ;;  %v739_v37 = vadd.f32 1e-05, %v707_v51  ;;  %v740_v5 = vadd.f32 1e-05, %v708_v15 }
 0x242   : > { %v657_v36 = vpop.xlane.xlu1 %656  ;;  %v659_v38 = vpop.xlane.xlu0 %658  ;;  %v873_v0 = vadd.f32 %v4871_v28, %v835_v58  ;;  %v798_v24 = vmul.f32 %v3728_v63, %v4693_v1 }
 0x243   : > { %3735 = vrsqrt.f32 %v739_v37  ;;  %v709_v2 = vmul.f32 0.0078125, %v657_v36  ;;  %v710_v51 = vmul.f32 0.0078125, %v659_v38 }
 0x244   : > { %v4887_v48 = vpack.c.bf16 %v873_v0, %v872_v44  ;;  %3737 = vrsqrt.f32 %v738_v35  ;;  %v836_v3 = vmul.f32 %v4861_v25, %v798_v24 }
 0x245   : > { %v3730_v26 = vpop.eup %3729  ;;  %v741_v27 = vadd.f32 1e-05, %v709_v2  ;;  %v742_v0 = vadd.f32 1e-05, %v710_v51 }
 0x246   : > { %v661_v42 = vpop.xlane.xlu1 %660  ;;  %1121 = vmatmul.mubr.bf16.gmra.mrb[4].mxu0 %v4887_v48  ;;  %v663_v41 = vpop.xlane.xlu0 %662  ;;  %v799_v43 = vmul.f32 %v3730_v26, %v4697_v50  ;;  %v874_v30 = vadd.f32 %v4871_v28, %v836_v3 }
 0x247   : > { %v3732_v12 = vpop.eup %3731  ;;  %1130 = vmatprep.mubr.bf16.mxu0 %v4103_v46  ;;  %3739 = vrsqrt.f32 %v741_v27  ;;  %v711_v59 = vmul.f32 0.0078125, %v661_v42 }
 0x248   : > { %v837_v1 = vmul.f32 %v4861_v25, %v799_v43  ;;  %v800_v55 = vmul.f32 %v3732_v12, %v4706_v8  ;;  %3741 = vrsqrt.f32 %v740_v5 }
 0x249   : > { %v3734_v56 = vpop.eup %3733  ;;  %v743_v36 = vadd.f32 1e-05, %v711_v59 }
 0x24a   : > { %v665_v18 = vpop.xlane.xlu1 %664  ;;  %v667_v20 = vpop.xlane.xlu0 %666  ;;  %v875_v50 = vadd.f32 %v4871_v28, %v837_v1  ;;  %v801_v54 = vmul.f32 %v3734_v56, %v4712_v9  ;;  %v838_v35 = vmul.f32 %v4861_v25, %v800_v55 }
 0x24b   : > { %3743 = vrsqrt.f32 %v743_v36  ;;  %v713_v42 = vmul.f32 0.0078125, %v665_v18 }
 0x24c   : > { %v4901_v6 = vpack.c.bf16 %v875_v50, %v874_v30  ;;  %v839_v14 = vmul.f32 %v4861_v25, %v801_v54  ;;  %v876_v38 = vadd.f32 %v4871_v28, %v838_v35 }
 0x24d   : > { %v3736_v33 = vpop.eup %3735 }
 0x24e   : > { %v669_v58 = vpop.xlane.xlu1 %668  ;;  %1131 = vmatmul.mubr.bf16.gmra.mrb[8].mxu0 %v4901_v6  ;;  %v683_v63 = vpop.xlane.xlu0 %682  ;;  %v877_v9 = vadd.f32 %v4871_v28, %v839_v14  ;;  %v803_v44 = vmul.f32 %v3736_v33, %v4728_v13  ;;  %v712_v13 = vmul.f32 0.0078125, %v663_v41 }
 0x24f   : > { %v3738_v37 = vpop.eup %3737  ;;  %v722_v8 = vmul.f32 0.0078125, %v683_v63  ;;  %1140 = vmatprep.mubr.bf16.mxu0 %v4103_v46  ;;  %v715_v35 = vmul.f32 0.0078125, %v669_v58 }
 0x250   : > { %v802_v15 = vmul.f32 %v3738_v37, %v4720_v4  ;;  %v4913_v3 = vpack.c.bf16 %v877_v9, %v876_v38  ;;  %v841_v12 = vmul.f32 %v4861_v25, %v803_v44  ;;  %v745_v4 = vadd.f32 1e-05, %v713_v42 }
 0x251   : > { %v754_v24 = vadd.f32 1e-05, %v722_v8  ;;  %v3740_v27 = vpop.eup %3739  ;;  %v744_v59 = vadd.f32 1e-05, %v712_v13 }
 0x252   : > { %v685_v2 = vpop.xlane.xlu1 %684  ;;  %v4909_v26 = vpop.xlane.xlu0 %670  ;;  %v840_v30 = vmul.f32 %v4861_v25, %v802_v15  ;;  %v879_v55 = vadd.f32 %v4871_v28, %v841_v12  ;;  %v805_v54 = vmul.f32 %v3740_v27, %v4736_v60  ;;  %v714_v60 = vmul.f32 0.0078125, %v667_v20 }
 0x253   : > { %v723_v43 = vmul.f32 0.0078125, %v685_v2  ;;  %3745 = vrsqrt.f32 %v754_v24  ;;  %v3742_v50 = vpop.eup %3741  ;;  %v747_v15 = vadd.f32 1e-05, %v715_v35 }
 0x254   : > { %3747 = vrsqrt.f32 %v742_v0  ;;  %v878_v51 = vadd.f32 %v4871_v28, %v840_v30  ;;  %v804_v63 = vmul.f32 %v3742_v50, %v4732_v49  ;;  %v843_v8 = vmul.f32 %v4861_v25, %v805_v54 }
 0x255   : > { %v755_v1 = vadd.f32 1e-05, %v723_v43  ;;  %v3744_v9 = vpop.eup %3743  ;;  %v746_v27 = vadd.f32 1e-05, %v714_v60  ;;  %v3712_v60 = vld [vmem:[#allocation5 + $0x20] ss:$12 sps:$4 sm:$0xff]  }
 0x256   : > { %v673_v56 = vpop.xlane.xlu1 %672  ;;  %1141 = vmatmul.mubr.bf16.gmra.mrb[12].mxu0 %v4913_v3  ;;  %v687_v5 = vpop.xlane.xlu0 %686  ;;  %v4925_v36 = vpack.c.bf16 %v879_v55, %v878_v51  ;;  %v842_v38 = vmul.f32 %v4861_v25, %v804_v63  ;;  %v881_v43 = vadd.f32 %v4871_v28, %v843_v8  ;;  %v807_v20 = vmul.f32 %v3744_v9, %v4750_v17 }
 0x257   : > { %3749 = vrsqrt.f32 %v755_v1  ;;  %v724_v18 = vmul.f32 0.0078125, %v687_v5  ;;  %1150 = vmatprep.mubr.bf16.mxu0 %v4103_v46 }
 0x258   : > { %3751 = vrsqrt.f32 %v745_v4  ;;  %v880_v5 = vadd.f32 %v4871_v28, %v842_v38  ;;  %v845_v54 = vmul.f32 %v4861_v25, %v807_v20 }
 0x259   : > { %v756_v14 = vadd.f32 1e-05, %v724_v18  ;;  %v717_v18 = vmul.f32 0.0078125, %v673_v56 }
 0x25a   : > { %v689_v41 = vpop.xlane.xlu1 %688  ;;  %v4921_v33 = vpop.xlane.xlu0 %674 }
 0x25b   : > { %v725_v37 = vmul.f32 0.0078125, %v689_v41  ;;  %3753 = vrsqrt.f32 %v756_v14  ;;  %v716_v14 = vmul.f32 0.0078125, %v4909_v26  ;;  %v749_v35 = vadd.f32 1e-05, %v717_v18 }
 0x25c   : > { %3755 = vrsqrt.f32 %v744_v59  ;;  %v883_v26 = vadd.f32 %v4871_v28, %v845_v54 }
 0x25d   : > { %v757_v44 = vadd.f32 1e-05, %v725_v37  ;;  %v3746_v0 = vpop.eup %3745 }
 0x25e   : > { %v677_v24 = vpop.xlane.xlu1 %676  ;;  %1151 = vmatmul.mubr.bf16.gmra.mrb[16].mxu0 %v4925_v36  ;;  %v691_v2 = vpop.xlane.xlu0 %690  ;;  %v818_v42 = vmul.f32 %v3746_v0, %v4780_v11  ;;  %v4938_v11 = vpack.c.bf16 %v881_v43, %v880_v5  ;;  %v748_v0 = vadd.f32 1e-05, %v716_v14  ;;  %v3713_v43 = vld [vmem:[#allocation5 + $0x38] ss:$12 sps:$4 sm:$0xff]  }
 0x25f   : > { %v3748_v49 = vpop.eup %3747  ;;  %3757 = vrsqrt.f32 %v757_v44  ;;  %v726_v58 = vmul.f32 0.0078125, %v691_v2  ;;  %1160 = vmatprep.mubr.bf16.mxu0 %v4103_v46 }
 0x260   : > { %v856_v50 = vmul.f32 %v4861_v25, %v818_v42  ;;  %v806_v4 = vmul.f32 %v3748_v49, %v4744_v61  ;;  %3759 = vrsqrt.f32 %v747_v15 }
 0x261   : > { %v3750_v12 = vpop.eup %3749  ;;  %v758_v13 = vadd.f32 1e-05, %v726_v58 }
 0x262   : > { %v693_v1 = vpop.xlane.xlu1 %692  ;;  %v819_v30 = vmul.f32 %v3750_v12, %v4786_v19  ;;  %v3752_v59 = vpop.eup %3751  ;;  %v894_v61 = vadd.f32 %v4871_v28, %v856_v50  ;;  %v844_v51 = vmul.f32 %v4861_v25, %v806_v4  ;;  %v3714_v50 = vld [vmem:[#allocation5 + $0x50] ss:$12 sps:$4 sm:$0xff]  }
 0x263   : > { %v727_v55 = vmul.f32 0.0078125, %v693_v1  ;;  %3761 = vrsqrt.f32 %v758_v13  ;;  %v809_v9 = vmul.f32 %v3752_v59, %v4764_v22 }
 0x264   : > { %v857_v17 = vmul.f32 %v4861_v25, %v819_v30  ;;  %3763 = vrsqrt.f32 %v746_v27  ;;  %v882_v2 = vadd.f32 %v4871_v28, %v844_v51 }
 0x265   : > { %v759_v41 = vadd.f32 1e-05, %v727_v55  ;;  %v3754_v19 = vpop.eup %3753  ;;  %v847_v42 = vmul.f32 %v4861_v25, %v809_v9 }
 0x266   : > { %1161 = vmatmul.mubr.bf16.gmra.mrb[20].mxu0 %v4938_v11  ;;  %v895_v56 = vadd.f32 %v4871_v28, %v857_v17  ;;  %v3756_v63 = vpop.eup %3755  ;;  %v820_v37 = vmul.f32 %v3754_v19, %v4806_v47  ;;  %v719_v47 = vmul.f32 0.0078125, %v677_v24  ;;  %v4960_v22 = vpack.c.bf16 %v883_v26, %v882_v2 }
 0x267   : > { %3765 = vrsqrt.f32 %v759_v41  ;;  %1170 = vmatprep.mubr.bf16.mxu0 %v4103_v46  ;;  %v808_v15 = vmul.f32 %v3756_v63, %v4756_v7  ;;  %v3715_v41 = vld [vmem:[#allocation5 + $0x68] ss:$12 sps:$4 sm:$0xff]  }
 0x268   : > { %v4949_v8 = vpack.c.bf16 %v895_v56, %v894_v61  ;;  %v858_v49 = vmul.f32 %v4861_v25, %v820_v37  ;;  %3767 = vrsqrt.f32 %v749_v35  ;;  %v751_v13 = vadd.f32 1e-05, %v719_v47  ;;  %v3716_v37 = vld [vmem:[#allocation5 + $0x80] ss:$12 sps:$4 sm:$0xff]  }
 0x269   : > { %v3758_v44 = vpop.eup %3757  ;;  %3769 = vrsqrt.f32 %v748_v0  ;;  %v3717_v0 = vld [vmem:[#allocation5 + $0x98] ss:$12 sps:$4 sm:$0xff]  }
 0x26a   : > { %1231 = vmatmul.mubr.bf16.vlgmr.msra.gmra.mrb[0].mxu1 %v4949_v8  ;;  %v821_v38 = vmul.f32 %v3758_v44, %v4812_v32  ;;  %v3760_v20 = vpop.eup %3759  ;;  %v718_v32 = vmul.f32 0.0078125, %v4921_v33  ;;  %v896_v7 = vadd.f32 %v4871_v28, %v858_v49  ;;  %v885_v33 = vadd.f32 %v4871_v28, %v847_v42 }
 0x26b   : > { %1240 = vmatprep.mubr.bf16.mxu1 %v4103_v46  ;;  %3469 = vmatpush3.bf16.msra.mxu1 %v4892_v52  ;;  %v846_v52 = vmul.f32 %v4861_v25, %v808_v15  ;;  %v811_v30 = vmul.f32 %v3760_v20, %v4772_v16  ;;  %3771 = vrsqrt.f32 %v751_v13  ;;  %v3718_v15 = vld [vmem:[#allocation5 + $0xb0] ss:$12 sps:$4 sm:$0xff]  }
 0x26c   : > { %v859_v58 = vmul.f32 %v4861_v25, %v821_v38  ;;  %3470 = vmatprep.subr.bf16.mxu1 %v3712_v60  ;;  %v750_v18 = vadd.f32 1e-05, %v718_v32 }
 0x26d   : > { %v3762_v12 = vpop.eup %3761  ;;  %v884_v55 = vadd.f32 %v4871_v28, %v846_v52  ;;  %v849_v14 = vmul.f32 %v4861_v25, %v811_v30 }
 0x26e   : > { %1171 = vmatmul.mubr.bf16.gmra.mrb[24].mxu0 %v4960_v22  ;;  %v897_v24 = vadd.f32 %v4871_v28, %v859_v58  ;;  %v3764_v27 = vpop.eup %3763  ;;  %v822_v1 = vmul.f32 %v3762_v12, %v4830_v23  ;;  %3773 = vrsqrt.f32 %v750_v18 }
 0x26f   : > { %1180 = vmatprep.mubr.bf16.mxu0 %v4103_v46  ;;  %3471 = vmatpush3.bf16.msra.mxu1 %v3712_v60  ;;  %v810_v23 = vmul.f32 %v3764_v27, %v4768_v57  ;;  %v4981_v59 = vpack.c.bf16 %v885_v33, %v884_v55  ;;  %v887_v63 = vadd.f32 %v4871_v28, %v849_v14 }
 0x270   : > { %v4971_v5 = vpack.c.bf16 %v897_v24, %v896_v7  ;;  %3472 = vmatprep.subr.bf16.mxu1 %v3713_v43  ;;  %v860_v54 = vmul.f32 %v4861_v25, %v822_v1 }
 0x271   : > { %v3766_v4 = vpop.eup %3765  ;;  %v848_v61 = vmul.f32 %v4861_v25, %v810_v23 }
 0x272   : > { %1241 = vmatmul.mubr.bf16.gmra.mrb[4].mxu1 %v4971_v5  ;;  %v823_v17 = vmul.f32 %v3766_v4, %v4838_v62  ;;  %v3768_v19 = vpop.eup %3767  ;;  %v898_v62 = vadd.f32 %v4871_v28, %v860_v54 }
 0x273   : > { %1250 = vmatprep.mubr.bf16.mxu1 %v4103_v46  ;;  %3473 = vmatpush3.bf16.msra.mxu1 %v3713_v43  ;;  %v3770_v56 = vpop.eup %3769  ;;  %v813_v35 = vmul.f32 %v3768_v19, %v4798_v29  ;;  %v886_v26 = vadd.f32 %v4871_v28, %v848_v61 }
 0x274   : > { %v861_v16 = vmul.f32 %v4861_v25, %v823_v17  ;;  %3474 = vmatprep.subr.bf16.mxu1 %v3714_v50  ;;  %v812_v9 = vmul.f32 %v3770_v56, %v4792_v45 }
 0x275   : > { %v4998_v60 = vpack.c.bf16 %v887_v63, %v886_v26  ;;  %v851_v44 = vmul.f32 %v4861_v25, %v813_v35  ;;  %v3772_v2 = vpop.eup %3771 }
 0x276   : > { %1181 = vmatmul.mubr.bf16.gmra.mrb[28].mxu0 %v4981_v59  ;;  %v899_v57 = vadd.f32 %v4871_v28, %v861_v16  ;;  %v850_v29 = vmul.f32 %v4861_v25, %v812_v9  ;;  %v815_v49 = vmul.f32 %v3772_v2, %v4826_v21 }
 0x277   : > { %1190 = vmatprep.mubr.bf16.mxu0 %v4103_v46  ;;  %3475 = vmatpush3.bf16.msra.mxu1 %v3714_v50  ;;  %v889_v45 = vadd.f32 %v4871_v28, %v851_v44 }
 0x278   : > { %v4990_v51 = vpack.c.bf16 %v899_v57, %v898_v62  ;;  %3476 = vmatprep.subr.bf16.mxu1 %v3715_v41  ;;  %v3774_v38 = vpop.eup %3773  ;;  %v888_v47 = vadd.f32 %v4871_v28, %v850_v29  ;;  %v853_v43 = vmul.f32 %v4861_v25, %v815_v49 }
 0x279   : > { %v814_v58 = vmul.f32 %v3774_v38, %v4818_v10 }
 0x27a   : > { %1251 = vmatmul.mubr.bf16.gmra.mrb[8].mxu1 %v4990_v51  ;;  %v911_v42 = vpack.c.bf16 %v889_v45, %v888_v47  ;;  %v891_v32 = vadd.f32 %v4871_v28, %v853_v43 }
 0x27b   : > { %3477 = vmatpush3.bf16.msra.mxu1 %v3715_v41  ;;  %1260 = vmatprep.mubr.bf16.mxu1 %v4103_v46  ;;  %v852_v20 = vmul.f32 %v4861_v25, %v814_v58 }
 0x27c   : > { %3478 = vmatprep.subr.bf16.mxu1 %v3716_v37 }
 0x27d   : > { %v890_v21 = vadd.f32 %v4871_v28, %v852_v20 }
 0x27e   : > { %1191 = vmatmul.mubr.bf16.gmra.mrb[32].mxu0 %v4998_v60 }
 0x27f   : > { %1200 = vmatprep.mubr.bf16.mxu0 %v4103_v46  ;;  %3479 = vmatpush3.bf16.msra.mxu1 %v3716_v37  ;;  %v912_v12 = vpack.c.bf16 %v891_v32, %v890_v21 }
 0x280   : > { %3480 = vmatprep.subr.bf16.mxu1 %v3717_v0 }
 0x283   : > { %3481 = vmatpush3.bf16.msra.mxu1 %v3717_v0 }
 0x284   : > { %3482 = vmatprep.subr.bf16.mxu1 %v3718_v15 }
 0x286   : > { %1201 = vmatmul.mubr.bf16.gmra.mrb[36].mxu0 %v911_v42 }
 0x287   : > { %1210 = vmatprep.mubr.bf16.mxu0 %v4103_v46  ;;  %3483 = vmatpush3.bf16.msra.mxu1 %v3718_v15 }
 0x28e   : > { %1211 = vmatmul.mubr.bf16.gmra.mrb[40].mxu0 %v912_v12 }
 0x28f   : > { %1220 = vmatprep.mubr.bf16.mxu0 %v4103_v46 }
 0x2ba   : > { %v679_v10 = vpop.xlane.xlu0 %678 }
 0x2bb   : > { %v720_v7 = vmul.f32 0.0078125, %v679_v10 }
 0x2bd   : > { %v752_v24 = vadd.f32 1e-05, %v720_v7 }
 0x2be   : > { %v681_v52 = vpop.xlane.xlu1 %680 }
 0x2bf   : > { %3775 = vrsqrt.f32 %v752_v24  ;;  %v721_v27 = vmul.f32 0.0078125, %v681_v52 }
 0x2c1   : > { %v753_v13 = vadd.f32 1e-05, %v721_v27 }
 0x2c2   : > { %v695_v1 = vpop.xlane.xlu0 %694 }
 0x2c3   : > { %3777 = vrsqrt.f32 %v753_v13  ;;  %v728_v33 = vmul.f32 0.0078125, %v695_v1 }
 0x2c5   : > { %v760_v30 = vadd.f32 1e-05, %v728_v33 }
 0x2c6   : > { %v697_v50 = vpop.xlane.xlu1 %696 }
 0x2c7   : > { %3779 = vrsqrt.f32 %v760_v30  ;;  %v729_v4 = vmul.f32 0.0078125, %v697_v50 }
 0x2c9   : > { %v3776_v18 = vpop.eup %3775  ;;  %v761_v55 = vadd.f32 1e-05, %v729_v4 }
 0x2ca   : > { %v816_v17 = vmul.f32 %v3776_v18, %v4844_v39 }
 0x2cb   : > { %3781 = vrsqrt.f32 %v761_v55 }
 0x2cc   : > { %v854_v23 = vmul.f32 %v4861_v25, %v816_v17 }
 0x2cd   : > { %v3778_v46 = vpop.eup %3777 }
 0x2ce   : > { %v817_v54 = vmul.f32 %v3778_v46, %v4850_v31  ;;  %v892_v41 = vadd.f32 %v4871_v28, %v854_v23 }
 0x2d0   : > { %v855_v16 = vmul.f32 %v4861_v25, %v817_v54 }
 0x2d1   : > { %v3780_v14 = vpop.eup %3779 }
 0x2d2   : > { %v893_v19 = vadd.f32 %v4871_v28, %v855_v16  ;;  %v824_v62 = vmul.f32 %v3780_v14, %v4856_v34 }
 0x2d4   : > { %v913_v57 = vpack.c.bf16 %v893_v19, %v892_v41  ;;  %v862_v56 = vmul.f32 %v4861_v25, %v824_v62 }
 0x2d5   : > { %v3782_v61 = vpop.eup %3781 }
 0x2d6   : > { %1221 = vmatmul.mubr.bf16.gmra.mrb[44].mxu0 %v913_v57  ;;  %v825_v39 = vmul.f32 %v3782_v61, %v4865_v40  ;;  %v900_v63 = vadd.f32 %v4871_v28, %v862_v56 }
 0x2d8   : > { %v863_v31 = vmul.f32 %v4861_v25, %v825_v39 }
 0x2da   : > { %v901_v35 = vadd.f32 %v4871_v28, %v863_v31 }
 0x2dc   : > { %v917_v37 = vpack.c.bf16 %v901_v35, %v900_v63 }
 0x2de   : > { %1261 = vmatmul.mubr.bf16.gmra.mrb[12].mxu1 %v917_v37 }
 0x2df   : > { %3484 = vmatprep.mubr.bf16.mxu1 %v4877_v53 }
 0x2e6   : > { %3485 = vmatmul.mubr.bf16.vlgmr.msra.gmra.mrb[16].mxu1 %v4887_v48 }
 0x2e7   : > { %3488 = vmatprep.mubr.bf16.mxu1 %v4901_v6 }
 0x2ee   : > { %3489 = vmatmul.mubr.bf16.gmra.mrb[20].mxu1 %v4913_v3 }
 0x2ef   : > { %3492 = vmatprep.mubr.bf16.mxu1 %v4925_v36 }
 0x2f6   : > { %3493 = vmatmul.mubr.bf16.gmra.mrb[24].mxu1 %v4938_v11 }
 0x2f7   : > { %3496 = vmatprep.mubr.bf16.mxu1 %v4960_v22 }
 0x2fe   : > { %3497 = vmatmul.mubr.bf16.gmra.mrb[28].mxu1 %v4981_v59 }
 0x2ff   : > { %3500 = vmatprep.mubr.bf16.mxu1 %v4998_v60 }
 0x306   : > { %3501 = vmatmul.mubr.bf16.gmra.mrb[32].mxu1 %v911_v42 }
 0x307   : > { %3504 = vmatprep.mubr.bf16.mxu1 %v912_v12 }
 0x30e   : > { %3505 = vmatmul.mubr.bf16.gmra.mrb[36].mxu1 %v913_v57  ;;  %v1560_v57 = vlaneseq }
 0x30f   : > { %3508 = vmatprep.mubr.bf16.mxu1 %v4949_v8 }
 0x310   : > { %v1561_v56 = vand.u32 127, %v1560_v57 }
 0x311   : > { %v5036_v34 = vpop.f32.mrb[0].mxu0 }
 0x312   : > { %v5038_v25 = vpop.f32.mrb[1].mxu0  ;;  %1596 = vrot.lane.b32.xlu0 %v5036_v34, %s4104_s8 }
 0x313   : > { %v5042_v40 = vpop.f32.mrb[2].mxu0 }
 0x314   : > { %1598 = vrot.lane.b32.xlu1 %v5042_v40, %s4104_s8  ;;  %v5046_v28 = vpop.f32.mrb[3].mxu0 }
 0x316   : > { %3509 = vmatmul.mubr.bf16.gmra.mrb[40].mxu1 %v4971_v5 }
 0x317   : > { %3512 = vmatprep.mubr.bf16.mxu1 %v4990_v51 }
 0x319   : > { %v5050_v53 = vpop.f32.mrb[4].mxu0 }
 0x31a   : > { %v5052_v48 = vpop.f32.mrb[5].mxu0 }
 0x31b   : > { %v5054_v6 = vpop.f32.mrb[6].mxu0 }
 0x31c   : > { %v5056_v3 = vpop.f32.mrb[7].mxu0 }
 0x31e   : > { %3513 = vmatmul.mubr.bf16.gmra.mrb[44].mxu1 %v917_v37  ;;  %v5259_v37 = vld [vmem:[%s4522_s2 + $0x78] sm:$0xff]  }
 0x31f   : > { %6139 = vst [vmem:[#allocation53_spill] sm:$0xff] %v5259_v37 }
 0x321   : > { %v5058_v36 = vpop.f32.mrb[8].mxu0 }
 0x322   : > { %v5060_v11 = vpop.f32.mrb[9].mxu0 }
 0x323   : > { %v5062_v8 = vpop.f32.mrb[10].mxu0 }
 0x324   : > { %v5064_v22 = vpop.f32.mrb[11].mxu0 }
 0x325   : > { %6118 = vst [vmem:[#allocation32_spill] sm:$0xff] %v5064_v22 }
 0x329   : > { %v5066_v5 = vpop.f32.mrb[12].mxu0 }
 0x32a   : > { %v5068_v59 = vpop.f32.mrb[13].mxu0 }
 0x32b   : > { %v5070_v51 = vpop.f32.mrb[14].mxu0 }
 0x32c   : > { %v5072_v26 = vpop.f32.mrb[15].mxu0 }
 0x331   : > { %v5074_v9 = vpop.f32.mrb[16].mxu0 }
 0x332   : > { %v5076_v60 = vpop.f32.mrb[17].mxu0 }
 0x333   : > { %v5078_v44 = vpop.f32.mrb[18].mxu0 }
 0x334   : > { %v5080_v0 = vpop.f32.mrb[19].mxu0 }
 0x339   : > { %v5082_v2 = vpop.f32.mrb[20].mxu0 }
 0x33a   : > { %v5084_v29 = vpop.f32.mrb[21].mxu0 }
 0x33b   : > { %v5086_v38 = vpop.f32.mrb[22].mxu0 }
 0x33c   : > { %v5088_v45 = vpop.f32.mrb[23].mxu0 }
 0x33d   : > { %v5090_v49 = vpop.f32.mrb[0].mxu1 }
 0x33e   : > { %1644 = vrot.lane.b32.xlu0 %v5090_v49, %s4104_s8  ;;  %v5094_v15 = vpop.f32.mrb[1].mxu1 }
 0x33f   : > { %v5096_v47 = vpop.f32.mrb[2].mxu1 }
 0x340   : > { %1646 = vrot.lane.b32.xlu1 %v5096_v47, %s4104_s8  ;;  %v5100_v58 = vpop.f32.mrb[3].mxu1 }
 0x341   : > { %v5102_v42 = vpop.f32.mrb[24].mxu0 }
 0x342   : > { %v5104_v43 = vpop.f32.mrb[25].mxu0  ;;  %1692 = vrot.lane.b32.xlu0 %v5036_v34, %s4105_s20 }
 0x343   : > { %v5108_v20 = vpop.f32.mrb[26].mxu0 }
 0x344   : > { %v5110_v32 = vpop.f32.mrb[27].mxu0  ;;  %1694 = vrot.lane.b32.xlu1 %v5042_v40, %s4105_s20 }
 0x345   : > { %v5114_v21 = vpop.f32.mrb[4].mxu1 }
 0x346   : > { %1740 = vrot.lane.b32.xlu0 %v5090_v49, %s4105_s20  ;;  %v5118_v12 = vpop.f32.mrb[5].mxu1 }
 0x347   : > { %v5120_v10 = vpop.f32.mrb[6].mxu1 }
 0x348   : > { %1742 = vrot.lane.b32.xlu1 %v5096_v47, %s4105_s20  ;;  %v5124_v7 = vpop.f32.mrb[7].mxu1 }
 0x349   : > { %v5126_v24 = vpop.f32.mrb[28].mxu0 }
 0x34a   : > { %v5128_v52 = vpop.f32.mrb[29].mxu0  ;;  %2142 = vrot.lane.b32.xlu0 %v5038_v25, %s4104_s8 }
 0x34b   : > { %6119 = vst [vmem:[#allocation33_spill] sm:$0xff] %v5128_v52  ;;  %v5132_v27 = vpop.f32.mrb[30].mxu0 }
 0x34c   : > { %v5134_v13 = vpop.f32.mrb[31].mxu0  ;;  %2144 = vrot.lane.b32.xlu1 %v5046_v28, %s4104_s8 }
 0x34d   : > { %6120 = vst [vmem:[#allocation34_spill] sm:$0xff] %v5134_v13  ;;  %v5138_v1 = vpop.f32.mrb[8].mxu1 }
 0x34e   : > { %2190 = vrot.lane.b32.xlu0 %v5094_v15, %s4104_s8  ;;  %v5142_v33 = vpop.f32.mrb[9].mxu1 }
 0x34f   : > { %6121 = vst [vmem:[#allocation35_spill] sm:$0xff] %v5142_v33  ;;  %v5144_v30 = vpop.f32.mrb[10].mxu1 }
 0x350   : > { %2192 = vrot.lane.b32.xlu1 %v5100_v58, %s4104_s8  ;;  %v5148_v50 = vpop.f32.mrb[11].mxu1 }
 0x351   : > { %6122 = vst [vmem:[#allocation36_spill] sm:$0xff] %v5148_v50  ;;  %v5150_v4 = vpop.f32.mrb[32].mxu0 }
 0x352   : > { %6123 = vst [vmem:[#allocation37_spill] sm:$0xff] %v5150_v4  ;;  %v5152_v18 = vpop.f32.mrb[33].mxu0  ;;  %2238 = vrot.lane.b32.xlu0 %v5038_v25, %s4105_s20 }
 0x353   : > { %6124 = vst [vmem:[#allocation38_spill] sm:$0xff] %v5152_v18  ;;  %v5156_v55 = vpop.f32.mrb[34].mxu0 }
 0x354   : > { %6125 = vst [vmem:[#allocation39_spill] sm:$0xff] %v5156_v55  ;;  %v5158_v17 = vpop.f32.mrb[35].mxu0  ;;  %2240 = vrot.lane.b32.xlu1 %v5046_v28, %s4105_s20 }
 0x355   : > { %6126 = vst [vmem:[#allocation40_spill] sm:$0xff] %v5158_v17  ;;  %v5295_v17 = vld [vmem:[%s5266_s9 + $0x60] sm:$0xff]  }
 0x356   : > { %2286 = vrot.lane.b32.xlu0 %v5094_v15, %s4105_s20 }
 0x358   : > { %2288 = vrot.lane.b32.xlu1 %v5100_v58, %s4105_s20 }
 0x359   : > { %v5166_v46 = vpop.f32.mrb[36].mxu0 }
 0x35a   : > { %6127 = vst [vmem:[#allocation41_spill] sm:$0xff] %v5166_v46  ;;  %v5168_v54 = vpop.f32.mrb[37].mxu0  ;;  %1648 = vrot.lane.b32.xlu0 %v5114_v21, %s4104_s8 }
 0x35b   : > { %6128 = vst [vmem:[#allocation42_spill] sm:$0xff] %v5168_v54  ;;  %v5172_v23 = vpop.f32.mrb[38].mxu0 }
 0x35c   : > { %6129 = vst [vmem:[#allocation43_spill] sm:$0xff] %v5172_v23  ;;  %1600 = vrot.lane.b32.xlu1 %v5050_v53, %s4104_s8  ;;  %v5176_v16 = vpop.f32.mrb[39].mxu0 }
 0x35d   : > { %6130 = vst [vmem:[#allocation44_spill] sm:$0xff] %v5176_v16  ;;  %v5276_v16 = vld [vmem:[%s4522_s2 + $0x60] sm:$0xff]  }
 0x35e   : > { %1696 = vrot.lane.b32.xlu0 %v5050_v53, %s4105_s20 }
 0x360   : > { %1602 = vrot.lane.b32.xlu1 %v5054_v6, %s4104_s8 }
 0x361   : > { %v5182_v14 = vpop.f32.mrb[40].mxu0 }
 0x362   : > { %6131 = vst [vmem:[#allocation45_spill] sm:$0xff] %v5182_v14  ;;  %1744 = vrot.lane.b32.xlu0 %v5114_v21, %s4105_s20  ;;  %v5186_v41 = vpop.f32.mrb[41].mxu0 }
 0x363   : > { %6132 = vst [vmem:[#allocation46_spill] sm:$0xff] %v5186_v41  ;;  %v5188_v19 = vpop.f32.mrb[42].mxu0  ;;  %v1562_v41 = vand.u32 31, %v1561_v56 }
 0x364   : > { %6133 = vst [vmem:[#allocation47_spill] sm:$0xff] %v5188_v19  ;;  %1650 = vrot.lane.b32.xlu1 %v5120_v10, %s4104_s8  ;;  %v5192_v62 = vpop.f32.mrb[43].mxu0  ;;  %v5262_v19 = vld [vmem:[%s4522_s2] sm:$0xff]  }
 0x365   : > { %6134 = vst [vmem:[#allocation48_spill] sm:$0xff] %v5192_v62  ;;  %vm5283_vm0 = vcmp.lt.s32.totalorder %v1562_v41, 16  ;;  %v6146_v18 = vunpack.c.l.bf16 %v5262_v19 }
 0x366   : > { %2146 = vrot.lane.b32.xlu0 %v5052_v48, %s4104_s8 }
 0x367   : > { %v1822_v4 = vmul.f32 %v6146_v18, %v5036_v34 }
 0x368   : > { %1698 = vrot.lane.b32.xlu1 %v5054_v6, %s4105_s20 }
 0x36a   : > { %2194 = vrot.lane.b32.xlu0 %v5118_v12, %s4104_s8 }
 0x36c   : > { %1746 = vrot.lane.b32.xlu1 %v5120_v10, %s4105_s20 }
 0x36e   : > { %2242 = vrot.lane.b32.xlu0 %v5052_v48, %s4105_s20 }
 0x370   : > { %2148 = vrot.lane.b32.xlu1 %v5056_v3, %s4104_s8 }
 0x372   : > { %2290 = vrot.lane.b32.xlu0 %v5118_v12, %s4105_s20 }
 0x374   : > { %2196 = vrot.lane.b32.xlu1 %v5124_v7, %s4104_s8 }
 0x376   : > { %1604 = vrot.lane.b32.xlu0 %v5058_v36, %s4104_s8 }
 0x378   : > { %2244 = vrot.lane.b32.xlu1 %v5056_v3, %s4105_s20 }
 0x37a   : > { %1652 = vrot.lane.b32.xlu0 %v5138_v1, %s4104_s8 }
 0x37c   : > { %2292 = vrot.lane.b32.xlu1 %v5124_v7, %s4105_s20 }
 0x37e   : > { %1700 = vrot.lane.b32.xlu0 %v5058_v36, %s4105_s20 }
 0x380   : > { %1606 = vrot.lane.b32.xlu1 %v5062_v8, %s4104_s8 }
 0x382   : > { %1748 = vrot.lane.b32.xlu0 %v5138_v1, %s4105_s20 }
 0x384   : > { %1654 = vrot.lane.b32.xlu1 %v5144_v30, %s4104_s8  ;;  %v1597_v63 = vpop.permute.xlu0 %1596 }
 0x386   : > { %2150 = vrot.lane.b32.xlu0 %v5060_v11, %s4104_s8  ;;  %v1599_v62 = vpop.permute.xlu1 %1598 }
 0x388   : > { %1702 = vrot.lane.b32.xlu1 %v5062_v8, %s4105_s20 }
 0x38a   : > { %2198 = vrot.lane.b32.xlu0 %v5142_v33, %s4104_s8 }
 0x38c   : > { %1750 = vrot.lane.b32.xlu1 %v5144_v30, %s4105_s20 }
 0x38e   : > { %2246 = vrot.lane.b32.xlu0 %v5060_v11, %s4105_s20 }
 0x390   : > { %2152 = vrot.lane.b32.xlu1 %v5064_v22, %s4104_s8 }
 0x392   : > { %2294 = vrot.lane.b32.xlu0 %v5142_v33, %s4105_s20 }
 0x394   : > { %2200 = vrot.lane.b32.xlu1 %v5148_v50, %s4104_s8 }
 0x396   : > { %1608 = vrot.lane.b32.xlu0 %v5066_v5, %s4104_s8 }
 0x398   : > { %2248 = vrot.lane.b32.xlu1 %v5064_v22, %s4105_s20 }
 0x39c   : > { %2296 = vrot.lane.b32.xlu1 %v5148_v50, %s4105_s20 }
 0x3a0   : > { %1610 = vrot.lane.b32.xlu1 %v5070_v51, %s4104_s8 }
 0x3a9   : > { %v5250_v61 = vpop.f32.mrb[44].mxu0 }
 0x3aa   : > { %6135 = vst [vmem:[#allocation49_spill] sm:$0xff] %v5250_v61  ;;  %v5252_v39 = vpop.f32.mrb[45].mxu0 }
 0x3ab   : > { %6136 = vst [vmem:[#allocation50_spill] sm:$0xff] %v5252_v39  ;;  %v5254_v31 = vpop.f32.mrb[46].mxu0  ;;  %v5269_v39 = vld [vmem:[%s5266_s9] sm:$0xff]  }
 0x3ac   : > { %6137 = vst [vmem:[#allocation51_spill] sm:$0xff] %v5254_v31  ;;  %v5256_v35 = vpop.f32.mrb[47].mxu0  ;;  %v6142_v31 = vunpack.c.l.bf16 %v5259_v37  ;;  %v6147_v33 = vunpack.c.l.bf16 %v5269_v39  ;;  %v6149_v34 = vunpack.c.h.bf16 %v5269_v39 }
 0x3ad   : > { %6138 = vst [vmem:[#allocation52_spill] sm:$0xff] %v5256_v35 }
 0x3b0   : > { %v1645_v57 = vpop.permute.xlu0 %1644 }
 0x3b1   : > { %v5271_v61 = vpop.f32.mrb[12].mxu1 }
 0x3b2   : > { %v1647_v56 = vpop.permute.xlu1 %1646  ;;  %1656 = vrot.lane.b32.xlu0 %v5271_v61, %s4104_s8  ;;  %v5280_v14 = vpop.f32.mrb[13].mxu1 }
 0x3b3   : > { %v5290_v46 = vmul.f32 %v6142_v31, %v5280_v14  ;;  %v5292_v35 = vpop.f32.mrb[14].mxu1  ;;  %v6144_v31 = vunpack.c.h.bf16 %v5259_v37  ;;  %v6152_v37 = vunpack.c.h.bf16 %v5276_v16 }
 0x3b4   : > { %1658 = vrot.lane.b32.xlu1 %v5292_v35, %s4104_s8  ;;  %v5300_v50 = vpop.f32.mrb[15].mxu1  ;;  %v1693_v41 = vpop.permute.xlu0 %1692 }
 0x3b5   : > { %6143 = vst [vmem:[#allocation54_spill] sm:$0xff] %v5290_v46  ;;  %v5307_v46 = vmul.f32 %v6144_v31, %v5300_v50  ;;  %v1790_v22 = vsel %vm5283_vm0, %v1597_v63, %v1693_v41  ;;  %v6148_v63 = vunpack.c.h.bf16 %v5262_v19  ;;  %v6150_v31 = vunpack.c.l.bf16 %v5276_v16 }
 0x3b6   : > { %v1854_v13 = vmul.f32 %v6147_v33, %v1790_v22  ;;  %v1695_v52 = vpop.permute.xlu1 %1694  ;;  %1704 = vrot.lane.b32.xlu0 %v5066_v5, %s4105_s20 }
 0x3b7   : > { %6145 = vst [vmem:[#allocation55_spill] sm:$0xff] %v5307_v46  ;;  %v1791_v54 = vsel %vm5283_vm0, %v1599_v62, %v1695_v52  ;;  %v1823_v41 = vmul.f32 %v6148_v63, %v5042_v40  ;;  %v1846_v55 = vmul.f32 %v6150_v31, %v5090_v49  ;;  %v1847_v49 = vmul.f32 %v6152_v37, %v5096_v47 }
 0x3b8   : > { %v1886_v46 = vadd.f32 %v1854_v13, %v1822_v4  ;;  %v1855_v18 = vmul.f32 %v6149_v34, %v1791_v54  ;;  %1706 = vrot.lane.b32.xlu1 %v5070_v51, %s4105_s20  ;;  %v1741_v22 = vpop.permute.xlu0 %1740  ;;  %v6151_v4 = vunpack.c.l.bf16 %v5295_v17 }
 0x3b9   : > { %v1814_v52 = vsel %vm5283_vm0, %v1645_v57, %v1741_v22  ;;  %v3486_v62 = vpop.f32.mrb[16].mxu1 }
 0x3ba   : > { %v1918_v40 = vmul.f32 0.17677669, %v1886_v46  ;;  %v1887_v13 = vadd.f32 %v1855_v18, %v1823_v41  ;;  %v1878_v54 = vmul.f32 %v6151_v4, %v1814_v52  ;;  %v3177_v63 = vpack.c.bf16 %v3486_v62, %v3486_v62  ;;  %v1743_v34 = vpop.permute.xlu1 %1742  ;;  %1752 = vrot.lane.b32.xlu0 %v5271_v61, %s4105_s20  ;;  %v1305_v33 = vpop.f32.mrb[17].mxu1 }
 0x3bb   : > { %v1815_v57 = vsel %vm5283_vm0, %v1647_v56, %v1743_v34  ;;  %v3175_v31 = vpack.c.bf16 %v1305_v33, %v1305_v33  ;;  %v3487_v22 = vpop.f32.mrb[18].mxu1  ;;  %v6153_v52 = vunpack.c.h.bf16 %v5295_v17 }
 0x3bc   : > { %v3111_v46 = vpack.c.bf16 %v1918_v40, %v1918_v40  ;;  %v1919_v41 = vmul.f32 0.17677669, %v1887_v13  ;;  %v1910_v18 = vadd.f32 %v1878_v54, %v1846_v55  ;;  %2752 = vst [vmem:[%s5347_s24 + $0x20] sm:$0xf] %v3177_v63  ;;  %1754 = vrot.lane.b32.xlu1 %v5292_v35, %s4105_s20  ;;  %v1308_v37 = vpop.f32.mrb[19].mxu1  ;;  %v2143_v56 = vpop.permute.xlu0 %2142  ;;  %v3178_v55 = vpack.c.bf16 %v3487_v22, %v3487_v22 }
 0x3bd   : > { %v1879_v47 = vmul.f32 %v6153_v52, %v1815_v57  ;;  %2750 = vst [vmem:[%s5347_s24 + $0x8] sm:$0xf] %v3175_v31  ;;  %v3176_v33 = vpack.c.bf16 %v1308_v37, %v1308_v37 }
 0x3be   : > { %2078 = vst [vmem:[%s5347_s24] sm:$0xf] %v3111_v46  ;;  %v3112_v62 = vpack.c.bf16 %v1919_v41, %v1919_v41  ;;  %v1942_v40 = vmul.f32 0.17677669, %v1910_v18  ;;  %v2145_v4 = vpop.permute.xlu1 %2144  ;;  %2154 = vrot.lane.b32.xlu0 %v5068_v59, %s4104_s8  ;;  %2753 = vst [vmem:[%s5347_s24 + $0x2c] sm:$0xf] %v3178_v55 }
 0x3bf   : > { %v1911_v13 = vadd.f32 %v1879_v47, %v1847_v49  ;;  %2751 = vst [vmem:[%s5347_s24 + $0x14] sm:$0xf] %v3176_v33 }
 0x3c0   : > { %2079 = vst [vmem:[%s5347_s24 + $0xc] sm:$0xf] %v3112_v62  ;;  %v3135_v54 = vpack.c.bf16 %v1942_v40, %v1942_v40  ;;  %2156 = vrot.lane.b32.xlu1 %v5072_v26, %s4104_s8  ;;  %v2191_v34 = vpop.permute.xlu0 %2190  ;;  %v6154_v62 = vunpack.c.l.bf16 %v5262_v19 }
 0x3c1   : > { %v1943_v63 = vmul.f32 0.17677669, %v1911_v13  ;;  %v3490_v57 = vpop.f32.mrb[20].mxu1  ;;  %v6155_v13 = vunpack.c.l.bf16 %v5269_v39 }
 0x3c2   : > { %2102 = vst [vmem:[%s5347_s24 + $0x120] sm:$0xf] %v3135_v54  ;;  %v3181_v49 = vpack.c.bf16 %v3490_v57, %v3490_v57  ;;  %v2193_v22 = vpop.permute.xlu1 %2192  ;;  %2202 = vrot.lane.b32.xlu0 %v5280_v14, %s4104_s8  ;;  %v1321_v46 = vpop.f32.mrb[21].mxu1  ;;  %v2366_v40 = vmul.f32 %v6154_v62, %v5038_v25  ;;  %v6157_v25 = vunpack.c.h.bf16 %v5269_v39  ;;  %v6159_v39 = vunpack.c.l.bf16 %v5295_v17 }
 0x3c3   : > { %v3136_v31 = vpack.c.bf16 %v1943_v63, %v1943_v63  ;;  %v3179_v41 = vpack.c.bf16 %v1321_v46, %v1321_v46  ;;  %v3491_v18 = vpop.f32.mrb[22].mxu1 }
 0x3c4   : > { %2756 = vst [vmem:[%s5347_s24 + $0x50] sm:$0xf] %v3181_v49  ;;  %v3182_v52 = vpack.c.bf16 %v3491_v18, %v3491_v18  ;;  %2204 = vrot.lane.b32.xlu1 %v5300_v50, %s4104_s8  ;;  %v1324_v47 = vpop.f32.mrb[23].mxu1  ;;  %v2239_v37 = vpop.permute.xlu0 %2238  ;;  %v6158_v18 = vunpack.c.l.bf16 %v5276_v16 }
 0x3c5   : > { %2103 = vst [vmem:[%s5347_s24 + $0x12c] sm:$0xf] %v3136_v31  ;;  %2754 = vst [vmem:[%s5347_s24 + $0x38] sm:$0xf] %v3179_v41  ;;  %v3180_v55 = vpack.c.bf16 %v1324_v47, %v1324_v47  ;;  %v2334_v33 = vsel %vm5283_vm0, %v2143_v56, %v2239_v37  ;;  %v6156_v31 = vunpack.c.h.bf16 %v5262_v19 }
 0x3c6   : > { %2757 = vst [vmem:[%s5347_s24 + $0x5c] sm:$0xf] %v3182_v52  ;;  %v2398_v54 = vmul.f32 %v6155_v13, %v2334_v33  ;;  %v2241_v63 = vpop.permute.xlu1 %2240  ;;  %2250 = vrot.lane.b32.xlu0 %v5068_v59, %s4105_s20  ;;  %v2390_v52 = vmul.f32 %v6158_v18, %v5094_v15  ;;  %v6160_v15 = vunpack.c.h.bf16 %v5276_v16  ;;  %v5420_v18 = vld [vmem:[%s4522_s2 + $0x68] sm:$0xff]  }
 0x3c7   : > { %2755 = vst [vmem:[%s5347_s24 + $0x44] sm:$0xf] %v3180_v55  ;;  %v2335_v57 = vsel %vm5283_vm0, %v2145_v4, %v2241_v63  ;;  %v2367_v56 = vmul.f32 %v6156_v31, %v5046_v28 }
 0x3c8   : > { %v2430_v49 = vadd.f32 %v2398_v54, %v2366_v40  ;;  %v2399_v46 = vmul.f32 %v6157_v25, %v2335_v57  ;;  %2252 = vrot.lane.b32.xlu1 %v5072_v26, %s4105_s20  ;;  %v2287_v41 = vpop.permute.xlu0 %2286  ;;  %v5401_v40 = vld [vmem:[%s4522_s2 + $0x8] sm:$0xff]  }
 0x3c9   : > { %v2358_v4 = vsel %vm5283_vm0, %v2191_v34, %v2287_v41  ;;  %v3494_v19 = vpop.f32.mrb[24].mxu1  ;;  %v2391_v34 = vmul.f32 %v6160_v15, %v5100_v58  ;;  %v5409_v57 = vld [vmem:[%s5266_s9 + $0x8] sm:$0xff]   ;;  %v3277_v41 = vunpack.c.l.bf16 %v5401_v40 }
 0x3ca   : > { %v3143_v47 = vpack.c.bf16 %v2430_v49, %v2430_v49  ;;  %v2431_v28 = vadd.f32 %v2399_v46, %v2367_v56  ;;  %v2422_v37 = vmul.f32 %v6159_v39, %v2358_v4  ;;  %v3185_v55 = vpack.c.bf16 %v3494_v19, %v3494_v19  ;;  %v2289_v33 = vpop.permute.xlu1 %2288  ;;  %1612 = vrot.lane.b32.xlu0 %v5074_v9, %s4104_s8  ;;  %v1337_v62 = vpop.f32.mrb[25].mxu1 }
 0x3cb   : > { %v2359_v13 = vsel %vm5283_vm0, %v2193_v22, %v2289_v33  ;;  %v3183_v54 = vpack.c.bf16 %v1337_v62, %v1337_v62  ;;  %v3495_v63 = vpop.f32.mrb[26].mxu1  ;;  %v6161_v49 = vunpack.c.h.bf16 %v5295_v17  ;;  %v3341_v19 = vunpack.c.l.bf16 %v5409_v57 }
 0x3cc   : > { %2590 = vst [vmem:[%s5347_s24 + $0x4] sm:$0xf] %v3143_v47  ;;  %v3144_v31 = vpack.c.bf16 %v2431_v28, %v2431_v28  ;;  %v2454_v56 = vadd.f32 %v2422_v37, %v2390_v52  ;;  %2760 = vst [vmem:[%s5347_s24 + $0x80] sm:$0xf] %v3185_v55  ;;  %v3186_v16 = vpack.c.bf16 %v3495_v63, %v3495_v63  ;;  %1614 = vrot.lane.b32.xlu1 %v5078_v44, %s4104_s8  ;;  %v1340_v58 = vpop.f32.mrb[27].mxu1  ;;  %v1649_v22 = vpop.permute.xlu0 %1648  ;;  %v5429_v47 = vld [vmem:[%s5266_s9 + $0x68] sm:$0xff]  }
 0x3cd   : > { %v2423_v25 = vmul.f32 %v6161_v49, %v2359_v13  ;;  %2758 = vst [vmem:[%s5347_s24 + $0x68] sm:$0xf] %v3183_v54  ;;  %v3184_v46 = vpack.c.bf16 %v1340_v58, %v1340_v58  ;;  %v3325_v37 = vunpack.c.l.bf16 %v5420_v18  ;;  %v1824_v62 = vmul.f32 %v3277_v41, %v5050_v53 }
 0x3ce   : > { %2591 = vst [vmem:[%s5347_s24 + $0x10] sm:$0xf] %v3144_v31  ;;  %v3167_v52 = vpack.c.bf16 %v2454_v56, %v2454_v56  ;;  %2761 = vst [vmem:[%s5347_s24 + $0x8c] sm:$0xf] %v3186_v16  ;;  %v1601_v4 = vpop.permute.xlu1 %1600  ;;  %1708 = vrot.lane.b32.xlu0 %v5074_v9, %s4105_s20  ;;  %v3389_v63 = vunpack.c.l.bf16 %v5429_v47 }
 0x3cf   : > { %v2455_v17 = vadd.f32 %v2423_v25, %v2391_v34  ;;  %2759 = vst [vmem:[%s5347_s24 + $0x74] sm:$0xf] %v3184_v46 }
 0x3d0   : > { %2614 = vst [vmem:[%s5347_s24 + $0x124] sm:$0xf] %v3167_v52  ;;  %1710 = vrot.lane.b32.xlu1 %v5078_v44, %s4105_s20  ;;  %v1697_v39 = vpop.permute.xlu0 %1696  ;;  %v1848_v52 = vmul.f32 %v3325_v37, %v5114_v21  ;;  %v3342_v21 = vunpack.c.h.bf16 %v5409_v57 }
 0x3d1   : > { %v3168_v28 = vpack.c.bf16 %v2455_v17, %v2455_v17  ;;  %v1792_v55 = vsel %vm5283_vm0, %v1601_v4, %v1697_v39  ;;  %v3498_v33 = vpop.f32.mrb[28].mxu1  ;;  %v3278_v39 = vunpack.c.h.bf16 %v5401_v40 }
 0x3d2   : > { %v1856_v15 = vmul.f32 %v3341_v19, %v1792_v55  ;;  %v3189_v34 = vpack.c.bf16 %v3498_v33, %v3498_v33  ;;  %v1603_v13 = vpop.permute.xlu1 %1602  ;;  %2158 = vrot.lane.b32.xlu0 %v5076_v60, %s4104_s8  ;;  %v1353_v54 = vpop.f32.mrb[29].mxu1 }
 0x3d3   : > { %2615 = vst [vmem:[%s5347_s24 + $0x130] sm:$0xf] %v3168_v28  ;;  %v3187_v31 = vpack.c.bf16 %v1353_v54, %v1353_v54  ;;  %v3499_v56 = vpop.f32.mrb[30].mxu1 }
 0x3d4   : > { %v1888_v49 = vadd.f32 %v1856_v15, %v1824_v62  ;;  %2764 = vst [vmem:[%s5347_s24 + $0xb0] sm:$0xf] %v3189_v34  ;;  %v3190_v53 = vpack.c.bf16 %v3499_v56, %v3499_v56  ;;  %2160 = vrot.lane.b32.xlu1 %v5080_v0, %s4104_s8  ;;  %v1356_v25 = vpop.f32.mrb[31].mxu1  ;;  %v1745_v16 = vpop.permute.xlu0 %1744  ;;  %v1825_v56 = vmul.f32 %v3278_v39, %v5054_v6 }
 0x3d5   : > { %2762 = vst [vmem:[%s5347_s24 + $0x98] sm:$0xf] %v3187_v31  ;;  %v3188_v58 = vpack.c.bf16 %v1356_v25, %v1356_v25  ;;  %v1816_v46 = vsel %vm5283_vm0, %v1649_v22, %v1745_v16 }
 0x3d6   : > { %v1920_v17 = vmul.f32 0.17677669, %v1888_v49  ;;  %2765 = vst [vmem:[%s5347_s24 + $0xbc] sm:$0xf] %v3190_v53  ;;  %v1880_v4 = vmul.f32 %v3389_v63, %v1816_v46  ;;  %v1651_v28 = vpop.permute.xlu1 %1650  ;;  %2254 = vrot.lane.b32.xlu0 %v5076_v60, %s4105_s20  ;;  %v3326_v49 = vunpack.c.h.bf16 %v5420_v18 }
 0x3d7   : > { %2763 = vst [vmem:[%s5347_s24 + $0xa4] sm:$0xf] %v3188_v58 }
 0x3d8   : > { %v3113_v55 = vpack.c.bf16 %v1920_v17, %v1920_v17  ;;  %v1912_v33 = vadd.f32 %v1880_v4, %v1848_v52  ;;  %2256 = vrot.lane.b32.xlu1 %v5080_v0, %s4105_s20  ;;  %v2147_v22 = vpop.permute.xlu0 %2146  ;;  %v3390_v4 = vunpack.c.h.bf16 %v5429_v47 }
 0x3d9   : > { %v3502_v62 = vpop.f32.mrb[32].mxu1 }
 0x3da   : > { %2080 = vst [vmem:[%s5347_s24 + $0x18] sm:$0xf] %v3113_v55  ;;  %v1944_v15 = vmul.f32 0.17677669, %v1912_v33  ;;  %v3193_v34 = vpack.c.bf16 %v3502_v62, %v3502_v62  ;;  %v1699_v54 = vpop.permute.xlu1 %1698  ;;  %1616 = vrot.lane.b32.xlu0 %v5082_v2, %s4104_s8  ;;  %v1369_v31 = vpop.f32.mrb[33].mxu1 }
 0x3db   : > { %v1793_v53 = vsel %vm5283_vm0, %v1603_v13, %v1699_v54  ;;  %v3191_v25 = vpack.c.bf16 %v1369_v31, %v1369_v31  ;;  %v3503_v16 = vpop.f32.mrb[34].mxu1 }
 0x3dc   : > { %v3137_v58 = vpack.c.bf16 %v1944_v15, %v1944_v15  ;;  %2768 = vst [vmem:[%s5347_s24 + $0xe0] sm:$0xf] %v3193_v34  ;;  %v1857_v46 = vmul.f32 %v3342_v21, %v1793_v53  ;;  %v3194_v52 = vpack.c.bf16 %v3503_v16, %v3503_v16  ;;  %1618 = vrot.lane.b32.xlu1 %v5086_v38, %s4104_s8  ;;  %v1372_v17 = vpop.f32.mrb[35].mxu1  ;;  %v2195_v6 = vpop.permute.xlu0 %2194 }
 0x3dd   : > { %2766 = vst [vmem:[%s5347_s24 + $0xc8] sm:$0xf] %v3191_v25  ;;  %v3192_v55 = vpack.c.bf16 %v1372_v17, %v1372_v17  ;;  %v1849_v15 = vmul.f32 %v3326_v49, %v5120_v10 }
 0x3de   : > { %2104 = vst [vmem:[%s5347_s24 + $0x138] sm:$0xf] %v3137_v58  ;;  %v1889_v13 = vadd.f32 %v1857_v46, %v1825_v56  ;;  %2769 = vst [vmem:[%s5347_s24 + $0xec] sm:$0xf] %v3194_v52  ;;  %v1747_v33 = vpop.permute.xlu1 %1746  ;;  %1712 = vrot.lane.b32.xlu0 %v5082_v2, %s4105_s20  ;;  %v2368_v56 = vmul.f32 %v3277_v41, %v5052_v48 }
 0x3df   : > { %2767 = vst [vmem:[%s5347_s24 + $0xd4] sm:$0xf] %v3192_v55  ;;  %v1817_v62 = vsel %vm5283_vm0, %v1651_v28, %v1747_v33 }
 0x3e0   : > { %v1921_v34 = vmul.f32 0.17677669, %v1889_v13  ;;  %v1881_v54 = vmul.f32 %v3390_v4, %v1817_v62  ;;  %1714 = vrot.lane.b32.xlu1 %v5086_v38, %s4105_s20  ;;  %v2243_v31 = vpop.permute.xlu0 %2242 }
 0x3e1   : > { %v2336_v28 = vsel %vm5283_vm0, %v2147_v22, %v2243_v31  ;;  %v3506_v53 = vpop.f32.mrb[36].mxu1 }
 0x3e2   : > { %v3114_v25 = vpack.c.bf16 %v1921_v34, %v1921_v34  ;;  %v1913_v10 = vadd.f32 %v1881_v54, %v1849_v15  ;;  %v2400_v16 = vmul.f32 %v3341_v19, %v2336_v28  ;;  %v3197_v58 = vpack.c.bf16 %v3506_v53, %v3506_v53  ;;  %v2149_v46 = vpop.permute.xlu1 %2148  ;;  %2162 = vrot.lane.b32.xlu0 %v5084_v29, %s4104_s8  ;;  %v1385_v52 = vpop.f32.mrb[37].mxu1  ;;  %v5525_v28 = vld [vmem:[%s4522_s2 + $0x10] sm:$0xff]  }
 0x3e3   : > { %v3195_v17 = vpack.c.bf16 %v1385_v52, %v1385_v52  ;;  %v3507_v55 = vpop.f32.mrb[38].mxu1  ;;  %v2392_v15 = vmul.f32 %v3325_v37, %v5118_v12 }
 0x3e4   : > { %2081 = vst [vmem:[%s5347_s24 + $0x24] sm:$0xf] %v3114_v25  ;;  %v1945_v48 = vmul.f32 0.17677669, %v1913_v10  ;;  %v2432_v41 = vadd.f32 %v2400_v16, %v2368_v56  ;;  %2772 = vst [vmem:[%s5347_s24 + $0x110] sm:$0xf] %v3197_v58  ;;  %v3198_v22 = vpack.c.bf16 %v3507_v55, %v3507_v55  ;;  %2164 = vrot.lane.b32.xlu1 %v5088_v45, %s4104_s8  ;;  %v2291_v13 = vpop.permute.xlu0 %2290 }
 0x3e5   : > { %v1388_v19 = vpop.f32.mrb[39].mxu1  ;;  %2770 = vst [vmem:[%s5347_s24 + $0xf8] sm:$0xf] %v3195_v17  ;;  %v2360_v62 = vsel %vm5283_vm0, %v2195_v6, %v2291_v13  ;;  %v5532_v17 = vld [vmem:[%s5266_s9 + $0x10] sm:$0xff]   ;;  %v2369_v55 = vmul.f32 %v3278_v39, %v5056_v3 }
 0x3e6   : > { %v3196_v33 = vpack.c.bf16 %v1388_v19, %v1388_v19  ;;  %v3138_v34 = vpack.c.bf16 %v1945_v48, %v1945_v48  ;;  %v3145_v54 = vpack.c.bf16 %v2432_v41, %v2432_v41  ;;  %2773 = vst [vmem:[%s5347_s24 + $0x11c] sm:$0xf] %v3198_v22  ;;  %v2424_v31 = vmul.f32 %v3389_v63, %v2360_v62  ;;  %v2197_v56 = vpop.permute.xlu1 %2196 }
 0x3e7   : > { %2258 = vrot.lane.b32.xlu0 %v5084_v29, %s4105_s20  ;;  %v3281_v19 = vunpack.c.l.bf16 %v5525_v28  ;;  %v3345_v57 = vunpack.c.l.bf16 %v5532_v17  ;;  %v2393_v62 = vmul.f32 %v3326_v49, %v5124_v7 }
 0x3e8   : > { %2771 = vst [vmem:[%s5347_s24 + $0x104] sm:$0xf] %v3196_v33  ;;  %2105 = vst [vmem:[%s5347_s24 + $0x144] sm:$0xf] %v3138_v34  ;;  %v2456_v6 = vadd.f32 %v2424_v31, %v2392_v15  ;;  %2260 = vrot.lane.b32.xlu1 %v5088_v45, %s4105_s20  ;;  %v1605_v12 = vpop.permute.xlu0 %1604  ;;  %v5546_v33 = vld [vmem:[%s4522_s2 + $0x70] sm:$0xff]  }
 0x3e9   : > { %2592 = vst [vmem:[%s5347_s24 + $0x1c] sm:$0xf] %v3145_v54  ;;  %v3510_v37 = vpop.f32.mrb[40].mxu1  ;;  %v1826_v31 = vmul.f32 %v3281_v19, %v5058_v36 }
 0x3ea   : > { %v3169_v53 = vpack.c.bf16 %v2456_v6, %v2456_v6  ;;  %v3201_v63 = vpack.c.bf16 %v3510_v37, %v3510_v37  ;;  %v2245_v25 = vpop.permute.xlu1 %2244  ;;  %v1401_v10 = vpop.f32.mrb[41].mxu1 }
 0x3eb   : > { %1620 = vrot.lane.b32.xlu0 %v5102_v42, %s4104_s8  ;;  %v2337_v16 = vsel %vm5283_vm0, %v2149_v46, %v2245_v25  ;;  %v3199_v58 = vpack.c.bf16 %v1401_v10, %v1401_v10  ;;  %v3511_v52 = vpop.f32.mrb[42].mxu1 }
 0x3ec   : > { %2616 = vst [vmem:[%s5347_s24 + $0x13c] sm:$0xf] %v3169_v53  ;;  %2776 = vst [vmem:[%s5347_s24 + $0x140] sm:$0xf] %v3201_v63  ;;  %v2401_v48 = vmul.f32 %v3342_v21, %v2337_v16  ;;  %v3202_v41 = vpack.c.bf16 %v3511_v52, %v3511_v52  ;;  %1622 = vrot.lane.b32.xlu1 %v5108_v20, %s4104_s8  ;;  %v1404_v46 = vpop.f32.mrb[43].mxu1  ;;  %v1653_v22 = vpop.permute.xlu0 %1652  ;;  %v5556_v21 = vld [vmem:[%s5266_s9 + $0x70] sm:$0xff]  }
 0x3ed   : > { %2774 = vst [vmem:[%s5347_s24 + $0x128] sm:$0xf] %v3199_v58  ;;  %v3200_v13 = vpack.c.bf16 %v1404_v46, %v1404_v46  ;;  %v3393_v37 = vunpack.c.l.bf16 %v5556_v21 }
 0x3ee   : > { %v2433_v3 = vadd.f32 %v2401_v48, %v2369_v55  ;;  %2777 = vst [vmem:[%s5347_s24 + $0x14c] sm:$0xf] %v3202_v41  ;;  %v2293_v40 = vpop.permute.xlu1 %2292 }
 0x3ef   : > { %1716 = vrot.lane.b32.xlu0 %v5102_v42, %s4105_s20  ;;  %2775 = vst [vmem:[%s5347_s24 + $0x134] sm:$0xf] %v3200_v13  ;;  %v2361_v39 = vsel %vm5283_vm0, %v2197_v56, %v2293_v40  ;;  %v3329_v56 = vunpack.c.l.bf16 %v5546_v33 }
 0x3f0   : > { %v3146_v15 = vpack.c.bf16 %v2433_v3, %v2433_v3  ;;  %v2425_v34 = vmul.f32 %v3390_v4, %v2361_v39  ;;  %1718 = vrot.lane.b32.xlu1 %v5108_v20, %s4105_s20  ;;  %v1701_v54 = vpop.permute.xlu0 %1700  ;;  %v3282_v3 = vunpack.c.h.bf16 %v5525_v28  ;;  %v6164_v28 = vld [vmem:[#allocation35_spill] sm:$0xff] }
 0x3f1   : > { %v1794_v6 = vsel %vm5283_vm0, %v1605_v12, %v1701_v54  ;;  %v3514_v18 = vpop.f32.mrb[44].mxu1  ;;  %v1850_v48 = vmul.f32 %v3329_v56, %v5138_v1 }
 0x3f2   : > { %2593 = vst [vmem:[%s5347_s24 + $0x28] sm:$0xf] %v3146_v15  ;;  %v2457_v7 = vadd.f32 %v2425_v34, %v2393_v62  ;;  %v1858_v47 = vmul.f32 %v3345_v57, %v1794_v6  ;;  %v3205_v49 = vpack.c.bf16 %v3514_v18, %v3514_v18  ;;  %v1607_v4 = vpop.permute.xlu1 %1606  ;;  %v1417_v36 = vpop.f32.mrb[45].mxu1  ;;  %v3330_v34 = vunpack.c.h.bf16 %v5546_v33 }
 0x3f3   : > { %2166 = vrot.lane.b32.xlu0 %v5104_v43, %s4104_s8  ;;  %v3203_v53 = vpack.c.bf16 %v1417_v36, %v1417_v36  ;;  %v3515_v63 = vpop.f32.mrb[46].mxu1 }
 0x3f4   : > { %v3170_v12 = vpack.c.bf16 %v2457_v7, %v2457_v7  ;;  %v1890_v25 = vadd.f32 %v1858_v47, %v1826_v31  ;;  %2780 = vst [vmem:[%s5347_s24 + $0x170] sm:$0xf] %v3205_v49  ;;  %v3206_v10 = vpack.c.bf16 %v3515_v63, %v3515_v63  ;;  %2168 = vrot.lane.b32.xlu1 %v5110_v32, %s4104_s8  ;;  %v1420_v16 = vpop.f32.mrb[47].mxu1  ;;  %v1749_v58 = vpop.permute.xlu0 %1748  ;;  %v3394_v47 = vunpack.c.h.bf16 %v5556_v21 }
 0x3f5   : > { %2778 = vst [vmem:[%s5347_s24 + $0x158] sm:$0xf] %v3203_v53  ;;  %v3204_v52 = vpack.c.bf16 %v1420_v16, %v1420_v16  ;;  %v1818_v55 = vsel %vm5283_vm0, %v1653_v22, %v1749_v58  ;;  %v3346_v22 = vunpack.c.h.bf16 %v5532_v17  ;;  %v1827_v31 = vmul.f32 %v3282_v3, %v5062_v8 }
 0x3f6   : > { %2617 = vst [vmem:[%s5347_s24 + $0x148] sm:$0xf] %v3170_v12  ;;  %v1922_v41 = vmul.f32 0.17677669, %v1890_v25  ;;  %2781 = vst [vmem:[%s5347_s24 + $0x17c] sm:$0xf] %v3206_v10  ;;  %v1882_v46 = vmul.f32 %v3393_v37, %v1818_v55  ;;  %v1655_v13 = vpop.permute.xlu1 %1654  ;;  %v1851_v8 = vmul.f32 %v3330_v34, %v5144_v30  ;;  %v2370_v10 = vmul.f32 %v3281_v19, %v5060_v11 }
 0x3f7   : > { %2262 = vrot.lane.b32.xlu0 %v5104_v43, %s4105_s20  ;;  %2779 = vst [vmem:[%s5347_s24 + $0x164] sm:$0xf] %v3204_v52  ;;  %v6162_v55 = vld [vmem:[#allocation33_spill] sm:$0xff]  ;;  %v2394_v17 = vmul.f32 %v3329_v56, %v6164_v28 }
 0x3f8   : > { %v3115_v40 = vpack.c.bf16 %v1922_v41, %v1922_v41  ;;  %v1914_v39 = vadd.f32 %v1882_v46, %v1850_v48  ;;  %2264 = vrot.lane.b32.xlu1 %v5110_v32, %s4105_s20  ;;  %v2151_v1 = vpop.permute.xlu0 %2150  ;;  %v6163_v46 = vld [vmem:[#allocation34_spill] sm:$0xff]  ;;  %v6165_v56 = vld [vmem:[#allocation37_spill] sm:$0xff] }
 0x3fa   : > { %2082 = vst [vmem:[%s5347_s24 + $0x30] sm:$0xf] %v3115_v40  ;;  %v1946_v62 = vmul.f32 0.17677669, %v1914_v39  ;;  %v1703_v15 = vpop.permute.xlu1 %1702 }
 0x3fb   : > { %1624 = vrot.lane.b32.xlu0 %v5126_v24, %s4104_s8  ;;  %v1795_v54 = vsel %vm5283_vm0, %v1607_v4, %v1703_v15 }
 0x3fc   : > { %v3139_v6 = vpack.c.bf16 %v1946_v62, %v1946_v62  ;;  %v1859_v18 = vmul.f32 %v3346_v22, %v1795_v54  ;;  %1626 = vrot.lane.b32.xlu1 %v5132_v27, %s4104_s8  ;;  %v2199_v7 = vpop.permute.xlu0 %2198 }
 0x3fe   : > { %2106 = vst [vmem:[%s5347_s24 + $0x150] sm:$0xf] %v3139_v6  ;;  %v1891_v49 = vadd.f32 %v1859_v18, %v1827_v31  ;;  %v1751_v36 = vpop.permute.xlu1 %1750  ;;  %v6167_v31 = vld [vmem:[#allocation39_spill] sm:$0xff] }
 0x3ff   : > { %1720 = vrot.lane.b32.xlu0 %v5126_v24, %s4105_s20  ;;  %v1819_v4 = vsel %vm5283_vm0, %v1655_v13, %v1751_v36 }
 0x400   : > { %v1923_v53 = vmul.f32 0.17677669, %v1891_v49  ;;  %v1883_v63 = vmul.f32 %v3394_v47, %v1819_v4  ;;  %1722 = vrot.lane.b32.xlu1 %v5132_v27, %s4105_s20  ;;  %v2247_v12 = vpop.permute.xlu0 %2246  ;;  %v6168_v49 = vld [vmem:[#allocation36_spill] sm:$0xff] }
 0x401   : > { %v2338_v25 = vsel %vm5283_vm0, %v2151_v1, %v2247_v12  ;;  %v2395_v36 = vmul.f32 %v3330_v34, %v6168_v49  ;;  %v6171_v34 = vld [vmem:[#allocation41_spill] sm:$0xff] }
 0x402   : > { %v3116_v16 = vpack.c.bf16 %v1923_v53, %v1923_v53  ;;  %v1915_v58 = vadd.f32 %v1883_v63, %v1851_v8  ;;  %v2402_v52 = vmul.f32 %v3345_v57, %v2338_v25  ;;  %v2153_v30 = vpop.permute.xlu1 %2152  ;;  %v6170_v63 = vld [vmem:[#allocation40_spill] sm:$0xff]  ;;  %v6177_v49 = vld [vmem:[#allocation53_spill] sm:$0xff] }
 0x403   : > { %2170 = vrot.lane.b32.xlu0 %v6162_v55, %s4104_s8 }
 0x404   : > { %2083 = vst [vmem:[%s5347_s24 + $0x3c] sm:$0xf] %v3116_v16  ;;  %v1947_v48 = vmul.f32 0.17677669, %v1915_v58  ;;  %v2434_v41 = vadd.f32 %v2402_v52, %v2370_v10  ;;  %2172 = vrot.lane.b32.xlu1 %v6163_v46, %s4104_s8  ;;  %v2295_v13 = vpop.permute.xlu0 %2294  ;;  %v6173_v10 = vld [vmem:[#allocation42_spill] sm:$0xff]  ;;  %v5676_v16 = vld [vmem:[%s4522_s2 + $0x18] sm:$0xff]  }
 0x405   : > { %v2362_v11 = vsel %vm5283_vm0, %v2199_v7, %v2295_v13  ;;  %v5679_v58 = vld [vmem:[%s5266_s9 + $0x18] sm:$0xff]   ;;  %v6174_v52 = vld [vmem:[#allocation44_spill] sm:$0xff]  ;;  %v3286_v28 = vunpack.c.h.bf16 %v5676_v16 }
 0x406   : > { %v3140_v19 = vpack.c.bf16 %v1947_v48, %v1947_v48  ;;  %v3147_v57 = vpack.c.bf16 %v2434_v41, %v2434_v41  ;;  %v2426_v40 = vmul.f32 %v3393_v37, %v2362_v11  ;;  %v2201_v39 = vpop.permute.xlu1 %2200  ;;  %v6166_v37 = vld [vmem:[#allocation32_spill] sm:$0xff]  ;;  %v3285_v48 = vunpack.c.l.bf16 %v5676_v16  ;;  %v5688_v11 = vld [vmem:[%s5266_s9 + $0x78] sm:$0xff]  }
 0x407   : > { %2266 = vrot.lane.b32.xlu0 %v6162_v55, %s4105_s20  ;;  %v2371_v15 = vmul.f32 %v3282_v3, %v6166_v37  ;;  %v3349_v13 = vunpack.c.l.bf16 %v5679_v58  ;;  %v1829_v37 = vmul.f32 %v3286_v28, %v5070_v51 }
 0x408   : > { %2107 = vst [vmem:[%s5347_s24 + $0x15c] sm:$0xf] %v3140_v19  ;;  %2594 = vst [vmem:[%s5347_s24 + $0x34] sm:$0xf] %v3147_v57  ;;  %v2458_v1 = vadd.f32 %v2426_v40, %v2394_v17  ;;  %2268 = vrot.lane.b32.xlu1 %v6163_v46, %s4105_s20  ;;  %v1609_v12 = vpop.permute.xlu0 %1608  ;;  %v3350_v19 = vunpack.c.h.bf16 %v5679_v58  ;;  %v1828_v40 = vmul.f32 %v3285_v48, %v5066_v5  ;;  %v3398_v5 = vunpack.c.h.bf16 %v5688_v11 }
 0x40a   : > { %v3171_v62 = vpack.c.bf16 %v2458_v1, %v2458_v1  ;;  %v2249_v33 = vpop.permute.xlu1 %2248 }
 0x40b   : > { %1628 = vrot.lane.b32.xlu0 %v6165_v56, %s4104_s8  ;;  %v2339_v21 = vsel %vm5283_vm0, %v2153_v30, %v2249_v33  ;;  %v3397_v33 = vunpack.c.l.bf16 %v5688_v11 }
 0x40c   : > { %2618 = vst [vmem:[%s5347_s24 + $0x154] sm:$0xf] %v3171_v62  ;;  %v2403_v54 = vmul.f32 %v3346_v22, %v2339_v21  ;;  %1630 = vrot.lane.b32.xlu1 %v6167_v31, %s4104_s8  ;;  %v6169_v22 = vld [vmem:[#allocation38_spill] sm:$0xff]  ;;  %v6175_v62 = vld [vmem:[#allocation45_spill] sm:$0xff] }
 0x40e   : > { %v2435_v6 = vadd.f32 %v2403_v54, %v2371_v15  ;;  %v2297_v18 = vpop.permute.xlu1 %2296 }
 0x40f   : > { %1724 = vrot.lane.b32.xlu0 %v6165_v56, %s4105_s20  ;;  %v2363_v7 = vsel %vm5283_vm0, %v2201_v39, %v2297_v18 }
 0x410   : > { %v3148_v4 = vpack.c.bf16 %v2435_v6, %v2435_v6  ;;  %v2427_v8 = vmul.f32 %v3394_v47, %v2363_v7  ;;  %1726 = vrot.lane.b32.xlu1 %v6167_v31, %s4105_s20  ;;  %v6172_v47 = vld [vmem:[#allocation43_spill] sm:$0xff] }
 0x411   : > { %v6176_v6 = vld [vmem:[#allocation47_spill] sm:$0xff] }
 0x412   : > { %2595 = vst [vmem:[%s5347_s24 + $0x40] sm:$0xf] %v3148_v4  ;;  %v2459_v3 = vadd.f32 %v2427_v8, %v2395_v36  ;;  %v1611_v25 = vpop.permute.xlu1 %1610  ;;  %v6178_v36 = vunpack.c.l.bf16 %v6177_v49 }
 0x413   : > { %2174 = vrot.lane.b32.xlu0 %v6169_v22, %s4104_s8 }
 0x414   : > { %v3172_v53 = vpack.c.bf16 %v2459_v3, %v2459_v3  ;;  %2176 = vrot.lane.b32.xlu1 %v6170_v63, %s4104_s8  ;;  %v1852_v4 = vmul.f32 %v6178_v36, %v5271_v61 }
 0x416   : > { %2619 = vst [vmem:[%s5347_s24 + $0x160] sm:$0xf] %v3172_v53 }
 0x417   : > { %2270 = vrot.lane.b32.xlu0 %v6169_v22, %s4105_s20 }
 0x418   : > { %2272 = vrot.lane.b32.xlu1 %v6170_v63, %s4105_s20 }
 0x41b   : > { %1632 = vrot.lane.b32.xlu0 %v6171_v34, %s4104_s8 }
 0x41c   : > { %1634 = vrot.lane.b32.xlu1 %v6172_v47, %s4104_s8 }
 0x41f   : > { %1728 = vrot.lane.b32.xlu0 %v6171_v34, %s4105_s20 }
 0x420   : > { %1730 = vrot.lane.b32.xlu1 %v6172_v47, %s4105_s20 }
 0x423   : > { %2178 = vrot.lane.b32.xlu0 %v6173_v10, %s4104_s8 }
 0x424   : > { %2180 = vrot.lane.b32.xlu1 %v6174_v52, %s4104_s8  ;;  %v1657_v30 = vpop.permute.xlu0 %1656 }
 0x426   : > { %v1659_v41 = vpop.permute.xlu1 %1658 }
 0x427   : > { %2274 = vrot.lane.b32.xlu0 %v6173_v10, %s4105_s20 }
 0x428   : > { %2276 = vrot.lane.b32.xlu1 %v6174_v52, %s4105_s20  ;;  %v1705_v17 = vpop.permute.xlu0 %1704 }
 0x429   : > { %v1796_v57 = vsel %vm5283_vm0, %v1609_v12, %v1705_v17  ;;  %v6179_v12 = vunpack.c.h.bf16 %v6177_v49 }
 0x42a   : > { %v1860_v39 = vmul.f32 %v3349_v13, %v1796_v57  ;;  %v1707_v1 = vpop.permute.xlu1 %1706 }
 0x42b   : > { %1636 = vrot.lane.b32.xlu0 %v6175_v62, %s4104_s8  ;;  %v1797_v21 = vsel %vm5283_vm0, %v1611_v25, %v1707_v1  ;;  %v1853_v25 = vmul.f32 %v6179_v12, %v5292_v35 }
 0x42c   : > { %v1892_v15 = vadd.f32 %v1860_v39, %v1828_v40  ;;  %v1861_v54 = vmul.f32 %v3350_v19, %v1797_v21  ;;  %1638 = vrot.lane.b32.xlu1 %v6176_v6, %s4104_s8  ;;  %v1753_v18 = vpop.permute.xlu0 %1752  ;;  %v6180_v21 = vld [vmem:[#allocation46_spill] sm:$0xff] }
 0x42d   : > { %v1820_v7 = vsel %vm5283_vm0, %v1657_v30, %v1753_v18 }
 0x42e   : > { %v1924_v8 = vmul.f32 0.17677669, %v1892_v15  ;;  %v1893_v3 = vadd.f32 %v1861_v54, %v1829_v37  ;;  %v1884_v51 = vmul.f32 %v3397_v33, %v1820_v7  ;;  %v1755_v53 = vpop.permute.xlu1 %1754  ;;  %v6181_v15 = vld [vmem:[#allocation48_spill] sm:$0xff] }
 0x42f   : > { %1732 = vrot.lane.b32.xlu0 %v6175_v62, %s4105_s20  ;;  %v1821_v16 = vsel %vm5283_vm0, %v1659_v41, %v1755_v53  ;;  %v3417_v53 = vld [vmem:[%s4522_s2 + $0x20] sm:$0xff]  }
 0x430   : > { %v3117_v58 = vpack.c.bf16 %v1924_v8, %v1924_v8  ;;  %v1925_v30 = vmul.f32 0.17677669, %v1893_v3  ;;  %v1916_v61 = vadd.f32 %v1884_v51, %v1852_v4  ;;  %v1885_v17 = vmul.f32 %v3398_v5, %v1821_v16  ;;  %1734 = vrot.lane.b32.xlu1 %v6176_v6, %s4105_s20  ;;  %v2155_v57 = vpop.permute.xlu0 %2154  ;;  %v6182_v51 = vld [vmem:[#allocation49_spill] sm:$0xff] }
 0x431   : > { %v2372_v4 = vmul.f32 %v3285_v48, %v5068_v59  ;;  %v2373_v16 = vmul.f32 %v3286_v28, %v5072_v26  ;;  %v3289_v48 = vunpack.c.l.bf16 %v3417_v53 }
 0x432   : > { %2084 = vst [vmem:[%s5347_s24 + $0x48] sm:$0xf] %v3117_v58  ;;  %v3118_v40 = vpack.c.bf16 %v1925_v30, %v1925_v30  ;;  %v1948_v39 = vmul.f32 0.17677669, %v1916_v61  ;;  %v1917_v1 = vadd.f32 %v1885_v17, %v1853_v25  ;;  %v2157_v35 = vpop.permute.xlu1 %2156  ;;  %v3432_v25 = vld [vmem:[%s5266_s9 + $0x20] sm:$0xff]   ;;  %v6183_v61 = vld [vmem:[#allocation51_spill] sm:$0xff] }
 0x433   : > { %2182 = vrot.lane.b32.xlu0 %v6180_v21, %s4104_s8  ;;  %v3354_v28 = vunpack.c.h.bf16 %v3432_v25 }
 0x434   : > { %2085 = vst [vmem:[%s5347_s24 + $0x54] sm:$0xf] %v3118_v40  ;;  %v3141_v41 = vpack.c.bf16 %v1948_v39, %v1948_v39  ;;  %v1949_v37 = vmul.f32 0.17677669, %v1917_v1  ;;  %2184 = vrot.lane.b32.xlu1 %v6181_v15, %s4104_s8  ;;  %v5730_v54 = vpop.permute.xlu0 %2202  ;;  %v3353_v40 = vunpack.c.l.bf16 %v3432_v25  ;;  %v3290_v39 = vunpack.c.h.bf16 %v3417_v53 }
 0x436   : > { %2108 = vst [vmem:[%s5347_s24 + $0x168] sm:$0xf] %v3141_v41  ;;  %v3142_v18 = vpack.c.bf16 %v1949_v37, %v1949_v37  ;;  %v5733_v7 = vpop.permute.xlu1 %2204 }
 0x437   : > { %2278 = vrot.lane.b32.xlu0 %v6180_v21, %s4105_s20 }
 0x438   : > { %2109 = vst [vmem:[%s5347_s24 + $0x174] sm:$0xf] %v3142_v18  ;;  %2280 = vrot.lane.b32.xlu1 %v6181_v15, %s4105_s20  ;;  %v2251_v49 = vpop.permute.xlu0 %2250  ;;  %v6184_v18 = vld [vmem:[#allocation50_spill] sm:$0xff] }
 0x439   : > { %v2340_v36 = vsel %vm5283_vm0, %v2155_v57, %v2251_v49 }
 0x43a   : > { %v2404_v8 = vmul.f32 %v3349_v13, %v2340_v36  ;;  %v2253_v3 = vpop.permute.xlu1 %2252  ;;  %v1831_v36 = vmul.f32 %v3290_v39, %v5078_v44 }
 0x43b   : > { %1640 = vrot.lane.b32.xlu0 %v6182_v51, %s4104_s8  ;;  %v2341_v12 = vsel %vm5283_vm0, %v2157_v35, %v2253_v3  ;;  %v1830_v35 = vmul.f32 %v3289_v48, %v5074_v9  ;;  %v6185_v3 = vld [vmem:[#allocation52_spill] sm:$0xff] }
 0x43c   : > { %v2436_v58 = vadd.f32 %v2404_v8, %v2372_v4  ;;  %v2405_v30 = vmul.f32 %v3350_v19, %v2341_v12  ;;  %1642 = vrot.lane.b32.xlu1 %v6183_v61, %s4104_s8  ;;  %v1613_v59 = vpop.permute.xlu0 %1612 }
 0x43e   : > { %v3149_v13 = vpack.c.bf16 %v2436_v58, %v2436_v58  ;;  %v2437_v17 = vadd.f32 %v2405_v30, %v2373_v16  ;;  %v1615_v57 = vpop.permute.xlu1 %1614 }
 0x43f   : > { %1736 = vrot.lane.b32.xlu0 %v6182_v51, %s4105_s20 }
 0x440   : > { %2596 = vst [vmem:[%s5347_s24 + $0x4c] sm:$0xf] %v3149_v13  ;;  %v3150_v1 = vpack.c.bf16 %v2437_v17, %v2437_v17  ;;  %1738 = vrot.lane.b32.xlu1 %v6183_v61, %s4105_s20  ;;  %v1709_v26 = vpop.permute.xlu0 %1708 }
 0x441   : > { %v1798_v19 = vsel %vm5283_vm0, %v1613_v59, %v1709_v26  ;;  %v2374_v59 = vmul.f32 %v3289_v48, %v5076_v60 }
 0x442   : > { %2597 = vst [vmem:[%s5347_s24 + $0x58] sm:$0xf] %v3150_v1  ;;  %v1862_v41 = vmul.f32 %v3353_v40, %v1798_v19  ;;  %v1711_v37 = vpop.permute.xlu1 %1710  ;;  %v3418_v1 = vld [vmem:[%s4522_s2 + $0x28] sm:$0xff]  }
 0x443   : > { %2186 = vrot.lane.b32.xlu0 %v6184_v18, %s4104_s8  ;;  %v1799_v49 = vsel %vm5283_vm0, %v1615_v57, %v1711_v37  ;;  %v3433_v19 = vld [vmem:[%s5266_s9 + $0x28] sm:$0xff]   ;;  %v3293_v48 = vunpack.c.l.bf16 %v3418_v1 }
 0x444   : > { %v1894_v4 = vadd.f32 %v1862_v41, %v1830_v35  ;;  %v1863_v8 = vmul.f32 %v3354_v28, %v1799_v49  ;;  %2188 = vrot.lane.b32.xlu1 %v6185_v3, %s4104_s8  ;;  %v2159_v53 = vpop.permute.xlu0 %2158  ;;  %v2375_v35 = vmul.f32 %v3290_v39, %v5080_v0 }
 0x445   : > { %v1832_v39 = vmul.f32 %v3293_v48, %v5082_v2 }
 0x446   : > { %v1926_v9 = vmul.f32 0.17677669, %v1894_v4  ;;  %v1895_v12 = vadd.f32 %v1863_v8, %v1831_v36  ;;  %v2161_v25 = vpop.permute.xlu1 %2160  ;;  %v3357_v36 = vunpack.c.l.bf16 %v3433_v19  ;;  %v3294_v4 = vunpack.c.h.bf16 %v3418_v1 }
 0x447   : > { %2282 = vrot.lane.b32.xlu0 %v6184_v18, %s4105_s20 }
 0x448   : > { %v3119_v16 = vpack.c.bf16 %v1926_v9, %v1926_v9  ;;  %v1927_v58 = vmul.f32 0.17677669, %v1895_v12  ;;  %2284 = vrot.lane.b32.xlu1 %v6185_v3, %s4105_s20  ;;  %v2255_v44 = vpop.permute.xlu0 %2254  ;;  %v3358_v9 = vunpack.c.h.bf16 %v3433_v19 }
 0x449   : > { %v2342_v30 = vsel %vm5283_vm0, %v2159_v53, %v2255_v44 }
 0x44a   : > { %2086 = vst [vmem:[%s5347_s24 + $0x60] sm:$0xf] %v3119_v16  ;;  %v3120_v13 = vpack.c.bf16 %v1927_v58, %v1927_v58  ;;  %v2406_v17 = vmul.f32 %v3353_v40, %v2342_v30  ;;  %v2257_v57 = vpop.permute.xlu1 %2256 }
 0x44b   : > { %2298 = vrot.lane.b32.xlu0 %v5280_v14, %s4105_s20  ;;  %v2343_v26 = vsel %vm5283_vm0, %v2161_v25, %v2257_v57  ;;  %v1833_v25 = vmul.f32 %v3294_v4, %v5086_v38 }
 0x44c   : > { %2087 = vst [vmem:[%s5347_s24 + $0x6c] sm:$0xf] %v3120_v13  ;;  %v2438_v41 = vadd.f32 %v2406_v17, %v2374_v59  ;;  %v2407_v37 = vmul.f32 %v3354_v28, %v2343_v26  ;;  %2300 = vrot.lane.b32.xlu1 %v5300_v50, %s4105_s20  ;;  %v1617_v60 = vpop.permute.xlu0 %1616  ;;  %v2376_v26 = vmul.f32 %v3293_v48, %v5084_v29 }
 0x44e   : > { %v3151_v40 = vpack.c.bf16 %v2438_v41, %v2438_v41  ;;  %v2439_v49 = vadd.f32 %v2407_v37, %v2375_v35  ;;  %v1619_v14 = vpop.permute.xlu1 %1618  ;;  %v3419_v41 = vld [vmem:[%s4522_s2 + $0x30] sm:$0xff]  }
 0x450   : > { %2598 = vst [vmem:[%s5347_s24 + $0x64] sm:$0xf] %v3151_v40  ;;  %v3152_v8 = vpack.c.bf16 %v2439_v49, %v2439_v49  ;;  %v1713_v53 = vpop.permute.xlu0 %1712  ;;  %v2377_v40 = vmul.f32 %v3294_v4, %v5088_v45 }
 0x451   : > { %v1800_v0 = vsel %vm5283_vm0, %v1617_v60, %v1713_v53  ;;  %v3434_v60 = vld [vmem:[%s5266_s9 + $0x30] sm:$0xff]   ;;  %v3297_v53 = vunpack.c.l.bf16 %v3419_v41 }
 0x452   : > { %2599 = vst [vmem:[%s5347_s24 + $0x70] sm:$0xf] %v3152_v8  ;;  %v1864_v28 = vmul.f32 %v3357_v36, %v1800_v0  ;;  %v1715_v50 = vpop.permute.xlu1 %1714 }
 0x453   : > { %v1801_v12 = vsel %vm5283_vm0, %v1619_v14, %v1715_v50  ;;  %v1834_v45 = vmul.f32 %v3297_v53, %v5102_v42 }
 0x454   : > { %v1896_v16 = vadd.f32 %v1864_v28, %v1832_v39  ;;  %v1865_v58 = vmul.f32 %v3358_v9, %v1801_v12  ;;  %v2163_v44 = vpop.permute.xlu0 %2162  ;;  %v3361_v39 = vunpack.c.l.bf16 %v3434_v60  ;;  %v3362_v12 = vunpack.c.h.bf16 %v3434_v60  ;;  %v3435_v60 = vld [vmem:[%s5266_s9 + $0x38] sm:$0xff]  }
 0x456   : > { %v1928_v30 = vmul.f32 0.17677669, %v1896_v16  ;;  %v1897_v59 = vadd.f32 %v1865_v58, %v1833_v25  ;;  %v2165_v13 = vpop.permute.xlu1 %2164 }
 0x458   : > { %v3121_v17 = vpack.c.bf16 %v1928_v30, %v1928_v30  ;;  %v1929_v2 = vmul.f32 0.17677669, %v1897_v59 }
 0x459   : > { %v2259_v57 = vpop.permute.xlu0 %2258 }
 0x45a   : > { %v2344_v1 = vsel %vm5283_vm0, %v2163_v44, %v2259_v57  ;;  %2088 = vst [vmem:[%s5347_s24 + $0x78] sm:$0xf] %v3121_v17  ;;  %v3122_v19 = vpack.c.bf16 %v1929_v2, %v1929_v2  ;;  %v2261_v35 = vpop.permute.xlu1 %2260 }
 0x45b   : > { %v2408_v38 = vmul.f32 %v3357_v36, %v2344_v1  ;;  %v2345_v37 = vsel %vm5283_vm0, %v2165_v13, %v2261_v35  ;;  %v3298_v36 = vunpack.c.h.bf16 %v3419_v41  ;;  %v3420_v41 = vld [vmem:[%s4522_s2 + $0x38] sm:$0xff]  }
 0x45c   : > { %2089 = vst [vmem:[%s5347_s24 + $0x84] sm:$0xf] %v3122_v19  ;;  %v2409_v14 = vmul.f32 %v3358_v9, %v2345_v37  ;;  %v2378_v19 = vmul.f32 %v3297_v53, %v5104_v43 }
 0x45d   : > { %v2440_v49 = vadd.f32 %v2408_v38, %v2376_v26  ;;  %v1621_v8 = vpop.permute.xlu0 %1620  ;;  %v1835_v58 = vmul.f32 %v3298_v36, %v5108_v20 }
 0x45e   : > { %v2441_v29 = vadd.f32 %v2409_v14, %v2377_v40  ;;  %v1623_v48 = vpop.permute.xlu1 %1622  ;;  %v2379_v40 = vmul.f32 %v3298_v36, %v5110_v32 }
 0x45f   : > { %v3153_v0 = vpack.c.bf16 %v2440_v49, %v2440_v49 }
 0x460   : > { %v3154_v28 = vpack.c.bf16 %v2441_v29, %v2441_v29 }
 0x461   : > { %2600 = vst [vmem:[%s5347_s24 + $0x7c] sm:$0xf] %v3153_v0  ;;  %v1717_v50 = vpop.permute.xlu0 %1716  ;;  %v3301_v0 = vunpack.c.l.bf16 %v3420_v41 }
 0x462   : > { %v1802_v25 = vsel %vm5283_vm0, %v1621_v8, %v1717_v50  ;;  %2601 = vst [vmem:[%s5347_s24 + $0x88] sm:$0xf] %v3154_v28  ;;  %v1719_v9 = vpop.permute.xlu1 %1718 }
 0x463   : > { %v1866_v4 = vmul.f32 %v3361_v39, %v1802_v25  ;;  %v1803_v16 = vsel %vm5283_vm0, %v1623_v48, %v1719_v9  ;;  %v3365_v48 = vunpack.c.l.bf16 %v3435_v60  ;;  %v3366_v25 = vunpack.c.h.bf16 %v3435_v60 }
 0x464   : > { %v1867_v30 = vmul.f32 %v3362_v12, %v1803_v16  ;;  %v1836_v32 = vmul.f32 %v3301_v0, %v5126_v24 }
 0x465   : > { %v1898_v44 = vadd.f32 %v1866_v4, %v1834_v45  ;;  %v2167_v59 = vpop.permute.xlu0 %2166 }
 0x466   : > { %v1899_v17 = vadd.f32 %v1867_v30, %v1835_v58  ;;  %v2169_v2 = vpop.permute.xlu1 %2168 }
 0x467   : > { %v1930_v13 = vmul.f32 0.17677669, %v1898_v44 }
 0x468   : > { %v1931_v42 = vmul.f32 0.17677669, %v1899_v17 }
 0x469   : > { %v3123_v57 = vpack.c.bf16 %v1930_v13, %v1930_v13  ;;  %v2263_v1 = vpop.permute.xlu0 %2262 }
 0x46a   : > { %v2346_v26 = vsel %vm5283_vm0, %v2167_v59, %v2263_v1  ;;  %v3124_v38 = vpack.c.bf16 %v1931_v42, %v1931_v42  ;;  %v2265_v35 = vpop.permute.xlu1 %2264  ;;  %v2380_v42 = vmul.f32 %v3301_v0, %v6162_v55 }
 0x46b   : > { %2090 = vst [vmem:[%s5347_s24 + $0x90] sm:$0xf] %v3123_v57  ;;  %v2410_v20 = vmul.f32 %v3361_v39, %v2346_v26  ;;  %v2347_v37 = vsel %vm5283_vm0, %v2169_v2, %v2265_v35  ;;  %v3302_v39 = vunpack.c.h.bf16 %v3420_v41 }
 0x46c   : > { %2091 = vst [vmem:[%s5347_s24 + $0x9c] sm:$0xf] %v3124_v38  ;;  %v2411_v14 = vmul.f32 %v3362_v12, %v2347_v37 }
 0x46d   : > { %v2442_v49 = vadd.f32 %v2410_v20, %v2378_v19  ;;  %v1625_v8 = vpop.permute.xlu0 %1624  ;;  %v1837_v9 = vmul.f32 %v3302_v39, %v5132_v27  ;;  %v3421_v19 = vld [vmem:[%s4522_s2 + $0x40] sm:$0xff]   ;;  %v2381_v35 = vmul.f32 %v3302_v39, %v6163_v46 }
 0x46e   : > { %v2443_v43 = vadd.f32 %v2411_v14, %v2379_v40  ;;  %v1627_v53 = vpop.permute.xlu1 %1626  ;;  %v3436_v20 = vld [vmem:[%s5266_s9 + $0x40] sm:$0xff]   ;;  %v3305_v40 = vunpack.c.l.bf16 %v3421_v19  ;;  %v3306_v0 = vunpack.c.h.bf16 %v3421_v19 }
 0x46f   : > { %v3155_v29 = vpack.c.bf16 %v2442_v49, %v2442_v49 }
 0x470   : > { %v3156_v28 = vpack.c.bf16 %v2443_v43, %v2443_v43  ;;  %v1838_v46 = vmul.f32 %v3305_v40, %v6165_v56 }
 0x471   : > { %2602 = vst [vmem:[%s5347_s24 + $0x94] sm:$0xf] %v3155_v29  ;;  %v1721_v50 = vpop.permute.xlu0 %1720 }
 0x472   : > { %v1804_v45 = vsel %vm5283_vm0, %v1625_v8, %v1721_v50  ;;  %2603 = vst [vmem:[%s5347_s24 + $0xa0] sm:$0xf] %v3156_v28  ;;  %v1723_v12 = vpop.permute.xlu1 %1722  ;;  %v3369_v8 = vunpack.c.l.bf16 %v3436_v20 }
 0x473   : > { %v1868_v36 = vmul.f32 %v3365_v48, %v1804_v45  ;;  %v1805_v4 = vsel %vm5283_vm0, %v1627_v53, %v1723_v12  ;;  %v3370_v53 = vunpack.c.h.bf16 %v3436_v20 }
 0x474   : > { %v1869_v58 = vmul.f32 %v3366_v25, %v1805_v4 }
 0x475   : > { %v1900_v16 = vadd.f32 %v1868_v36, %v1836_v32  ;;  %v2171_v44 = vpop.permute.xlu0 %2170 }
 0x476   : > { %v1901_v59 = vadd.f32 %v1869_v58, %v1837_v9  ;;  %v2173_v13 = vpop.permute.xlu1 %2172 }
 0x477   : > { %v1932_v30 = vmul.f32 0.17677669, %v1900_v16 }
 0x478   : > { %v1933_v24 = vmul.f32 0.17677669, %v1901_v59 }
 0x479   : > { %v3125_v17 = vpack.c.bf16 %v1932_v30, %v1932_v30  ;;  %v2267_v2 = vpop.permute.xlu0 %2266  ;;  %v2382_v30 = vmul.f32 %v3305_v40, %v6169_v22 }
 0x47a   : > { %v2348_v57 = vsel %vm5283_vm0, %v2171_v44, %v2267_v2  ;;  %v3126_v1 = vpack.c.bf16 %v1933_v24, %v1933_v24  ;;  %v2269_v26 = vpop.permute.xlu1 %2268  ;;  %v3437_v2 = vld [vmem:[%s5266_s9 + $0x48] sm:$0xff]  }
 0x47b   : > { %2092 = vst [vmem:[%s5347_s24 + $0xa8] sm:$0xf] %v3125_v17  ;;  %v2412_v27 = vmul.f32 %v3365_v48, %v2348_v57  ;;  %v2349_v38 = vsel %vm5283_vm0, %v2173_v13, %v2269_v26  ;;  %v3422_v17 = vld [vmem:[%s4522_s2 + $0x48] sm:$0xff]   ;;  %v2383_v57 = vmul.f32 %v3306_v0, %v6170_v63  ;;  %v3373_v20 = vunpack.c.l.bf16 %v3437_v2 }
 0x47c   : > { %2093 = vst [vmem:[%s5347_s24 + $0xb4] sm:$0xf] %v3126_v1  ;;  %v2413_v37 = vmul.f32 %v3366_v25, %v2349_v38  ;;  %v1839_v25 = vmul.f32 %v3306_v0, %v6167_v31  ;;  %v3309_v26 = vunpack.c.l.bf16 %v3422_v17 }
 0x47d   : > { %v2444_v41 = vadd.f32 %v2412_v27, %v2380_v42  ;;  %v1629_v60 = vpop.permute.xlu0 %1628 }
 0x47e   : > { %v2445_v55 = vadd.f32 %v2413_v37, %v2381_v35  ;;  %v1631_v14 = vpop.permute.xlu1 %1630  ;;  %v3310_v35 = vunpack.c.h.bf16 %v3422_v17  ;;  %v1840_v63 = vmul.f32 %v3309_v26, %v6171_v34 }
 0x47f   : > { %v3157_v49 = vpack.c.bf16 %v2444_v41, %v2444_v41 }
 0x480   : > { %v3158_v29 = vpack.c.bf16 %v2445_v55, %v2445_v55 }
 0x481   : > { %2604 = vst [vmem:[%s5347_s24 + $0xac] sm:$0xf] %v3157_v49  ;;  %v1725_v43 = vpop.permute.xlu0 %1724 }
 0x482   : > { %v1806_v48 = vsel %vm5283_vm0, %v1629_v60, %v1725_v43  ;;  %2605 = vst [vmem:[%s5347_s24 + $0xb8] sm:$0xf] %v3158_v29  ;;  %v1727_v28 = vpop.permute.xlu1 %1726  ;;  %v3374_v60 = vunpack.c.h.bf16 %v3437_v2 }
 0x483   : > { %v1870_v39 = vmul.f32 %v3369_v8, %v1806_v48  ;;  %v1807_v50 = vsel %vm5283_vm0, %v1631_v14, %v1727_v28 }
 0x484   : > { %v1871_v32 = vmul.f32 %v3370_v53, %v1807_v50 }
 0x485   : > { %v1902_v45 = vadd.f32 %v1870_v39, %v1838_v46  ;;  %v2175_v36 = vpop.permute.xlu0 %2174 }
 0x486   : > { %v1903_v4 = vadd.f32 %v1871_v32, %v1839_v25  ;;  %v2177_v9 = vpop.permute.xlu1 %2176  ;;  %v2384_v25 = vmul.f32 %v3309_v26, %v6173_v10 }
 0x487   : > { %v1934_v12 = vmul.f32 0.17677669, %v1902_v45 }
 0x488   : > { %v1935_v56 = vmul.f32 0.17677669, %v1903_v4  ;;  %v3438_v4 = vld [vmem:[%s5266_s9 + $0x50] sm:$0xff]  }
 0x489   : > { %v3127_v16 = vpack.c.bf16 %v1934_v12, %v1934_v12  ;;  %v2271_v58 = vpop.permute.xlu0 %2270  ;;  %v3378_v2 = vunpack.c.h.bf16 %v3438_v4 }
 0x48a   : > { %v2350_v44 = vsel %vm5283_vm0, %v2175_v36, %v2271_v58  ;;  %v3128_v59 = vpack.c.bf16 %v1935_v56, %v1935_v56  ;;  %v2273_v13 = vpop.permute.xlu1 %2272  ;;  %v3423_v36 = vld [vmem:[%s4522_s2 + $0x50] sm:$0xff]  }
 0x48b   : > { %2094 = vst [vmem:[%s5347_s24 + $0xc0] sm:$0xf] %v3127_v16  ;;  %v2414_v31 = vmul.f32 %v3369_v8, %v2350_v44  ;;  %v2351_v24 = vsel %vm5283_vm0, %v2177_v9, %v2273_v13  ;;  %v1841_v8 = vmul.f32 %v3310_v35, %v6172_v47  ;;  %v2385_v9 = vmul.f32 %v3310_v35, %v6174_v52 }
 0x48c   : > { %2095 = vst [vmem:[%s5347_s24 + $0xcc] sm:$0xf] %v3128_v59  ;;  %v2415_v1 = vmul.f32 %v3370_v53, %v2351_v24  ;;  %v3313_v44 = vunpack.c.l.bf16 %v3423_v36  ;;  %v3314_v13 = vunpack.c.h.bf16 %v3423_v36 }
 0x48d   : > { %v2446_v42 = vadd.f32 %v2414_v31, %v2382_v30  ;;  %v1633_v27 = vpop.permute.xlu0 %1632  ;;  %v3377_v31 = vunpack.c.l.bf16 %v3438_v4 }
 0x48e   : > { %v2447_v22 = vadd.f32 %v2415_v1, %v2383_v57  ;;  %v1635_v38 = vpop.permute.xlu1 %1634  ;;  %v1842_v52 = vmul.f32 %v3313_v44, %v6175_v62  ;;  %v1843_v26 = vmul.f32 %v3314_v13, %v6176_v6 }
 0x48f   : > { %v3159_v19 = vpack.c.bf16 %v2446_v42, %v2446_v42 }
 0x490   : > { %v3160_v41 = vpack.c.bf16 %v2447_v22, %v2447_v22 }
 0x491   : > { %2606 = vst [vmem:[%s5347_s24 + $0xc4] sm:$0xf] %v3159_v19  ;;  %v1729_v37 = vpop.permute.xlu0 %1728 }
 0x492   : > { %v1808_v40 = vsel %vm5283_vm0, %v1633_v27, %v1729_v37  ;;  %2607 = vst [vmem:[%s5347_s24 + $0xd0] sm:$0xf] %v3160_v41  ;;  %v1731_v55 = vpop.permute.xlu1 %1730 }
 0x493   : > { %v1872_v49 = vmul.f32 %v3373_v20, %v1808_v40  ;;  %v1809_v14 = vsel %vm5283_vm0, %v1635_v38, %v1731_v55 }
 0x494   : > { %v1873_v29 = vmul.f32 %v3374_v60, %v1809_v14  ;;  %v3424_v14 = vld [vmem:[%s4522_s2 + $0x58] sm:$0xff]  }
 0x495   : > { %v1904_v0 = vadd.f32 %v1872_v49, %v1840_v63  ;;  %v2179_v43 = vpop.permute.xlu0 %2178  ;;  %v2386_v63 = vmul.f32 %v3313_v44, %v6180_v21 }
 0x496   : > { %v1905_v48 = vadd.f32 %v1873_v29, %v1841_v8  ;;  %v2181_v46 = vpop.permute.xlu1 %2180  ;;  %v2387_v29 = vmul.f32 %v3314_v13, %v6181_v15 }
 0x497   : > { %v1936_v53 = vmul.f32 0.17677669, %v1904_v0  ;;  %v3439_v0 = vld [vmem:[%s5266_s9 + $0x58] sm:$0xff]  }
 0x498   : > { %v1937_v34 = vmul.f32 0.17677669, %v1905_v48 }
 0x499   : > { %v3129_v39 = vpack.c.bf16 %v1936_v53, %v1936_v53  ;;  %v2275_v28 = vpop.permute.xlu0 %2274 }
 0x49a   : > { %v2352_v50 = vsel %vm5283_vm0, %v2179_v43, %v2275_v28  ;;  %v3130_v45 = vpack.c.bf16 %v1937_v34, %v1937_v34  ;;  %v2277_v32 = vpop.permute.xlu1 %2276  ;;  %v3381_v28 = vunpack.c.l.bf16 %v3439_v0 }
 0x49b   : > { %2096 = vst [vmem:[%s5347_s24 + $0xd8] sm:$0xf] %v3129_v39  ;;  %v2416_v47 = vmul.f32 %v3373_v20, %v2352_v50  ;;  %v2353_v12 = vsel %vm5283_vm0, %v2181_v46, %v2277_v32  ;;  %v3317_v46 = vunpack.c.l.bf16 %v3424_v14  ;;  %v3318_v50 = vunpack.c.h.bf16 %v3424_v14 }
 0x49c   : > { %2097 = vst [vmem:[%s5347_s24 + $0xe4] sm:$0xf] %v3130_v45  ;;  %v2417_v56 = vmul.f32 %v3374_v60, %v2353_v12 }
 0x49d   : > { %v2448_v16 = vadd.f32 %v2416_v47, %v2384_v25  ;;  %v1637_v58 = vpop.permute.xlu0 %1636  ;;  %v3382_v47 = vunpack.c.h.bf16 %v3439_v0  ;;  %v1844_v15 = vmul.f32 %v3317_v46, %v6182_v51 }
 0x49e   : > { %v2449_v10 = vadd.f32 %v2417_v56, %v2385_v9  ;;  %v1639_v59 = vpop.permute.xlu1 %1638  ;;  %v1845_v9 = vmul.f32 %v3318_v50, %v6183_v61 }
 0x49f   : > { %v3161_v30 = vpack.c.bf16 %v2448_v16, %v2448_v16 }
 0x4a0   : > { %v3162_v17 = vpack.c.bf16 %v2449_v10, %v2449_v10 }
 0x4a1   : > { %2608 = vst [vmem:[%s5347_s24 + $0xdc] sm:$0xf] %v3161_v30  ;;  %v1733_v24 = vpop.permute.xlu0 %1732 }
 0x4a2   : > { %v1810_v57 = vsel %vm5283_vm0, %v1637_v58, %v1733_v24  ;;  %2609 = vst [vmem:[%s5347_s24 + $0xe8] sm:$0xf] %v3162_v17  ;;  %v1735_v1 = vpop.permute.xlu1 %1734  ;;  %v2388_v17 = vmul.f32 %v3317_v46, %v6184_v18 }
 0x4a3   : > { %v1874_v42 = vmul.f32 %v3377_v31, %v1810_v57  ;;  %v1811_v27 = vsel %vm5283_vm0, %v1639_v59, %v1735_v1 }
 0x4a4   : > { %v1875_v22 = vmul.f32 %v3378_v2, %v1811_v27 }
 0x4a5   : > { %v1906_v19 = vadd.f32 %v1874_v42, %v1842_v52  ;;  %v2183_v38 = vpop.permute.xlu0 %2182  ;;  %v2389_v52 = vmul.f32 %v3318_v50, %v6185_v3 }
 0x4a6   : > { %v1907_v35 = vadd.f32 %v1875_v22, %v1843_v26  ;;  %v2185_v41 = vpop.permute.xlu1 %2184 }
 0x4a7   : > { %v1938_v20 = vmul.f32 0.17677669, %v1906_v19 }
 0x4a8   : > { %v1939_v62 = vmul.f32 0.17677669, %v1907_v35  ;;  %v6188_v35 = vld [vmem:[#allocation54_spill] sm:$0xff] }
 0x4a9   : > { %v3131_v37 = vpack.c.bf16 %v1938_v20, %v1938_v20  ;;  %v2279_v60 = vpop.permute.xlu0 %2278 }
 0x4aa   : > { %v2354_v40 = vsel %vm5283_vm0, %v2183_v38, %v2279_v60  ;;  %v3132_v49 = vpack.c.bf16 %v1939_v62, %v1939_v62  ;;  %v2281_v55 = vpop.permute.xlu1 %2280 }
 0x4ab   : > { %2098 = vst [vmem:[%s5347_s24 + $0xf0] sm:$0xf] %v3131_v37  ;;  %v2418_v6 = vmul.f32 %v3377_v31, %v2354_v40  ;;  %v2355_v8 = vsel %vm5283_vm0, %v2185_v41, %v2281_v55  ;;  %v6190_v37 = vld [vmem:[#allocation55_spill] sm:$0xff] }
 0x4ac   : > { %2099 = vst [vmem:[%s5347_s24 + $0xfc] sm:$0xf] %v3132_v49  ;;  %v2419_v53 = vmul.f32 %v3378_v2, %v2355_v8 }
 0x4ad   : > { %v2450_v43 = vadd.f32 %v2418_v6, %v2386_v63  ;;  %v1641_v48 = vpop.permute.xlu0 %1640 }
 0x4ae   : > { %v2451_v21 = vadd.f32 %v2419_v53, %v2387_v29  ;;  %v1643_v34 = vpop.permute.xlu1 %1642 }
 0x4af   : > { %v3163_v39 = vpack.c.bf16 %v2450_v43, %v2450_v43 }
 0x4b0   : > { %v3164_v25 = vpack.c.bf16 %v2451_v21, %v2451_v21 }
 0x4b1   : > { %2610 = vst [vmem:[%s5347_s24 + $0xf4] sm:$0xf] %v3163_v39  ;;  %v1737_v45 = vpop.permute.xlu0 %1736 }
 0x4b2   : > { %v1812_v32 = vsel %vm5283_vm0, %v1641_v48, %v1737_v45  ;;  %2611 = vst [vmem:[%s5347_s24 + $0x100] sm:$0xf] %v3164_v25  ;;  %v1739_v12 = vpop.permute.xlu1 %1738 }
 0x4b3   : > { %v1876_v36 = vmul.f32 %v3381_v28, %v1812_v32  ;;  %v1813_v4 = vsel %vm5283_vm0, %v1643_v34, %v1739_v12 }
 0x4b4   : > { %v1877_v56 = vmul.f32 %v3382_v47, %v1813_v4 }
 0x4b5   : > { %v1908_v16 = vadd.f32 %v1876_v36, %v1844_v15  ;;  %v2187_v58 = vpop.permute.xlu0 %2186 }
 0x4b6   : > { %v1909_v30 = vadd.f32 %v1877_v56, %v1845_v9  ;;  %v2189_v10 = vpop.permute.xlu1 %2188 }
 0x4b7   : > { %v1940_v44 = vmul.f32 0.17677669, %v1908_v16 }
 0x4b8   : > { %v1941_v51 = vmul.f32 0.17677669, %v1909_v30 }
 0x4b9   : > { %v3133_v59 = vpack.c.bf16 %v1940_v44, %v1940_v44  ;;  %v2283_v31 = vpop.permute.xlu0 %2282 }
 0x4ba   : > { %v2356_v13 = vsel %vm5283_vm0, %v2187_v58, %v2283_v31  ;;  %v3134_v24 = vpack.c.bf16 %v1941_v51, %v1941_v51  ;;  %v2285_v2 = vpop.permute.xlu1 %2284 }
 0x4bb   : > { %2100 = vst [vmem:[%s5347_s24 + $0x108] sm:$0xf] %v3133_v59  ;;  %v2420_v61 = vmul.f32 %v3381_v28, %v2356_v13  ;;  %v2357_v57 = vsel %vm5283_vm0, %v2189_v10, %v2285_v2 }
 0x4bc   : > { %2101 = vst [vmem:[%s5347_s24 + $0x114] sm:$0xf] %v3134_v24  ;;  %v2421_v1 = vmul.f32 %v3382_v47, %v2357_v57 }
 0x4bd   : > { %v2452_v42 = vadd.f32 %v2420_v61, %v2388_v17  ;;  %v2299_v27 = vpop.permute.xlu0 %2298 }
 0x4be   : > { %v2364_v18 = vsel %vm5283_vm0, %v5730_v54, %v2299_v27  ;;  %v2453_v19 = vadd.f32 %v2421_v1, %v2389_v52  ;;  %v2301_v38 = vpop.permute.xlu1 %2300 }
 0x4bf   : > { %v3165_v26 = vpack.c.bf16 %v2452_v42, %v2452_v42  ;;  %v2428_v22 = vmul.f32 %v3397_v33, %v2364_v18  ;;  %v2365_v3 = vsel %vm5283_vm0, %v5733_v7, %v2301_v38 }
 0x4c0   : > { %v3166_v20 = vpack.c.bf16 %v2453_v19, %v2453_v19  ;;  %v2429_v54 = vmul.f32 %v3398_v5, %v2365_v3 }
 0x4c1   : > { %2612 = vst [vmem:[%s5347_s24 + $0x10c] sm:$0xf] %v3165_v26  ;;  %v2460_v41 = vadd.f32 %v2428_v22, %v6188_v35 }
 0x4c2   : > { %2613 = vst [vmem:[%s5347_s24 + $0x118] sm:$0xf] %v3166_v20  ;;  %v2461_v62 = vadd.f32 %v2429_v54, %v6190_v37 }
 0x4c3   : > { %v3173_v33 = vpack.c.bf16 %v2460_v41, %v2460_v41 }
 0x4c4   : > { %v3174_v23 = vpack.c.bf16 %v2461_v62, %v2461_v62 }
 0x4c5   : > { %2620 = vst [vmem:[%s5347_s24 + $0x16c] sm:$0xf] %v3173_v33 }
 0x4c6   : > { %2621 = vst [vmem:[%s5347_s24 + $0x178] sm:$0xf] %v3174_v23 }
 0x4c7   : > { %3970 = shalt.err (!%p3967_p3)
}
 0x4c8   : > { %s3971_s2 = scalar_lea.hbm %s5933_s21, 6144  ;;  %s3975_s9 = scalar_lea.hbm %s6192_s11, 24576 }
 0x4c9   : > { %p3972_p8 = scmp.ne.s32.totalorder %s5933_s21, %s3971_s2  ;;  %p3976_p13 = scmp.lt.u32.totalorder %s5933_s21, %s6192_s11 }
 0x4ca   : > { %p3977_p6 = scmp.lt.u32.totalorder %s3975_s9, %s3971_s2  ;;  %p3979_p4 = scmp.lt.u32.totalorder %s3971_s2, %s5933_s21 }
 0x4cb   : > { %p3973_p1 = pnand %p3972_p8, %p6193_p7 }
 0x4cc   : > { %p3978_p5 = por %p3977_p6, %p3976_p13 }
 0x4cd   : > { %p3974_p2 = pneg %p3973_p1 }
 0x4ce   : > { %p3980_p10 = por %p3979_p4, %p3978_p5 }
 0x4d0   : > { %p3981_p11 = pnand %p3980_p10, %p3974_p2 }
 0x4d2   : > { %3984 = shalt.err (!%p3981_p11)
}
 0x4d3   : > { %s4107_s14 = smov 192   ;;  %s4108_s1 = smov 12  }
 0x4d4   : > { %3553 = dma.vmem_to_hbm [thread:$0]  (%p6193_p7), %s5927_s3, 6144, %s5933_s21, %s2783_s7, %s4107_s14, %s4107_s14, %s4108_s1  }
 0x4d5 PF: > { %s6194_s13 = sld [smem:[#allocation24_spill]]  ;;  %s6195_s19 = sld [smem:[#allocation19_spill]] }
 0x4d6   : > { %s6196_s17 = sld [smem:[#allocation30_spill]] }
 0x4db   : > { %p3586_p0 = scmp.ge.s32.totalorder %s6194_s13, 2  ;;  %s2814_s27 = sand.u32 1, %s6195_s19  }
 0x4dc   : > { %p6197_p12 = scmp.ne.s32.totalorder %s6196_s17, 0  ;;  %s2815_s4 = scalar_lea.sflag [#allocation4], %s2814_s27 }
 0x4de   : > { %p3576_p9 = pnand %p3586_p0, %p6197_p12 }
 0x4e0   : > { %4046 = dma.done.wait (!%p3576_p9), %s2815_s4, 6144  }
 0x4e1   : > { %4048 = vsyncadd (!%p3576_p9), %s2815_s4, 4294961152  ;;  %s24_s7 = sadd.s32 1, %s6194_s13   ;;  %s6198_s26 = sld [smem:[#allocation18_spill]] }
 0x4e2   : > { %p21_p3 = scmp.ge.s32.totalorder %s24_s7, 6   ;;  %s6199_s23 = sld [smem:[#allocation31_spill]] }
 0x4e3   : > { %s6200_s18 = sld [smem:[#allocation20_spill]]  ;;  %s6201_s12 = sld [smem:[#allocation27_spill]] }
 0x4e4   : > { %s6202_s28 = sld [smem:[#allocation23_spill]]  ;;  %s6203_s3 = sld [smem:[#allocation25_spill]] }
 0x4e5   : > { %s6204_s30 = sld [smem:[#allocation26_spill]]  ;;  %s6205_s21 = smov %s4055_s22 }
 0x4e6   : > { %s6207_s24 = smov %s4067_s25  ;;  %s6210_s27 = smov %s4083_s29 }
 0x4e7   : > { %s6206_s22 = smov %s6198_s26  ;;  %23 = sbr.rel (!%p21_p3) target bundleno = 19 (0x13), region = 123 }
 0x4e9   : > { %s6208_s25 = smov %s6200_s18  ;;  %s6209_s26 = smov %s6201_s12 }
 0x4ea   : > { %s6211_s29 = smov %s6203_s3 }
 0x4ee   :  { %2820 = vsyncpa [#allocation3], 1 }
 0x4ef   :  { %2822 = vsyncpa [#allocation3 + $0x1], 1 }
 0x4f0   :  { %2823 = vsyncpa [#allocation6], 1 }
 0x4f1   :  { %2824 = vsyncpa [#allocation9], 1 }
 0x4f2   :  { %2825 = vsyncpa [#allocation4], 1 }
 0x4f3   :  { %2827 = vsyncpa [#allocation4 + $0x1], 1 }

</bundles_post_ra>
